<compile_context>
chip_gen: v7x
topology: tpu7x:2x2x1
jax: 0.10.0
libtpu: 0.0.40
codegen_flags: <defaults>
</compile_context>

<pallas_src>
import functools

import jax
import jax.numpy as jnp
from jax import lax
from jax.experimental import pallas as pl
from jax.experimental.pallas import tpu as pltpu


def _round_up(x, m):
    return (x + m - 1) // m * m


# ----------------------------------------------------------------------------
# Fused kernel: all GRU layers + classifier head in one invocation (no grid).
# Ref order:
#   x, (w_ih, w_hh, b_rzn, b_hn) * num_layers, fc_w, fc_b,   # inputs
#   out,                                                     # output
#   xp                                                       # VMEM scratch
# ----------------------------------------------------------------------------
def _make_fused_kernel(num_layers, T, B_pad, H_pad, unroll):

    def kernel(*refs):
        x_ref = refs[0]
        layer_refs = refs[1:1 + 4 * num_layers]
        fc_w_ref = refs[1 + 4 * num_layers]
        fc_b_ref = refs[2 + 4 * num_layers]
        out_ref = refs[3 + 4 * num_layers]
        xp_ref = refs[4 + 4 * num_layers]

        # ---- layer-0 input projection over ALL timesteps: one batched GEMM ----
        xp_ref[...] = (
            jnp.dot(x_ref[...], layer_refs[0][...],
                    preferred_element_type=jnp.float32)
            + layer_refs[2][...])                            # (T*B_pad, 3*H_pad)

        h = None
        for l in range(num_layers):
            w_ih_ref, w_hh_ref, b_rzn_ref, b_hn_ref = layer_refs[4 * l:4 * l + 4]
            last = (l == num_layers - 1)

            # Hoisted broadcasts (re-emitted per unrolled step otherwise).
            b_hn_b = jnp.broadcast_to(b_hn_ref[...], (B_pad, H_pad))
            nw_ih_ref = None
            nb_rzn_b = None
            if not last:
                nw_ih_ref = layer_refs[4 * (l + 1)]
                nb_rzn_b = jnp.broadcast_to(layer_refs[4 * (l + 1) + 2][...],
                                            (B_pad, 3 * H_pad))

            # ---- sequential recurrence; h carried in registers, not VMEM ----
            def step(t, h_prev, w_hh_ref=w_hh_ref, b_hn_b=b_hn_b,
                     last=last, nw_ih_ref=nw_ih_ref, nb_rzn_b=nb_rzn_b):
                row = pl.multiple_of(t * B_pad, B_pad)
                xp_t = xp_ref[pl.ds(row, B_pad), :]          # (B_pad, 3*H_pad)
                hh = jnp.dot(h_prev, w_hh_ref[...],
                             preferred_element_type=jnp.float32)
                r = jax.nn.sigmoid(xp_t[:, 0:H_pad] + hh[:, 0:H_pad])
                z = jax.nn.sigmoid(xp_t[:, H_pad:2 * H_pad]
                                   + hh[:, H_pad:2 * H_pad])
                n = jnp.tanh(xp_t[:, 2 * H_pad:]
                             + r * (hh[:, 2 * H_pad:] + b_hn_b))
                h_new = n + z * (h_prev - n)
                if not last:
                    # Next layer's input projection for this timestep, hidden
                    # under the latency-bound per-step matmul.  In-place into
                    # xp is safe: row t of layer l was just read above and is
                    # never re-read; layer l+1 reads it only after this layer
                    # finishes.  (Store value depends on the load -> ordered.)
                    xp_ref[pl.ds(row, B_pad), :] = (
                        jnp.dot(h_new, nw_ih_ref[...],
                                preferred_element_type=jnp.float32)
                        + nb_rzn_b)
                return h_new

            h0 = jnp.zeros((B_pad, H_pad), jnp.float32)
            h = lax.fori_loop(0, T, step, h0, unroll=unroll)

        # ---- classifier head fused: ReLU -> Dropout(eval)=identity -> Linear ----
        # TODO(synk): training-mode dropout (pltpu.prng_random_bits mask) not emitted.
        h_last = jnp.maximum(h, 0.0)
        out_ref[...] = (
            jnp.dot(h_last, fc_w_ref[...], preferred_element_type=jnp.float32)
            + fc_b_ref[...]).astype(out_ref.dtype)

    return kernel


# ----------------------------------------------------------------------------
# Wrapper: weight packing / padding (plain JAX glue) + pallas_call.
# ----------------------------------------------------------------------------
def _pack_gate_weights(w, H, in_feat, in_pad, H_pad):
    """PyTorch-packed (3H, in_feat) -> lane-packed (in_pad, 3*H_pad) as [r|z|n]."""
    cols = []
    for g in range(3):
        wg = w[g * H:(g + 1) * H].T                          # (in_feat, H)
        cols.append(jnp.pad(wg, ((0, in_pad - in_feat), (0, H_pad - H))))
    return jnp.concatenate(cols, axis=1)


def _pad_vec(v, H, H_pad):
    return jnp.pad(v, (0, H_pad - H))


def gru_classifier_forward(x_bti, params):
    """x_bti: (B, T, input_size) float32 (batch_first, like the nn.Module)."""
    B, T, input_size = x_bti.shape
    num_layers = len(params["gru"])
    H = params["gru"][0]["w_hh"].shape[1]
    C = params["fc_w"].shape[0]

    B_pad = _round_up(B, 8)
    H_pad = _round_up(H, 128)
    C_pad = _round_up(C, 128)
    in_pad = _round_up(input_size, 128)

    # time-major, pad batch/feature to dense tiles, flatten rows for batched GEMM.
    x = jnp.transpose(x_bti, (1, 0, 2)).astype(jnp.float32)          # (T, B, in)
    x = jnp.pad(x, ((0, 0), (0, B_pad - B), (0, in_pad - input_size)))
    x = x.reshape(T * B_pad, in_pad)

    args = [x]
    for l, layer in enumerate(params["gru"]):
        in_feat = input_size if l == 0 else H
        in_feat_pad = in_pad if l == 0 else H_pad
        w_ih, w_hh = layer["w_ih"], layer["w_hh"]
        b_ih, b_hh = layer["b_ih"], layer["b_hh"]
        w_ih_p = _pack_gate_weights(w_ih, H, in_feat, in_feat_pad, H_pad)
        w_hh_p = _pack_gate_weights(w_hh, H, H, H_pad, H_pad)
        # combined r/z biases (input + hidden side); input-side n bias only.
        b_rzn = jnp.concatenate([
            _pad_vec(b_ih[0:H] + b_hh[0:H], H, H_pad),
            _pad_vec(b_ih[H:2 * H] + b_hh[H:2 * H], H, H_pad),
            _pad_vec(b_ih[2 * H:3 * H], H, H_pad),
        ]).reshape(1, 3 * H_pad)
        b_hn = _pad_vec(b_hh[2 * H:3 * H], H, H_pad).reshape(1, H_pad)
        args += [w_ih_p, w_hh_p, b_rzn, b_hn]

    fc_w = jnp.pad(params["fc_w"].T, ((0, H_pad - H), (0, C_pad - C)))
    fc_b = jnp.pad(params["fc_b"], (0, C_pad - C)).reshape(1, C_pad)
    args += [fc_w, fc_b]

    # Resident-footprint-sized scoped VMEM limit (clamped to v7x physical 64 MiB).
    arg_bytes = sum(int(a.size) * a.dtype.itemsize for a in args)
    scratch_bytes = T * B_pad * 3 * H_pad * 4
    out_bytes = B_pad * C_pad * 4
    vmem_need = arg_bytes + scratch_bytes + out_bytes
    vmem_limit = int(min(max(2 * vmem_need + (2 << 20), 16 << 20), 64 << 20))

    unroll = int(max(1, min(T, 8)))
    kernel = _make_fused_kernel(num_layers, T, B_pad, H_pad, unroll)
    logits_padded = pl.pallas_call(
        kernel,
        out_shape=jax.ShapeDtypeStruct((B_pad, C_pad), jnp.float32),
        scratch_shapes=[
            pltpu.VMEM((T * B_pad, 3 * H_pad), jnp.float32),  # per-layer projections
        ],
        compiler_params=pltpu.CompilerParams(vmem_limit_bytes=vmem_limit),
    )(*args)
    return logits_padded[:B, :C]


# ----------------------------------------------------------------------------
# Parameter init (matches PyTorch U(-1/sqrt(H), 1/sqrt(H)) shapes) + reference.
# ----------------------------------------------------------------------------
def init_params(key, input_size, hidden_size, num_layers, num_classes):
    params = {"gru": []}
    k_gru = 1.0 / jnp.sqrt(hidden_size)
    for layer in range(num_layers):
        in_feat = input_size if layer == 0 else hidden_size
        key, k1, k2, k3, k4 = jax.random.split(key, 5)
        params["gru"].append({
            "w_ih": jax.random.uniform(k1, (3 * hidden_size, in_feat),
                                       jnp.float32, -k_gru, k_gru),
            "w_hh": jax.random.uniform(k2, (3 * hidden_size, hidden_size),
                                       jnp.float32, -k_gru, k_gru),
            "b_ih": jax.random.uniform(k3, (3 * hidden_size,),
                                       jnp.float32, -k_gru, k_gru),
            "b_hh": jax.random.uniform(k4, (3 * hidden_size,),
                                       jnp.float32, -k_gru, k_gru),
        })
    key, k1, k2 = jax.random.split(key, 3)
    params["fc_w"] = jax.random.uniform(k1, (num_classes, hidden_size),
                                        jnp.float32, -k_gru, k_gru)
    params["fc_b"] = jax.random.uniform(k2, (num_classes,),
                                        jnp.float32, -k_gru, k_gru)
    return params


def _reference_forward(x_bti, params):
    """Pure-JAX reference (matches PyTorch GRU + head, eval mode)."""
    B, T, _ = x_bti.shape
    H = params["gru"][0]["w_hh"].shape[1]
    x = x_bti
    for layer in params["gru"]:
        w_ih, w_hh = layer["w_ih"], layer["w_hh"]
        b_ih, b_hh = layer["b_ih"], layer["b_hh"]
        h = jnp.zeros((B, H), jnp.float32)
        outs = []
        for t in range(T):
            gi = x[:, t, :] @ w_ih.T + b_ih
            gh = h @ w_hh.T + b_hh
            r = jax.nn.sigmoid(gi[:, 0:H] + gh[:, 0:H])
            z = jax.nn.sigmoid(gi[:, H:2 * H] + gh[:, H:2 * H])
            n = jnp.tanh(gi[:, 2 * H:] + r * gh[:, 2 * H:])
            h = (1.0 - z) * n + z * h
            outs.append(h)
        x = jnp.stack(outs, axis=1)
    h_last = jnp.maximum(x[:, -1, :], 0.0)
    return h_last @ params["fc_w"].T + params["fc_b"]


if __name__ == "__main__":
    B, T = 2, 8
    INPUT_SIZE, HIDDEN_SIZE, NUM_LAYERS, NUM_CLASSES = 16, 32, 2, 5

    key = jax.random.PRNGKey(0)
    key, kx = jax.random.split(key)
    x = jax.random.normal(kx, (B, T, INPUT_SIZE), dtype=jnp.float32)
    params = init_params(key, INPUT_SIZE, HIDDEN_SIZE, NUM_LAYERS, NUM_CLASSES)

    fwd = jax.jit(functools.partial(gru_classifier_forward, params=params))
    logits = fwd(x)
    jax.block_until_ready(logits)

    assert logits.shape == (B, NUM_CLASSES)
    assert logits.dtype == jnp.float32

    ref = _reference_forward(x, params)
    err = float(jnp.max(jnp.abs(logits - ref)))
    assert jnp.allclose(logits, ref, atol=1e-3, rtol=1e-3), f"max abs err {err}"

    print("KERNEL_OK")
</pallas_src>

<mosaic_0001>
module attributes {stable_mosaic.version = 11 : i64} {
  func.func @kernel(%arg0: memref<64x128xf32, #tpu.memory_space<vmem>>, %arg1: memref<128x384xf32, #tpu.memory_space<vmem>>, %arg2: memref<128x384xf32, #tpu.memory_space<vmem>>, %arg3: memref<1x384xf32, #tpu.memory_space<vmem>>, %arg4: memref<1x128xf32, #tpu.memory_space<vmem>>, %arg5: memref<128x384xf32, #tpu.memory_space<vmem>>, %arg6: memref<128x384xf32, #tpu.memory_space<vmem>>, %arg7: memref<1x384xf32, #tpu.memory_space<vmem>>, %arg8: memref<1x128xf32, #tpu.memory_space<vmem>>, %arg9: memref<128x128xf32, #tpu.memory_space<vmem>>, %arg10: memref<1x128xf32, #tpu.memory_space<vmem>>, %arg11: memref<8x128xf32, #tpu.memory_space<vmem>>, %arg12: memref<64x384xf32, #tpu.memory_space<vmem>>) attributes {dimension_semantics = [], scalar_prefetch = 0 : i64, scratch_operands = 1 : i64, tpu.core_type = #tpu.core_type<tc>} {
    %c0 = arith.constant 0 : index
    %c0_0 = arith.constant 0 : index
    %0 = vector.load %arg0[%c0, %c0_0] : memref<64x128xf32, #tpu.memory_space<vmem>>, vector<64x128xf32>
    %c0_1 = arith.constant 0 : index
    %c0_2 = arith.constant 0 : index
    %1 = vector.load %arg1[%c0_1, %c0_2] : memref<128x384xf32, #tpu.memory_space<vmem>>, vector<128x384xf32>
    %cst = arith.constant dense<0.000000e+00> : vector<64x384xf32>
    %2 = tpu.matmul %0, %1, %cst {dimension_numbers = #tpu.dot_dimension_numbers<[1], [0], [0], [1], [0, 0, 1, 1], [], []>} : vector<64x128xf32>, vector<128x384xf32>, vector<64x384xf32> -> vector<64x384xf32>
    %c0_3 = arith.constant 0 : index
    %c0_4 = arith.constant 0 : index
    %3 = vector.load %arg3[%c0_3, %c0_4] : memref<1x384xf32, #tpu.memory_space<vmem>>, vector<1x384xf32>
    %4 = vector.broadcast %3 : vector<1x384xf32> to vector<64x384xf32>
    %5 = arith.addf %2, %4 : vector<64x384xf32>
    %c0_5 = arith.constant 0 : index
    %c0_6 = arith.constant 0 : index
    %6 = vector.load %arg12[%c0_5, %c0_6] : memref<64x384xf32, #tpu.memory_space<vmem>>, vector<64x384xf32>
    tpu.vector_store %arg12[%c0_5, %c0_6], %5 {strides = array<i32>} : memref<64x384xf32, #tpu.memory_space<vmem>>, vector<64x384xf32>,
    %c0_7 = arith.constant 0 : index
    %c0_8 = arith.constant 0 : index
    %7 = vector.load %arg4[%c0_7, %c0_8] : memref<1x128xf32, #tpu.memory_space<vmem>>, vector<1x128xf32>
    %8 = vector.shape_cast %7 : vector<1x128xf32> to vector<1x128xf32>
    %9 = vector.broadcast %8 : vector<1x128xf32> to vector<8x128xf32>
    %c0_9 = arith.constant 0 : index
    %c0_10 = arith.constant 0 : index
    %10 = vector.load %arg7[%c0_9, %c0_10] : memref<1x384xf32, #tpu.memory_space<vmem>>, vector<1x384xf32>
    %11 = vector.shape_cast %10 : vector<1x384xf32> to vector<1x384xf32>
    %12 = vector.broadcast %11 : vector<1x384xf32> to vector<8x384xf32>
    %cst_11 = arith.constant 0.000000e+00 : f32
    %13 = vector.broadcast %cst_11 : f32 to vector<8x128xf32>
    %c0_i32 = arith.constant 0 : i32
    %c8_i32 = arith.constant 8 : i32
    %14 = arith.muli %c0_i32, %c8_i32 : i32
    %15 = tpu.assume_multiple %14, 8 : i32
    %16 = arith.index_cast %15 : i32 to index
    %c0_12 = arith.constant 0 : index
    %17 = vector.load %arg12[%16, %c0_12] : memref<64x384xf32, #tpu.memory_space<vmem>>, vector<8x384xf32>
    %c0_13 = arith.constant 0 : index
    %c0_14 = arith.constant 0 : index
    %18 = vector.load %arg2[%c0_13, %c0_14] : memref<128x384xf32, #tpu.memory_space<vmem>>, vector<128x384xf32>
    %cst_15 = arith.constant dense<0.000000e+00> : vector<8x384xf32>
    %19 = tpu.matmul %13, %18, %cst_15 {dimension_numbers = #tpu.dot_dimension_numbers<[1], [0], [0], [1], [0, 0, 1, 1], [], []>} : vector<8x128xf32>, vector<128x384xf32>, vector<8x384xf32> -> vector<8x384xf32>
    %20 = vector.extract_strided_slice %17 {offsets = [0, 0], sizes = [8, 128], strides = [1, 1]} : vector<8x384xf32> to vector<8x128xf32>
    %21 = vector.extract_strided_slice %19 {offsets = [0, 0], sizes = [8, 128], strides = [1, 1]} : vector<8x384xf32> to vector<8x128xf32>
    %22 = arith.addf %20, %21 : vector<8x128xf32>
    %23 = arith.negf %22 : vector<8x128xf32>
    %24 = math.exp %23 : vector<8x128xf32>
    %cst_16 = arith.constant 1.000000e+00 : f32
    %25 = vector.broadcast %cst_16 : f32 to vector<8x128xf32>
    %26 = arith.addf %25, %24 : vector<8x128xf32>
    %27 = arith.divf %25, %26 : vector<8x128xf32>
    %28 = vector.extract_strided_slice %17 {offsets = [0, 128], sizes = [8, 128], strides = [1, 1]} : vector<8x384xf32> to vector<8x128xf32>
    %29 = vector.extract_strided_slice %19 {offsets = [0, 128], sizes = [8, 128], strides = [1, 1]} : vector<8x384xf32> to vector<8x128xf32>
    %30 = arith.addf %28, %29 : vector<8x128xf32>
    %31 = arith.negf %30 : vector<8x128xf32>
    %32 = math.exp %31 : vector<8x128xf32>
    %cst_17 = arith.constant 1.000000e+00 : f32
    %33 = vector.broadcast %cst_17 : f32 to vector<8x128xf32>
    %34 = arith.addf %33, %32 : vector<8x128xf32>
    %35 = arith.divf %33, %34 : vector<8x128xf32>
    %36 = vector.extract_strided_slice %17 {offsets = [0, 256], sizes = [8, 128], strides = [1, 1]} : vector<8x384xf32> to vector<8x128xf32>
    %37 = vector.extract_strided_slice %19 {offsets = [0, 256], sizes = [8, 128], strides = [1, 1]} : vector<8x384xf32> to vector<8x128xf32>
    %38 = arith.addf %37, %9 : vector<8x128xf32>
    %39 = arith.mulf %27, %38 : vector<8x128xf32>
    %40 = arith.addf %36, %39 : vector<8x128xf32>
    %41 = math.tanh %40 : vector<8x128xf32>
    %42 = arith.subf %13, %41 : vector<8x128xf32>
    %43 = arith.mulf %35, %42 : vector<8x128xf32>
    %44 = arith.addf %41, %43 : vector<8x128xf32>
    %c0_18 = arith.constant 0 : index
    %c0_19 = arith.constant 0 : index
    %45 = vector.load %arg5[%c0_18, %c0_19] : memref<128x384xf32, #tpu.memory_space<vmem>>, vector<128x384xf32>
    %cst_20 = arith.constant dense<0.000000e+00> : vector<8x384xf32>
    %46 = tpu.matmul %44, %45, %cst_20 {dimension_numbers = #tpu.dot_dimension_numbers<[1], [0], [0], [1], [0, 0, 1, 1], [], []>} : vector<8x128xf32>, vector<128x384xf32>, vector<8x384xf32> -> vector<8x384xf32>
    %47 = arith.addf %46, %12 : vector<8x384xf32>
    %48 = arith.index_cast %15 : i32 to index
    %c0_21 = arith.constant 0 : index
    %49 = vector.load %arg12[%48, %c0_21] : memref<64x384xf32, #tpu.memory_space<vmem>>, vector<8x384xf32>
    tpu.vector_store %arg12[%48, %c0_21], %47 {strides = array<i32>} : memref<64x384xf32, #tpu.memory_space<vmem>>, vector<8x384xf32>,
    %c1_i32 = arith.constant 1 : i32
    %c8_i32_22 = arith.constant 8 : i32
    %50 = arith.muli %c1_i32, %c8_i32_22 : i32
    %51 = tpu.assume_multiple %50, 8 : i32
    %52 = arith.index_cast %51 : i32 to index
    %c0_23 = arith.constant 0 : index
    %53 = vector.load %arg12[%52, %c0_23] : memref<64x384xf32, #tpu.memory_space<vmem>>, vector<8x384xf32>
    %c0_24 = arith.constant 0 : index
    %c0_25 = arith.constant 0 : index
    %54 = vector.load %arg2[%c0_24, %c0_25] : memref<128x384xf32, #tpu.memory_space<vmem>>, vector<128x384xf32>
    %cst_26 = arith.constant dense<0.000000e+00> : vector<8x384xf32>
    %55 = tpu.matmul %44, %54, %cst_26 {dimension_numbers = #tpu.dot_dimension_numbers<[1], [0], [0], [1], [0, 0, 1, 1], [], []>} : vector<8x128xf32>, vector<128x384xf32>, vector<8x384xf32> -> vector<8x384xf32>
    %56 = vector.extract_strided_slice %53 {offsets = [0, 0], sizes = [8, 128], strides = [1, 1]} : vector<8x384xf32> to vector<8x128xf32>
    %57 = vector.extract_strided_slice %55 {offsets = [0, 0], sizes = [8, 128], strides = [1, 1]} : vector<8x384xf32> to vector<8x128xf32>
    %58 = arith.addf %56, %57 : vector<8x128xf32>
    %59 = arith.negf %58 : vector<8x128xf32>
    %60 = math.exp %59 : vector<8x128xf32>
    %cst_27 = arith.constant 1.000000e+00 : f32
    %61 = vector.broadcast %cst_27 : f32 to vector<8x128xf32>
    %62 = arith.addf %61, %60 : vector<8x128xf32>
    %63 = arith.divf %61, %62 : vector<8x128xf32>
    %64 = vector.extract_strided_slice %53 {offsets = [0, 128], sizes = [8, 128], strides = [1, 1]} : vector<8x384xf32> to vector<8x128xf32>
    %65 = vector.extract_strided_slice %55 {offsets = [0, 128], sizes = [8, 128], strides = [1, 1]} : vector<8x384xf32> to vector<8x128xf32>
    %66 = arith.addf %64, %65 : vector<8x128xf32>
    %67 = arith.negf %66 : vector<8x128xf32>
    %68 = math.exp %67 : vector<8x128xf32>
    %cst_28 = arith.constant 1.000000e+00 : f32
    %69 = vector.broadcast %cst_28 : f32 to vector<8x128xf32>
    %70 = arith.addf %69, %68 : vector<8x128xf32>
    %71 = arith.divf %69, %70 : vector<8x128xf32>
    %72 = vector.extract_strided_slice %53 {offsets = [0, 256], sizes = [8, 128], strides = [1, 1]} : vector<8x384xf32> to vector<8x128xf32>
    %73 = vector.extract_strided_slice %55 {offsets = [0, 256], sizes = [8, 128], strides = [1, 1]} : vector<8x384xf32> to vector<8x128xf32>
    %74 = arith.addf %73, %9 : vector<8x128xf32>
    %75 = arith.mulf %63, %74 : vector<8x128xf32>
    %76 = arith.addf %72, %75 : vector<8x128xf32>
    %77 = math.tanh %76 : vector<8x128xf32>
    %78 = arith.subf %44, %77 : vector<8x128xf32>
    %79 = arith.mulf %71, %78 : vector<8x128xf32>
    %80 = arith.addf %77, %79 : vector<8x128xf32>
    %c0_29 = arith.constant 0 : index
    %c0_30 = arith.constant 0 : index
    %81 = vector.load %arg5[%c0_29, %c0_30] : memref<128x384xf32, #tpu.memory_space<vmem>>, vector<128x384xf32>
    %cst_31 = arith.constant dense<0.000000e+00> : vector<8x384xf32>
    %82 = tpu.matmul %80, %81, %cst_31 {dimension_numbers = #tpu.dot_dimension_numbers<[1], [0], [0], [1], [0, 0, 1, 1], [], []>} : vector<8x128xf32>, vector<128x384xf32>, vector<8x384xf32> -> vector<8x384xf32>
    %83 = arith.addf %82, %12 : vector<8x384xf32>
    %84 = arith.index_cast %51 : i32 to index
    %c0_32 = arith.constant 0 : index
    %85 = vector.load %arg12[%84, %c0_32] : memref<64x384xf32, #tpu.memory_space<vmem>>, vector<8x384xf32>
    tpu.vector_store %arg12[%84, %c0_32], %83 {strides = array<i32>} : memref<64x384xf32, #tpu.memory_space<vmem>>, vector<8x384xf32>,
    %c2_i32 = arith.constant 2 : i32
    %c8_i32_33 = arith.constant 8 : i32
    %86 = arith.muli %c2_i32, %c8_i32_33 : i32
    %87 = tpu.assume_multiple %86, 8 : i32
    %88 = arith.index_cast %87 : i32 to index
    %c0_34 = arith.constant 0 : index
    %89 = vector.load %arg12[%88, %c0_34] : memref<64x384xf32, #tpu.memory_space<vmem>>, vector<8x384xf32>
    %c0_35 = arith.constant 0 : index
    %c0_36 = arith.constant 0 : index
    %90 = vector.load %arg2[%c0_35, %c0_36] : memref<128x384xf32, #tpu.memory_space<vmem>>, vector<128x384xf32>
    %cst_37 = arith.constant dense<0.000000e+00> : vector<8x384xf32>
    %91 = tpu.matmul %80, %90, %cst_37 {dimension_numbers = #tpu.dot_dimension_numbers<[1], [0], [0], [1], [0, 0, 1, 1], [], []>} : vector<8x128xf32>, vector<128x384xf32>, vector<8x384xf32> -> vector<8x384xf32>
    %92 = vector.extract_strided_slice %89 {offsets = [0, 0], sizes = [8, 128], strides = [1, 1]} : vector<8x384xf32> to vector<8x128xf32>
    %93 = vector.extract_strided_slice %91 {offsets = [0, 0], sizes = [8, 128], strides = [1, 1]} : vector<8x384xf32> to vector<8x128xf32>
    %94 = arith.addf %92, %93 : vector<8x128xf32>
    %95 = arith.negf %94 : vector<8x128xf32>
    %96 = math.exp %95 : vector<8x128xf32>
    %cst_38 = arith.constant 1.000000e+00 : f32
    %97 = vector.broadcast %cst_38 : f32 to vector<8x128xf32>
    %98 = arith.addf %97, %96 : vector<8x128xf32>
    %99 = arith.divf %97, %98 : vector<8x128xf32>
    %100 = vector.extract_strided_slice %89 {offsets = [0, 128], sizes = [8, 128], strides = [1, 1]} : vector<8x384xf32> to vector<8x128xf32>
    %101 = vector.extract_strided_slice %91 {offsets = [0, 128], sizes = [8, 128], strides = [1, 1]} : vector<8x384xf32> to vector<8x128xf32>
    %102 = arith.addf %100, %101 : vector<8x128xf32>
    %103 = arith.negf %102 : vector<8x128xf32>
    %104 = math.exp %103 : vector<8x128xf32>
    %cst_39 = arith.constant 1.000000e+00 : f32
    %105 = vector.broadcast %cst_39 : f32 to vector<8x128xf32>
    %106 = arith.addf %105, %104 : vector<8x128xf32>
    %107 = arith.divf %105, %106 : vector<8x128xf32>
    %108 = vector.extract_strided_slice %89 {offsets = [0, 256], sizes = [8, 128], strides = [1, 1]} : vector<8x384xf32> to vector<8x128xf32>
    %109 = vector.extract_strided_slice %91 {offsets = [0, 256], sizes = [8, 128], strides = [1, 1]} : vector<8x384xf32> to vector<8x128xf32>
    %110 = arith.addf %109, %9 : vector<8x128xf32>
    %111 = arith.mulf %99, %110 : vector<8x128xf32>
    %112 = arith.addf %108, %111 : vector<8x128xf32>
    %113 = math.tanh %112 : vector<8x128xf32>
    %114 = arith.subf %80, %113 : vector<8x128xf32>
    %115 = arith.mulf %107, %114 : vector<8x128xf32>
    %116 = arith.addf %113, %115 : vector<8x128xf32>
    %c0_40 = arith.constant 0 : index
    %c0_41 = arith.constant 0 : index
    %117 = vector.load %arg5[%c0_40, %c0_41] : memref<128x384xf32, #tpu.memory_space<vmem>>, vector<128x384xf32>
    %cst_42 = arith.constant dense<0.000000e+00> : vector<8x384xf32>
    %118 = tpu.matmul %116, %117, %cst_42 {dimension_numbers = #tpu.dot_dimension_numbers<[1], [0], [0], [1], [0, 0, 1, 1], [], []>} : vector<8x128xf32>, vector<128x384xf32>, vector<8x384xf32> -> vector<8x384xf32>
    %119 = arith.addf %118, %12 : vector<8x384xf32>
    %120 = arith.index_cast %87 : i32 to index
    %c0_43 = arith.constant 0 : index
    %121 = vector.load %arg12[%120, %c0_43] : memref<64x384xf32, #tpu.memory_space<vmem>>, vector<8x384xf32>
    tpu.vector_store %arg12[%120, %c0_43], %119 {strides = array<i32>} : memref<64x384xf32, #tpu.memory_space<vmem>>, vector<8x384xf32>,
    %c3_i32 = arith.constant 3 : i32
    %c8_i32_44 = arith.constant 8 : i32
    %122 = arith.muli %c3_i32, %c8_i32_44 : i32
    %123 = tpu.assume_multiple %122, 8 : i32
    %124 = arith.index_cast %123 : i32 to index
    %c0_45 = arith.constant 0 : index
    %125 = vector.load %arg12[%124, %c0_45] : memref<64x384xf32, #tpu.memory_space<vmem>>, vector<8x384xf32>
    %c0_46 = arith.constant 0 : index
    %c0_47 = arith.constant 0 : index
    %126 = vector.load %arg2[%c0_46, %c0_47] : memref<128x384xf32, #tpu.memory_space<vmem>>, vector<128x384xf32>
    %cst_48 = arith.constant dense<0.000000e+00> : vector<8x384xf32>
    %127 = tpu.matmul %116, %126, %cst_48 {dimension_numbers = #tpu.dot_dimension_numbers<[1], [0], [0], [1], [0, 0, 1, 1], [], []>} : vector<8x128xf32>, vector<128x384xf32>, vector<8x384xf32> -> vector<8x384xf32>
    %128 = vector.extract_strided_slice %125 {offsets = [0, 0], sizes = [8, 128], strides = [1, 1]} : vector<8x384xf32> to vector<8x128xf32>
    %129 = vector.extract_strided_slice %127 {offsets = [0, 0], sizes = [8, 128], strides = [1, 1]} : vector<8x384xf32> to vector<8x128xf32>
    %130 = arith.addf %128, %129 : vector<8x128xf32>
    %131 = arith.negf %130 : vector<8x128xf32>
    %132 = math.exp %131 : vector<8x128xf32>
    %cst_49 = arith.constant 1.000000e+00 : f32
    %133 = vector.broadcast %cst_49 : f32 to vector<8x128xf32>
    %134 = arith.addf %133, %132 : vector<8x128xf32>
    %135 = arith.divf %133, %134 : vector<8x128xf32>
    %136 = vector.extract_strided_slice %125 {offsets = [0, 128], sizes = [8, 128], strides = [1, 1]} : vector<8x384xf32> to vector<8x128xf32>
    %137 = vector.extract_strided_slice %127 {offsets = [0, 128], sizes = [8, 128], strides = [1, 1]} : vector<8x384xf32> to vector<8x128xf32>
    %138 = arith.addf %136, %137 : vector<8x128xf32>
    %139 = arith.negf %138 : vector<8x128xf32>
    %140 = math.exp %139 : vector<8x128xf32>
    %cst_50 = arith.constant 1.000000e+00 : f32
    %141 = vector.broadcast %cst_50 : f32 to vector<8x128xf32>
    %142 = arith.addf %141, %140 : vector<8x128xf32>
    %143 = arith.divf %141, %142 : vector<8x128xf32>
    %144 = vector.extract_strided_slice %125 {offsets = [0, 256], sizes = [8, 128], strides = [1, 1]} : vector<8x384xf32> to vector<8x128xf32>
    %145 = vector.extract_strided_slice %127 {offsets = [0, 256], sizes = [8, 128], strides = [1, 1]} : vector<8x384xf32> to vector<8x128xf32>
    %146 = arith.addf %145, %9 : vector<8x128xf32>
    %147 = arith.mulf %135, %146 : vector<8x128xf32>
    %148 = arith.addf %144, %147 : vector<8x128xf32>
    %149 = math.tanh %148 : vector<8x128xf32>
    %150 = arith.subf %116, %149 : vector<8x128xf32>
    %151 = arith.mulf %143, %150 : vector<8x128xf32>
    %152 = arith.addf %149, %151 : vector<8x128xf32>
    %c0_51 = arith.constant 0 : index
    %c0_52 = arith.constant 0 : index
    %153 = vector.load %arg5[%c0_51, %c0_52] : memref<128x384xf32, #tpu.memory_space<vmem>>, vector<128x384xf32>
    %cst_53 = arith.constant dense<0.000000e+00> : vector<8x384xf32>
    %154 = tpu.matmul %152, %153, %cst_53 {dimension_numbers = #tpu.dot_dimension_numbers<[1], [0], [0], [1], [0, 0, 1, 1], [], []>} : vector<8x128xf32>, vector<128x384xf32>, vector<8x384xf32> -> vector<8x384xf32>
    %155 = arith.addf %154, %12 : vector<8x384xf32>
    %156 = arith.index_cast %123 : i32 to index
    %c0_54 = arith.constant 0 : index
    %157 = vector.load %arg12[%156, %c0_54] : memref<64x384xf32, #tpu.memory_space<vmem>>, vector<8x384xf32>
    tpu.vector_store %arg12[%156, %c0_54], %155 {strides = array<i32>} : memref<64x384xf32, #tpu.memory_space<vmem>>, vector<8x384xf32>,
    %c4_i32 = arith.constant 4 : i32
    %c8_i32_55 = arith.constant 8 : i32
    %158 = arith.muli %c4_i32, %c8_i32_55 : i32
    %159 = tpu.assume_multiple %158, 8 : i32
    %160 = arith.index_cast %159 : i32 to index
    %c0_56 = arith.constant 0 : index
    %161 = vector.load %arg12[%160, %c0_56] : memref<64x384xf32, #tpu.memory_space<vmem>>, vector<8x384xf32>
    %c0_57 = arith.constant 0 : index
    %c0_58 = arith.constant 0 : index
    %162 = vector.load %arg2[%c0_57, %c0_58] : memref<128x384xf32, #tpu.memory_space<vmem>>, vector<128x384xf32>
    %cst_59 = arith.constant dense<0.000000e+00> : vector<8x384xf32>
    %163 = tpu.matmul %152, %162, %cst_59 {dimension_numbers = #tpu.dot_dimension_numbers<[1], [0], [0], [1], [0, 0, 1, 1], [], []>} : vector<8x128xf32>, vector<128x384xf32>, vector<8x384xf32> -> vector<8x384xf32>
    %164 = vector.extract_strided_slice %161 {offsets = [0, 0], sizes = [8, 128], strides = [1, 1]} : vector<8x384xf32> to vector<8x128xf32>
    %165 = vector.extract_strided_slice %163 {offsets = [0, 0], sizes = [8, 128], strides = [1, 1]} : vector<8x384xf32> to vector<8x128xf32>
    %166 = arith.addf %164, %165 : vector<8x128xf32>
    %167 = arith.negf %166 : vector<8x128xf32>
    %168 = math.exp %167 : vector<8x128xf32>
    %cst_60 = arith.constant 1.000000e+00 : f32
    %169 = vector.broadcast %cst_60 : f32 to vector<8x128xf32>
    %170 = arith.addf %169, %168 : vector<8x128xf32>
    %171 = arith.divf %169, %170 : vector<8x128xf32>
    %172 = vector.extract_strided_slice %161 {offsets = [0, 128], sizes = [8, 128], strides = [1, 1]} : vector<8x384xf32> to vector<8x128xf32>
    %173 = vector.extract_strided_slice %163 {offsets = [0, 128], sizes = [8, 128], strides = [1, 1]} : vector<8x384xf32> to vector<8x128xf32>
    %174 = arith.addf %172, %173 : vector<8x128xf32>
    %175 = arith.negf %174 : vector<8x128xf32>
    %176 = math.exp %175 : vector<8x128xf32>
    %cst_61 = arith.constant 1.000000e+00 : f32
    %177 = vector.broadcast %cst_61 : f32 to vector<8x128xf32>
    %178 = arith.addf %177, %176 : vector<8x128xf32>
    %179 = arith.divf %177, %178 : vector<8x128xf32>
    %180 = vector.extract_strided_slice %161 {offsets = [0, 256], sizes = [8, 128], strides = [1, 1]} : vector<8x384xf32> to vector<8x128xf32>
    %181 = vector.extract_strided_slice %163 {offsets = [0, 256], sizes = [8, 128], strides = [1, 1]} : vector<8x384xf32> to vector<8x128xf32>
    %182 = arith.addf %181, %9 : vector<8x128xf32>
    %183 = arith.mulf %171, %182 : vector<8x128xf32>
    %184 = arith.addf %180, %183 : vector<8x128xf32>
    %185 = math.tanh %184 : vector<8x128xf32>
    %186 = arith.subf %152, %185 : vector<8x128xf32>
    %187 = arith.mulf %179, %186 : vector<8x128xf32>
    %188 = arith.addf %185, %187 : vector<8x128xf32>
    %c0_62 = arith.constant 0 : index
    %c0_63 = arith.constant 0 : index
    %189 = vector.load %arg5[%c0_62, %c0_63] : memref<128x384xf32, #tpu.memory_space<vmem>>, vector<128x384xf32>
    %cst_64 = arith.constant dense<0.000000e+00> : vector<8x384xf32>
    %190 = tpu.matmul %188, %189, %cst_64 {dimension_numbers = #tpu.dot_dimension_numbers<[1], [0], [0], [1], [0, 0, 1, 1], [], []>} : vector<8x128xf32>, vector<128x384xf32>, vector<8x384xf32> -> vector<8x384xf32>
    %191 = arith.addf %190, %12 : vector<8x384xf32>
    %192 = arith.index_cast %159 : i32 to index
    %c0_65 = arith.constant 0 : index
    %193 = vector.load %arg12[%192, %c0_65] : memref<64x384xf32, #tpu.memory_space<vmem>>, vector<8x384xf32>
    tpu.vector_store %arg12[%192, %c0_65], %191 {strides = array<i32>} : memref<64x384xf32, #tpu.memory_space<vmem>>, vector<8x384xf32>,
    %c5_i32 = arith.constant 5 : i32
    %c8_i32_66 = arith.constant 8 : i32
    %194 = arith.muli %c5_i32, %c8_i32_66 : i32
    %195 = tpu.assume_multiple %194, 8 : i32
    %196 = arith.index_cast %195 : i32 to index
    %c0_67 = arith.constant 0 : index
    %197 = vector.load %arg12[%196, %c0_67] : memref<64x384xf32, #tpu.memory_space<vmem>>, vector<8x384xf32>
    %c0_68 = arith.constant 0 : index
    %c0_69 = arith.constant 0 : index
    %198 = vector.load %arg2[%c0_68, %c0_69] : memref<128x384xf32, #tpu.memory_space<vmem>>, vector<128x384xf32>
    %cst_70 = arith.constant dense<0.000000e+00> : vector<8x384xf32>
    %199 = tpu.matmul %188, %198, %cst_70 {dimension_numbers = #tpu.dot_dimension_numbers<[1], [0], [0], [1], [0, 0, 1, 1], [], []>} : vector<8x128xf32>, vector<128x384xf32>, vector<8x384xf32> -> vector<8x384xf32>
    %200 = vector.extract_strided_slice %197 {offsets = [0, 0], sizes = [8, 128], strides = [1, 1]} : vector<8x384xf32> to vector<8x128xf32>
    %201 = vector.extract_strided_slice %199 {offsets = [0, 0], sizes = [8, 128], strides = [1, 1]} : vector<8x384xf32> to vector<8x128xf32>
    %202 = arith.addf %200, %201 : vector<8x128xf32>
    %203 = arith.negf %202 : vector<8x128xf32>
    %204 = math.exp %203 : vector<8x128xf32>
    %cst_71 = arith.constant 1.000000e+00 : f32
    %205 = vector.broadcast %cst_71 : f32 to vector<8x128xf32>
    %206 = arith.addf %205, %204 : vector<8x128xf32>
    %207 = arith.divf %205, %206 : vector<8x128xf32>
    %208 = vector.extract_strided_slice %197 {offsets = [0, 128], sizes = [8, 128], strides = [1, 1]} : vector<8x384xf32> to vector<8x128xf32>
    %209 = vector.extract_strided_slice %199 {offsets = [0, 128], sizes = [8, 128], strides = [1, 1]} : vector<8x384xf32> to vector<8x128xf32>
    %210 = arith.addf %208, %209 : vector<8x128xf32>
    %211 = arith.negf %210 : vector<8x128xf32>
    %212 = math.exp %211 : vector<8x128xf32>
    %cst_72 = arith.constant 1.000000e+00 : f32
    %213 = vector.broadcast %cst_72 : f32 to vector<8x128xf32>
    %214 = arith.addf %213, %212 : vector<8x128xf32>
    %215 = arith.divf %213, %214 : vector<8x128xf32>
    %216 = vector.extract_strided_slice %197 {offsets = [0, 256], sizes = [8, 128], strides = [1, 1]} : vector<8x384xf32> to vector<8x128xf32>
    %217 = vector.extract_strided_slice %199 {offsets = [0, 256], sizes = [8, 128], strides = [1, 1]} : vector<8x384xf32> to vector<8x128xf32>
    %218 = arith.addf %217, %9 : vector<8x128xf32>
    %219 = arith.mulf %207, %218 : vector<8x128xf32>
    %220 = arith.addf %216, %219 : vector<8x128xf32>
    %221 = math.tanh %220 : vector<8x128xf32>
    %222 = arith.subf %188, %221 : vector<8x128xf32>
    %223 = arith.mulf %215, %222 : vector<8x128xf32>
    %224 = arith.addf %221, %223 : vector<8x128xf32>
    %c0_73 = arith.constant 0 : index
    %c0_74 = arith.constant 0 : index
    %225 = vector.load %arg5[%c0_73, %c0_74] : memref<128x384xf32, #tpu.memory_space<vmem>>, vector<128x384xf32>
    %cst_75 = arith.constant dense<0.000000e+00> : vector<8x384xf32>
    %226 = tpu.matmul %224, %225, %cst_75 {dimension_numbers = #tpu.dot_dimension_numbers<[1], [0], [0], [1], [0, 0, 1, 1], [], []>} : vector<8x128xf32>, vector<128x384xf32>, vector<8x384xf32> -> vector<8x384xf32>
    %227 = arith.addf %226, %12 : vector<8x384xf32>
    %228 = arith.index_cast %195 : i32 to index
    %c0_76 = arith.constant 0 : index
    %229 = vector.load %arg12[%228, %c0_76] : memref<64x384xf32, #tpu.memory_space<vmem>>, vector<8x384xf32>
    tpu.vector_store %arg12[%228, %c0_76], %227 {strides = array<i32>} : memref<64x384xf32, #tpu.memory_space<vmem>>, vector<8x384xf32>,
    %c6_i32 = arith.constant 6 : i32
    %c8_i32_77 = arith.constant 8 : i32
    %230 = arith.muli %c6_i32, %c8_i32_77 : i32
    %231 = tpu.assume_multiple %230, 8 : i32
    %232 = arith.index_cast %231 : i32 to index
    %c0_78 = arith.constant 0 : index
    %233 = vector.load %arg12[%232, %c0_78] : memref<64x384xf32, #tpu.memory_space<vmem>>, vector<8x384xf32>
    %c0_79 = arith.constant 0 : index
    %c0_80 = arith.constant 0 : index
    %234 = vector.load %arg2[%c0_79, %c0_80] : memref<128x384xf32, #tpu.memory_space<vmem>>, vector<128x384xf32>
    %cst_81 = arith.constant dense<0.000000e+00> : vector<8x384xf32>
    %235 = tpu.matmul %224, %234, %cst_81 {dimension_numbers = #tpu.dot_dimension_numbers<[1], [0], [0], [1], [0, 0, 1, 1], [], []>} : vector<8x128xf32>, vector<128x384xf32>, vector<8x384xf32> -> vector<8x384xf32>
    %236 = vector.extract_strided_slice %233 {offsets = [0, 0], sizes = [8, 128], strides = [1, 1]} : vector<8x384xf32> to vector<8x128xf32>
    %237 = vector.extract_strided_slice %235 {offsets = [0, 0], sizes = [8, 128], strides = [1, 1]} : vector<8x384xf32> to vector<8x128xf32>
    %238 = arith.addf %236, %237 : vector<8x128xf32>
    %239 = arith.negf %238 : vector<8x128xf32>
    %240 = math.exp %239 : vector<8x128xf32>
    %cst_82 = arith.constant 1.000000e+00 : f32
    %241 = vector.broadcast %cst_82 : f32 to vector<8x128xf32>
    %242 = arith.addf %241, %240 : vector<8x128xf32>
    %243 = arith.divf %241, %242 : vector<8x128xf32>
    %244 = vector.extract_strided_slice %233 {offsets = [0, 128], sizes = [8, 128], strides = [1, 1]} : vector<8x384xf32> to vector<8x128xf32>
    %245 = vector.extract_strided_slice %235 {offsets = [0, 128], sizes = [8, 128], strides = [1, 1]} : vector<8x384xf32> to vector<8x128xf32>
    %246 = arith.addf %244, %245 : vector<8x128xf32>
    %247 = arith.negf %246 : vector<8x128xf32>
    %248 = math.exp %247 : vector<8x128xf32>
    %cst_83 = arith.constant 1.000000e+00 : f32
    %249 = vector.broadcast %cst_83 : f32 to vector<8x128xf32>
    %250 = arith.addf %249, %248 : vector<8x128xf32>
    %251 = arith.divf %249, %250 : vector<8x128xf32>
    %252 = vector.extract_strided_slice %233 {offsets = [0, 256], sizes = [8, 128], strides = [1, 1]} : vector<8x384xf32> to vector<8x128xf32>
    %253 = vector.extract_strided_slice %235 {offsets = [0, 256], sizes = [8, 128], strides = [1, 1]} : vector<8x384xf32> to vector<8x128xf32>
    %254 = arith.addf %253, %9 : vector<8x128xf32>
    %255 = arith.mulf %243, %254 : vector<8x128xf32>
    %256 = arith.addf %252, %255 : vector<8x128xf32>
    %257 = math.tanh %256 : vector<8x128xf32>
    %258 = arith.subf %224, %257 : vector<8x128xf32>
    %259 = arith.mulf %251, %258 : vector<8x128xf32>
    %260 = arith.addf %257, %259 : vector<8x128xf32>
    %c0_84 = arith.constant 0 : index
    %c0_85 = arith.constant 0 : index
    %261 = vector.load %arg5[%c0_84, %c0_85] : memref<128x384xf32, #tpu.memory_space<vmem>>, vector<128x384xf32>
    %cst_86 = arith.constant dense<0.000000e+00> : vector<8x384xf32>
    %262 = tpu.matmul %260, %261, %cst_86 {dimension_numbers = #tpu.dot_dimension_numbers<[1], [0], [0], [1], [0, 0, 1, 1], [], []>} : vector<8x128xf32>, vector<128x384xf32>, vector<8x384xf32> -> vector<8x384xf32>
    %263 = arith.addf %262, %12 : vector<8x384xf32>
    %264 = arith.index_cast %231 : i32 to index
    %c0_87 = arith.constant 0 : index
    %265 = vector.load %arg12[%264, %c0_87] : memref<64x384xf32, #tpu.memory_space<vmem>>, vector<8x384xf32>
    tpu.vector_store %arg12[%264, %c0_87], %263 {strides = array<i32>} : memref<64x384xf32, #tpu.memory_space<vmem>>, vector<8x384xf32>,
    %c7_i32 = arith.constant 7 : i32
    %c8_i32_88 = arith.constant 8 : i32
    %266 = arith.muli %c7_i32, %c8_i32_88 : i32
    %267 = tpu.assume_multiple %266, 8 : i32
    %268 = arith.index_cast %267 : i32 to index
    %c0_89 = arith.constant 0 : index
    %269 = vector.load %arg12[%268, %c0_89] : memref<64x384xf32, #tpu.memory_space<vmem>>, vector<8x384xf32>
    %c0_90 = arith.constant 0 : index
    %c0_91 = arith.constant 0 : index
    %270 = vector.load %arg2[%c0_90, %c0_91] : memref<128x384xf32, #tpu.memory_space<vmem>>, vector<128x384xf32>
    %cst_92 = arith.constant dense<0.000000e+00> : vector<8x384xf32>
    %271 = tpu.matmul %260, %270, %cst_92 {dimension_numbers = #tpu.dot_dimension_numbers<[1], [0], [0], [1], [0, 0, 1, 1], [], []>} : vector<8x128xf32>, vector<128x384xf32>, vector<8x384xf32> -> vector<8x384xf32>
    %272 = vector.extract_strided_slice %269 {offsets = [0, 0], sizes = [8, 128], strides = [1, 1]} : vector<8x384xf32> to vector<8x128xf32>
    %273 = vector.extract_strided_slice %271 {offsets = [0, 0], sizes = [8, 128], strides = [1, 1]} : vector<8x384xf32> to vector<8x128xf32>
    %274 = arith.addf %272, %273 : vector<8x128xf32>
    %275 = arith.negf %274 : vector<8x128xf32>
    %276 = math.exp %275 : vector<8x128xf32>
    %cst_93 = arith.constant 1.000000e+00 : f32
    %277 = vector.broadcast %cst_93 : f32 to vector<8x128xf32>
    %278 = arith.addf %277, %276 : vector<8x128xf32>
    %279 = arith.divf %277, %278 : vector<8x128xf32>
    %280 = vector.extract_strided_slice %269 {offsets = [0, 128], sizes = [8, 128], strides = [1, 1]} : vector<8x384xf32> to vector<8x128xf32>
    %281 = vector.extract_strided_slice %271 {offsets = [0, 128], sizes = [8, 128], strides = [1, 1]} : vector<8x384xf32> to vector<8x128xf32>
    %282 = arith.addf %280, %281 : vector<8x128xf32>
    %283 = arith.negf %282 : vector<8x128xf32>
    %284 = math.exp %283 : vector<8x128xf32>
    %cst_94 = arith.constant 1.000000e+00 : f32
    %285 = vector.broadcast %cst_94 : f32 to vector<8x128xf32>
    %286 = arith.addf %285, %284 : vector<8x128xf32>
    %287 = arith.divf %285, %286 : vector<8x128xf32>
    %288 = vector.extract_strided_slice %269 {offsets = [0, 256], sizes = [8, 128], strides = [1, 1]} : vector<8x384xf32> to vector<8x128xf32>
    %289 = vector.extract_strided_slice %271 {offsets = [0, 256], sizes = [8, 128], strides = [1, 1]} : vector<8x384xf32> to vector<8x128xf32>
    %290 = arith.addf %289, %9 : vector<8x128xf32>
    %291 = arith.mulf %279, %290 : vector<8x128xf32>
    %292 = arith.addf %288, %291 : vector<8x128xf32>
    %293 = math.tanh %292 : vector<8x128xf32>
    %294 = arith.subf %260, %293 : vector<8x128xf32>
    %295 = arith.mulf %287, %294 : vector<8x128xf32>
    %296 = arith.addf %293, %295 : vector<8x128xf32>
    %c0_95 = arith.constant 0 : index
    %c0_96 = arith.constant 0 : index
    %297 = vector.load %arg5[%c0_95, %c0_96] : memref<128x384xf32, #tpu.memory_space<vmem>>, vector<128x384xf32>
    %cst_97 = arith.constant dense<0.000000e+00> : vector<8x384xf32>
    %298 = tpu.matmul %296, %297, %cst_97 {dimension_numbers = #tpu.dot_dimension_numbers<[1], [0], [0], [1], [0, 0, 1, 1], [], []>} : vector<8x128xf32>, vector<128x384xf32>, vector<8x384xf32> -> vector<8x384xf32>
    %299 = arith.addf %298, %12 : vector<8x384xf32>
    %300 = arith.index_cast %267 : i32 to index
    %c0_98 = arith.constant 0 : index
    %301 = vector.load %arg12[%300, %c0_98] : memref<64x384xf32, #tpu.memory_space<vmem>>, vector<8x384xf32>
    tpu.vector_store %arg12[%300, %c0_98], %299 {strides = array<i32>} : memref<64x384xf32, #tpu.memory_space<vmem>>, vector<8x384xf32>,
    %c8_i32_99 = arith.constant 8 : i32
    %c0_100 = arith.constant 0 : index
    %c0_101 = arith.constant 0 : index
    %302 = vector.load %arg8[%c0_100, %c0_101] : memref<1x128xf32, #tpu.memory_space<vmem>>, vector<1x128xf32>
    %303 = vector.shape_cast %302 : vector<1x128xf32> to vector<1x128xf32>
    %304 = vector.broadcast %303 : vector<1x128xf32> to vector<8x128xf32>
    %cst_102 = arith.constant 0.000000e+00 : f32
    %305 = vector.broadcast %cst_102 : f32 to vector<8x128xf32>
    %c0_i32_103 = arith.constant 0 : i32
    %c8_i32_104 = arith.constant 8 : i32
    %306 = arith.muli %c0_i32_103, %c8_i32_104 : i32
    %307 = tpu.assume_multiple %306, 8 : i32
    %308 = arith.index_cast %307 : i32 to index
    %c0_105 = arith.constant 0 : index
    %309 = vector.load %arg12[%308, %c0_105] : memref<64x384xf32, #tpu.memory_space<vmem>>, vector<8x384xf32>
    %c0_106 = arith.constant 0 : index
    %c0_107 = arith.constant 0 : index
    %310 = vector.load %arg6[%c0_106, %c0_107] : memref<128x384xf32, #tpu.memory_space<vmem>>, vector<128x384xf32>
    %cst_108 = arith.constant dense<0.000000e+00> : vector<8x384xf32>
    %311 = tpu.matmul %305, %310, %cst_108 {dimension_numbers = #tpu.dot_dimension_numbers<[1], [0], [0], [1], [0, 0, 1, 1], [], []>} : vector<8x128xf32>, vector<128x384xf32>, vector<8x384xf32> -> vector<8x384xf32>
    %312 = vector.extract_strided_slice %309 {offsets = [0, 0], sizes = [8, 128], strides = [1, 1]} : vector<8x384xf32> to vector<8x128xf32>
    %313 = vector.extract_strided_slice %311 {offsets = [0, 0], sizes = [8, 128], strides = [1, 1]} : vector<8x384xf32> to vector<8x128xf32>
    %314 = arith.addf %312, %313 : vector<8x128xf32>
    %315 = arith.negf %314 : vector<8x128xf32>
    %316 = math.exp %315 : vector<8x128xf32>
    %cst_109 = arith.constant 1.000000e+00 : f32
    %317 = vector.broadcast %cst_109 : f32 to vector<8x128xf32>
    %318 = arith.addf %317, %316 : vector<8x128xf32>
    %319 = arith.divf %317, %318 : vector<8x128xf32>
    %320 = vector.extract_strided_slice %309 {offsets = [0, 128], sizes = [8, 128], strides = [1, 1]} : vector<8x384xf32> to vector<8x128xf32>
    %321 = vector.extract_strided_slice %311 {offsets = [0, 128], sizes = [8, 128], strides = [1, 1]} : vector<8x384xf32> to vector<8x128xf32>
    %322 = arith.addf %320, %321 : vector<8x128xf32>
    %323 = arith.negf %322 : vector<8x128xf32>
    %324 = math.exp %323 : vector<8x128xf32>
    %cst_110 = arith.constant 1.000000e+00 : f32
    %325 = vector.broadcast %cst_110 : f32 to vector<8x128xf32>
    %326 = arith.addf %325, %324 : vector<8x128xf32>
    %327 = arith.divf %325, %326 : vector<8x128xf32>
    %328 = vector.extract_strided_slice %309 {offsets = [0, 256], sizes = [8, 128], strides = [1, 1]} : vector<8x384xf32> to vector<8x128xf32>
    %329 = vector.extract_strided_slice %311 {offsets = [0, 256], sizes = [8, 128], strides = [1, 1]} : vector<8x384xf32> to vector<8x128xf32>
    %330 = arith.addf %329, %304 : vector<8x128xf32>
    %331 = arith.mulf %319, %330 : vector<8x128xf32>
    %332 = arith.addf %328, %331 : vector<8x128xf32>
    %333 = math.tanh %332 : vector<8x128xf32>
    %334 = arith.subf %305, %333 : vector<8x128xf32>
    %335 = arith.mulf %327, %334 : vector<8x128xf32>
    %336 = arith.addf %333, %335 : vector<8x128xf32>
    %c1_i32_111 = arith.constant 1 : i32
    %c8_i32_112 = arith.constant 8 : i32
    %337 = arith.muli %c1_i32_111, %c8_i32_112 : i32
    %338 = tpu.assume_multiple %337, 8 : i32
    %339 = arith.index_cast %338 : i32 to index
    %c0_113 = arith.constant 0 : index
    %340 = vector.load %arg12[%339, %c0_113] : memref<64x384xf32, #tpu.memory_space<vmem>>, vector<8x384xf32>
    %c0_114 = arith.constant 0 : index
    %c0_115 = arith.constant 0 : index
    %341 = vector.load %arg6[%c0_114, %c0_115] : memref<128x384xf32, #tpu.memory_space<vmem>>, vector<128x384xf32>
    %cst_116 = arith.constant dense<0.000000e+00> : vector<8x384xf32>
    %342 = tpu.matmul %336, %341, %cst_116 {dimension_numbers = #tpu.dot_dimension_numbers<[1], [0], [0], [1], [0, 0, 1, 1], [], []>} : vector<8x128xf32>, vector<128x384xf32>, vector<8x384xf32> -> vector<8x384xf32>
    %343 = vector.extract_strided_slice %340 {offsets = [0, 0], sizes = [8, 128], strides = [1, 1]} : vector<8x384xf32> to vector<8x128xf32>
    %344 = vector.extract_strided_slice %342 {offsets = [0, 0], sizes = [8, 128], strides = [1, 1]} : vector<8x384xf32> to vector<8x128xf32>
    %345 = arith.addf %343, %344 : vector<8x128xf32>
    %346 = arith.negf %345 : vector<8x128xf32>
    %347 = math.exp %346 : vector<8x128xf32>
    %cst_117 = arith.constant 1.000000e+00 : f32
    %348 = vector.broadcast %cst_117 : f32 to vector<8x128xf32>
    %349 = arith.addf %348, %347 : vector<8x128xf32>
    %350 = arith.divf %348, %349 : vector<8x128xf32>
    %351 = vector.extract_strided_slice %340 {offsets = [0, 128], sizes = [8, 128], strides = [1, 1]} : vector<8x384xf32> to vector<8x128xf32>
    %352 = vector.extract_strided_slice %342 {offsets = [0, 128], sizes = [8, 128], strides = [1, 1]} : vector<8x384xf32> to vector<8x128xf32>
    %353 = arith.addf %351, %352 : vector<8x128xf32>
    %354 = arith.negf %353 : vector<8x128xf32>
    %355 = math.exp %354 : vector<8x128xf32>
    %cst_118 = arith.constant 1.000000e+00 : f32
    %356 = vector.broadcast %cst_118 : f32 to vector<8x128xf32>
    %357 = arith.addf %356, %355 : vector<8x128xf32>
    %358 = arith.divf %356, %357 : vector<8x128xf32>
    %359 = vector.extract_strided_slice %340 {offsets = [0, 256], sizes = [8, 128], strides = [1, 1]} : vector<8x384xf32> to vector<8x128xf32>
    %360 = vector.extract_strided_slice %342 {offsets = [0, 256], sizes = [8, 128], strides = [1, 1]} : vector<8x384xf32> to vector<8x128xf32>
    %361 = arith.addf %360, %304 : vector<8x128xf32>
    %362 = arith.mulf %350, %361 : vector<8x128xf32>
    %363 = arith.addf %359, %362 : vector<8x128xf32>
    %364 = math.tanh %363 : vector<8x128xf32>
    %365 = arith.subf %336, %364 : vector<8x128xf32>
    %366 = arith.mulf %358, %365 : vector<8x128xf32>
    %367 = arith.addf %364, %366 : vector<8x128xf32>
    %c2_i32_119 = arith.constant 2 : i32
    %c8_i32_120 = arith.constant 8 : i32
    %368 = arith.muli %c2_i32_119, %c8_i32_120 : i32
    %369 = tpu.assume_multiple %368, 8 : i32
    %370 = arith.index_cast %369 : i32 to index
    %c0_121 = arith.constant 0 : index
    %371 = vector.load %arg12[%370, %c0_121] : memref<64x384xf32, #tpu.memory_space<vmem>>, vector<8x384xf32>
    %c0_122 = arith.constant 0 : index
    %c0_123 = arith.constant 0 : index
    %372 = vector.load %arg6[%c0_122, %c0_123] : memref<128x384xf32, #tpu.memory_space<vmem>>, vector<128x384xf32>
    %cst_124 = arith.constant dense<0.000000e+00> : vector<8x384xf32>
    %373 = tpu.matmul %367, %372, %cst_124 {dimension_numbers = #tpu.dot_dimension_numbers<[1], [0], [0], [1], [0, 0, 1, 1], [], []>} : vector<8x128xf32>, vector<128x384xf32>, vector<8x384xf32> -> vector<8x384xf32>
    %374 = vector.extract_strided_slice %371 {offsets = [0, 0], sizes = [8, 128], strides = [1, 1]} : vector<8x384xf32> to vector<8x128xf32>
    %375 = vector.extract_strided_slice %373 {offsets = [0, 0], sizes = [8, 128], strides = [1, 1]} : vector<8x384xf32> to vector<8x128xf32>
    %376 = arith.addf %374, %375 : vector<8x128xf32>
    %377 = arith.negf %376 : vector<8x128xf32>
    %378 = math.exp %377 : vector<8x128xf32>
    %cst_125 = arith.constant 1.000000e+00 : f32
    %379 = vector.broadcast %cst_125 : f32 to vector<8x128xf32>
    %380 = arith.addf %379, %378 : vector<8x128xf32>
    %381 = arith.divf %379, %380 : vector<8x128xf32>
    %382 = vector.extract_strided_slice %371 {offsets = [0, 128], sizes = [8, 128], strides = [1, 1]} : vector<8x384xf32> to vector<8x128xf32>
    %383 = vector.extract_strided_slice %373 {offsets = [0, 128], sizes = [8, 128], strides = [1, 1]} : vector<8x384xf32> to vector<8x128xf32>
    %384 = arith.addf %382, %383 : vector<8x128xf32>
    %385 = arith.negf %384 : vector<8x128xf32>
    %386 = math.exp %385 : vector<8x128xf32>
    %cst_126 = arith.constant 1.000000e+00 : f32
    %387 = vector.broadcast %cst_126 : f32 to vector<8x128xf32>
    %388 = arith.addf %387, %386 : vector<8x128xf32>
    %389 = arith.divf %387, %388 : vector<8x128xf32>
    %390 = vector.extract_strided_slice %371 {offsets = [0, 256], sizes = [8, 128], strides = [1, 1]} : vector<8x384xf32> to vector<8x128xf32>
    %391 = vector.extract_strided_slice %373 {offsets = [0, 256], sizes = [8, 128], strides = [1, 1]} : vector<8x384xf32> to vector<8x128xf32>
    %392 = arith.addf %391, %304 : vector<8x128xf32>
    %393 = arith.mulf %381, %392 : vector<8x128xf32>
    %394 = arith.addf %390, %393 : vector<8x128xf32>
    %395 = math.tanh %394 : vector<8x128xf32>
    %396 = arith.subf %367, %395 : vector<8x128xf32>
    %397 = arith.mulf %389, %396 : vector<8x128xf32>
    %398 = arith.addf %395, %397 : vector<8x128xf32>
    %c3_i32_127 = arith.constant 3 : i32
    %c8_i32_128 = arith.constant 8 : i32
    %399 = arith.muli %c3_i32_127, %c8_i32_128 : i32
    %400 = tpu.assume_multiple %399, 8 : i32
    %401 = arith.index_cast %400 : i32 to index
    %c0_129 = arith.constant 0 : index
    %402 = vector.load %arg12[%401, %c0_129] : memref<64x384xf32, #tpu.memory_space<vmem>>, vector<8x384xf32>
    %c0_130 = arith.constant 0 : index
    %c0_131 = arith.constant 0 : index
    %403 = vector.load %arg6[%c0_130, %c0_131] : memref<128x384xf32, #tpu.memory_space<vmem>>, vector<128x384xf32>
    %cst_132 = arith.constant dense<0.000000e+00> : vector<8x384xf32>
    %404 = tpu.matmul %398, %403, %cst_132 {dimension_numbers = #tpu.dot_dimension_numbers<[1], [0], [0], [1], [0, 0, 1, 1], [], []>} : vector<8x128xf32>, vector<128x384xf32>, vector<8x384xf32> -> vector<8x384xf32>
    %405 = vector.extract_strided_slice %402 {offsets = [0, 0], sizes = [8, 128], strides = [1, 1]} : vector<8x384xf32> to vector<8x128xf32>
    %406 = vector.extract_strided_slice %404 {offsets = [0, 0], sizes = [8, 128], strides = [1, 1]} : vector<8x384xf32> to vector<8x128xf32>
    %407 = arith.addf %405, %406 : vector<8x128xf32>
    %408 = arith.negf %407 : vector<8x128xf32>
    %409 = math.exp %408 : vector<8x128xf32>
    %cst_133 = arith.constant 1.000000e+00 : f32
    %410 = vector.broadcast %cst_133 : f32 to vector<8x128xf32>
    %411 = arith.addf %410, %409 : vector<8x128xf32>
    %412 = arith.divf %410, %411 : vector<8x128xf32>
    %413 = vector.extract_strided_slice %402 {offsets = [0, 128], sizes = [8, 128], strides = [1, 1]} : vector<8x384xf32> to vector<8x128xf32>
    %414 = vector.extract_strided_slice %404 {offsets = [0, 128], sizes = [8, 128], strides = [1, 1]} : vector<8x384xf32> to vector<8x128xf32>
    %415 = arith.addf %413, %414 : vector<8x128xf32>
    %416 = arith.negf %415 : vector<8x128xf32>
    %417 = math.exp %416 : vector<8x128xf32>
    %cst_134 = arith.constant 1.000000e+00 : f32
    %418 = vector.broadcast %cst_134 : f32 to vector<8x128xf32>
    %419 = arith.addf %418, %417 : vector<8x128xf32>
    %420 = arith.divf %418, %419 : vector<8x128xf32>
    %421 = vector.extract_strided_slice %402 {offsets = [0, 256], sizes = [8, 128], strides = [1, 1]} : vector<8x384xf32> to vector<8x128xf32>
    %422 = vector.extract_strided_slice %404 {offsets = [0, 256], sizes = [8, 128], strides = [1, 1]} : vector<8x384xf32> to vector<8x128xf32>
    %423 = arith.addf %422, %304 : vector<8x128xf32>
    %424 = arith.mulf %412, %423 : vector<8x128xf32>
    %425 = arith.addf %421, %424 : vector<8x128xf32>
    %426 = math.tanh %425 : vector<8x128xf32>
    %427 = arith.subf %398, %426 : vector<8x128xf32>
    %428 = arith.mulf %420, %427 : vector<8x128xf32>
    %429 = arith.addf %426, %428 : vector<8x128xf32>
    %c4_i32_135 = arith.constant 4 : i32
    %c8_i32_136 = arith.constant 8 : i32
    %430 = arith.muli %c4_i32_135, %c8_i32_136 : i32
    %431 = tpu.assume_multiple %430, 8 : i32
    %432 = arith.index_cast %431 : i32 to index
    %c0_137 = arith.constant 0 : index
    %433 = vector.load %arg12[%432, %c0_137] : memref<64x384xf32, #tpu.memory_space<vmem>>, vector<8x384xf32>
    %c0_138 = arith.constant 0 : index
    %c0_139 = arith.constant 0 : index
    %434 = vector.load %arg6[%c0_138, %c0_139] : memref<128x384xf32, #tpu.memory_space<vmem>>, vector<128x384xf32>
    %cst_140 = arith.constant dense<0.000000e+00> : vector<8x384xf32>
    %435 = tpu.matmul %429, %434, %cst_140 {dimension_numbers = #tpu.dot_dimension_numbers<[1], [0], [0], [1], [0, 0, 1, 1], [], []>} : vector<8x128xf32>, vector<128x384xf32>, vector<8x384xf32> -> vector<8x384xf32>
    %436 = vector.extract_strided_slice %433 {offsets = [0, 0], sizes = [8, 128], strides = [1, 1]} : vector<8x384xf32> to vector<8x128xf32>
    %437 = vector.extract_strided_slice %435 {offsets = [0, 0], sizes = [8, 128], strides = [1, 1]} : vector<8x384xf32> to vector<8x128xf32>
    %438 = arith.addf %436, %437 : vector<8x128xf32>
    %439 = arith.negf %438 : vector<8x128xf32>
    %440 = math.exp %439 : vector<8x128xf32>
    %cst_141 = arith.constant 1.000000e+00 : f32
    %441 = vector.broadcast %cst_141 : f32 to vector<8x128xf32>
    %442 = arith.addf %441, %440 : vector<8x128xf32>
    %443 = arith.divf %441, %442 : vector<8x128xf32>
    %444 = vector.extract_strided_slice %433 {offsets = [0, 128], sizes = [8, 128], strides = [1, 1]} : vector<8x384xf32> to vector<8x128xf32>
    %445 = vector.extract_strided_slice %435 {offsets = [0, 128], sizes = [8, 128], strides = [1, 1]} : vector<8x384xf32> to vector<8x128xf32>
    %446 = arith.addf %444, %445 : vector<8x128xf32>
    %447 = arith.negf %446 : vector<8x128xf32>
    %448 = math.exp %447 : vector<8x128xf32>
    %cst_142 = arith.constant 1.000000e+00 : f32
    %449 = vector.broadcast %cst_142 : f32 to vector<8x128xf32>
    %450 = arith.addf %449, %448 : vector<8x128xf32>
    %451 = arith.divf %449, %450 : vector<8x128xf32>
    %452 = vector.extract_strided_slice %433 {offsets = [0, 256], sizes = [8, 128], strides = [1, 1]} : vector<8x384xf32> to vector<8x128xf32>
    %453 = vector.extract_strided_slice %435 {offsets = [0, 256], sizes = [8, 128], strides = [1, 1]} : vector<8x384xf32> to vector<8x128xf32>
    %454 = arith.addf %453, %304 : vector<8x128xf32>
    %455 = arith.mulf %443, %454 : vector<8x128xf32>
    %456 = arith.addf %452, %455 : vector<8x128xf32>
    %457 = math.tanh %456 : vector<8x128xf32>
    %458 = arith.subf %429, %457 : vector<8x128xf32>
    %459 = arith.mulf %451, %458 : vector<8x128xf32>
    %460 = arith.addf %457, %459 : vector<8x128xf32>
    %c5_i32_143 = arith.constant 5 : i32
    %c8_i32_144 = arith.constant 8 : i32
    %461 = arith.muli %c5_i32_143, %c8_i32_144 : i32
    %462 = tpu.assume_multiple %461, 8 : i32
    %463 = arith.index_cast %462 : i32 to index
    %c0_145 = arith.constant 0 : index
    %464 = vector.load %arg12[%463, %c0_145] : memref<64x384xf32, #tpu.memory_space<vmem>>, vector<8x384xf32>
    %c0_146 = arith.constant 0 : index
    %c0_147 = arith.constant 0 : index
    %465 = vector.load %arg6[%c0_146, %c0_147] : memref<128x384xf32, #tpu.memory_space<vmem>>, vector<128x384xf32>
    %cst_148 = arith.constant dense<0.000000e+00> : vector<8x384xf32>
    %466 = tpu.matmul %460, %465, %cst_148 {dimension_numbers = #tpu.dot_dimension_numbers<[1], [0], [0], [1], [0, 0, 1, 1], [], []>} : vector<8x128xf32>, vector<128x384xf32>, vector<8x384xf32> -> vector<8x384xf32>
    %467 = vector.extract_strided_slice %464 {offsets = [0, 0], sizes = [8, 128], strides = [1, 1]} : vector<8x384xf32> to vector<8x128xf32>
    %468 = vector.extract_strided_slice %466 {offsets = [0, 0], sizes = [8, 128], strides = [1, 1]} : vector<8x384xf32> to vector<8x128xf32>
    %469 = arith.addf %467, %468 : vector<8x128xf32>
    %470 = arith.negf %469 : vector<8x128xf32>
    %471 = math.exp %470 : vector<8x128xf32>
    %cst_149 = arith.constant 1.000000e+00 : f32
    %472 = vector.broadcast %cst_149 : f32 to vector<8x128xf32>
    %473 = arith.addf %472, %471 : vector<8x128xf32>
    %474 = arith.divf %472, %473 : vector<8x128xf32>
    %475 = vector.extract_strided_slice %464 {offsets = [0, 128], sizes = [8, 128], strides = [1, 1]} : vector<8x384xf32> to vector<8x128xf32>
    %476 = vector.extract_strided_slice %466 {offsets = [0, 128], sizes = [8, 128], strides = [1, 1]} : vector<8x384xf32> to vector<8x128xf32>
    %477 = arith.addf %475, %476 : vector<8x128xf32>
    %478 = arith.negf %477 : vector<8x128xf32>
    %479 = math.exp %478 : vector<8x128xf32>
    %cst_150 = arith.constant 1.000000e+00 : f32
    %480 = vector.broadcast %cst_150 : f32 to vector<8x128xf32>
    %481 = arith.addf %480, %479 : vector<8x128xf32>
    %482 = arith.divf %480, %481 : vector<8x128xf32>
    %483 = vector.extract_strided_slice %464 {offsets = [0, 256], sizes = [8, 128], strides = [1, 1]} : vector<8x384xf32> to vector<8x128xf32>
    %484 = vector.extract_strided_slice %466 {offsets = [0, 256], sizes = [8, 128], strides = [1, 1]} : vector<8x384xf32> to vector<8x128xf32>
    %485 = arith.addf %484, %304 : vector<8x128xf32>
    %486 = arith.mulf %474, %485 : vector<8x128xf32>
    %487 = arith.addf %483, %486 : vector<8x128xf32>
    %488 = math.tanh %487 : vector<8x128xf32>
    %489 = arith.subf %460, %488 : vector<8x128xf32>
    %490 = arith.mulf %482, %489 : vector<8x128xf32>
    %491 = arith.addf %488, %490 : vector<8x128xf32>
    %c6_i32_151 = arith.constant 6 : i32
    %c8_i32_152 = arith.constant 8 : i32
    %492 = arith.muli %c6_i32_151, %c8_i32_152 : i32
    %493 = tpu.assume_multiple %492, 8 : i32
    %494 = arith.index_cast %493 : i32 to index
    %c0_153 = arith.constant 0 : index
    %495 = vector.load %arg12[%494, %c0_153] : memref<64x384xf32, #tpu.memory_space<vmem>>, vector<8x384xf32>
    %c0_154 = arith.constant 0 : index
    %c0_155 = arith.constant 0 : index
    %496 = vector.load %arg6[%c0_154, %c0_155] : memref<128x384xf32, #tpu.memory_space<vmem>>, vector<128x384xf32>
    %cst_156 = arith.constant dense<0.000000e+00> : vector<8x384xf32>
    %497 = tpu.matmul %491, %496, %cst_156 {dimension_numbers = #tpu.dot_dimension_numbers<[1], [0], [0], [1], [0, 0, 1, 1], [], []>} : vector<8x128xf32>, vector<128x384xf32>, vector<8x384xf32> -> vector<8x384xf32>
    %498 = vector.extract_strided_slice %495 {offsets = [0, 0], sizes = [8, 128], strides = [1, 1]} : vector<8x384xf32> to vector<8x128xf32>
    %499 = vector.extract_strided_slice %497 {offsets = [0, 0], sizes = [8, 128], strides = [1, 1]} : vector<8x384xf32> to vector<8x128xf32>
    %500 = arith.addf %498, %499 : vector<8x128xf32>
    %501 = arith.negf %500 : vector<8x128xf32>
    %502 = math.exp %501 : vector<8x128xf32>
    %cst_157 = arith.constant 1.000000e+00 : f32
    %503 = vector.broadcast %cst_157 : f32 to vector<8x128xf32>
    %504 = arith.addf %503, %502 : vector<8x128xf32>
    %505 = arith.divf %503, %504 : vector<8x128xf32>
    %506 = vector.extract_strided_slice %495 {offsets = [0, 128], sizes = [8, 128], strides = [1, 1]} : vector<8x384xf32> to vector<8x128xf32>
    %507 = vector.extract_strided_slice %497 {offsets = [0, 128], sizes = [8, 128], strides = [1, 1]} : vector<8x384xf32> to vector<8x128xf32>
    %508 = arith.addf %506, %507 : vector<8x128xf32>
    %509 = arith.negf %508 : vector<8x128xf32>
    %510 = math.exp %509 : vector<8x128xf32>
    %cst_158 = arith.constant 1.000000e+00 : f32
    %511 = vector.broadcast %cst_158 : f32 to vector<8x128xf32>
    %512 = arith.addf %511, %510 : vector<8x128xf32>
    %513 = arith.divf %511, %512 : vector<8x128xf32>
    %514 = vector.extract_strided_slice %495 {offsets = [0, 256], sizes = [8, 128], strides = [1, 1]} : vector<8x384xf32> to vector<8x128xf32>
    %515 = vector.extract_strided_slice %497 {offsets = [0, 256], sizes = [8, 128], strides = [1, 1]} : vector<8x384xf32> to vector<8x128xf32>
    %516 = arith.addf %515, %304 : vector<8x128xf32>
    %517 = arith.mulf %505, %516 : vector<8x128xf32>
    %518 = arith.addf %514, %517 : vector<8x128xf32>
    %519 = math.tanh %518 : vector<8x128xf32>
    %520 = arith.subf %491, %519 : vector<8x128xf32>
    %521 = arith.mulf %513, %520 : vector<8x128xf32>
    %522 = arith.addf %519, %521 : vector<8x128xf32>
    %c7_i32_159 = arith.constant 7 : i32
    %c8_i32_160 = arith.constant 8 : i32
    %523 = arith.muli %c7_i32_159, %c8_i32_160 : i32
    %524 = tpu.assume_multiple %523, 8 : i32
    %525 = arith.index_cast %524 : i32 to index
    %c0_161 = arith.constant 0 : index
    %526 = vector.load %arg12[%525, %c0_161] : memref<64x384xf32, #tpu.memory_space<vmem>>, vector<8x384xf32>
    %c0_162 = arith.constant 0 : index
    %c0_163 = arith.constant 0 : index
    %527 = vector.load %arg6[%c0_162, %c0_163] : memref<128x384xf32, #tpu.memory_space<vmem>>, vector<128x384xf32>
    %cst_164 = arith.constant dense<0.000000e+00> : vector<8x384xf32>
    %528 = tpu.matmul %522, %527, %cst_164 {dimension_numbers = #tpu.dot_dimension_numbers<[1], [0], [0], [1], [0, 0, 1, 1], [], []>} : vector<8x128xf32>, vector<128x384xf32>, vector<8x384xf32> -> vector<8x384xf32>
    %529 = vector.extract_strided_slice %526 {offsets = [0, 0], sizes = [8, 128], strides = [1, 1]} : vector<8x384xf32> to vector<8x128xf32>
    %530 = vector.extract_strided_slice %528 {offsets = [0, 0], sizes = [8, 128], strides = [1, 1]} : vector<8x384xf32> to vector<8x128xf32>
    %531 = arith.addf %529, %530 : vector<8x128xf32>
    %532 = arith.negf %531 : vector<8x128xf32>
    %533 = math.exp %532 : vector<8x128xf32>
    %cst_165 = arith.constant 1.000000e+00 : f32
    %534 = vector.broadcast %cst_165 : f32 to vector<8x128xf32>
    %535 = arith.addf %534, %533 : vector<8x128xf32>
    %536 = arith.divf %534, %535 : vector<8x128xf32>
    %537 = vector.extract_strided_slice %526 {offsets = [0, 128], sizes = [8, 128], strides = [1, 1]} : vector<8x384xf32> to vector<8x128xf32>
    %538 = vector.extract_strided_slice %528 {offsets = [0, 128], sizes = [8, 128], strides = [1, 1]} : vector<8x384xf32> to vector<8x128xf32>
    %539 = arith.addf %537, %538 : vector<8x128xf32>
    %540 = arith.negf %539 : vector<8x128xf32>
    %541 = math.exp %540 : vector<8x128xf32>
    %cst_166 = arith.constant 1.000000e+00 : f32
    %542 = vector.broadcast %cst_166 : f32 to vector<8x128xf32>
    %543 = arith.addf %542, %541 : vector<8x128xf32>
    %544 = arith.divf %542, %543 : vector<8x128xf32>
    %545 = vector.extract_strided_slice %526 {offsets = [0, 256], sizes = [8, 128], strides = [1, 1]} : vector<8x384xf32> to vector<8x128xf32>
    %546 = vector.extract_strided_slice %528 {offsets = [0, 256], sizes = [8, 128], strides = [1, 1]} : vector<8x384xf32> to vector<8x128xf32>
    %547 = arith.addf %546, %304 : vector<8x128xf32>
    %548 = arith.mulf %536, %547 : vector<8x128xf32>
    %549 = arith.addf %545, %548 : vector<8x128xf32>
    %550 = math.tanh %549 : vector<8x128xf32>
    %551 = arith.subf %522, %550 : vector<8x128xf32>
    %552 = arith.mulf %544, %551 : vector<8x128xf32>
    %553 = arith.addf %550, %552 : vector<8x128xf32>
    %c8_i32_167 = arith.constant 8 : i32
    %cst_168 = arith.constant 0.000000e+00 : f32
    %554 = vector.broadcast %cst_168 : f32 to vector<8x128xf32>
    %555 = arith.maximumf %553, %554 : vector<8x128xf32>
    %c0_169 = arith.constant 0 : index
    %c0_170 = arith.constant 0 : index
    %556 = vector.load %arg9[%c0_169, %c0_170] : memref<128x128xf32, #tpu.memory_space<vmem>>, vector<128x128xf32>
    %cst_171 = arith.constant dense<0.000000e+00> : vector<8x128xf32>
    %557 = tpu.matmul %555, %556, %cst_171 {dimension_numbers = #tpu.dot_dimension_numbers<[1], [0], [0], [1], [0, 0, 1, 1], [], []>} : vector<8x128xf32>, vector<128x128xf32>, vector<8x128xf32> -> vector<8x128xf32>
    %c0_172 = arith.constant 0 : index
    %c0_173 = arith.constant 0 : index
    %558 = vector.load %arg10[%c0_172, %c0_173] : memref<1x128xf32, #tpu.memory_space<vmem>>, vector<1x128xf32>
    %559 = vector.broadcast %558 : vector<1x128xf32> to vector<8x128xf32>
    %560 = arith.addf %557, %559 : vector<8x128xf32>
    %c0_174 = arith.constant 0 : index
    %c0_175 = arith.constant 0 : index
    %561 = vector.load %arg11[%c0_174, %c0_175] : memref<8x128xf32, #tpu.memory_space<vmem>>, vector<8x128xf32>
    tpu.vector_store %arg11[%c0_174, %c0_175], %560 {strides = array<i32>} : memref<8x128xf32, #tpu.memory_space<vmem>>, vector<8x128xf32>,
    return
  }
}

</mosaic_0001>

<bundles_post_ra>
// kernel: gru_classifier_forward.1
= control target key start
LH: loop header
LB: loop body
LE: loop exit
PB: predicated region body
PF: predicated region fallthrough
CT: control target
= control target key end

     0   :  { %16 = vsyncpa [#allocation4], 0  ;;  %s9994_s0 = inlined_call_operand.vmem [shape: f32[64,128], index: 0, kind: input, shape index: {}]   ;;  %s9995_s1 = inlined_call_operand.hbm [shape: f32[128,384], index: 1, kind: input, shape index: {}]   ;;  %s9996_s2 = inlined_call_operand.hbm [shape: f32[128,384], index: 2, kind: input, shape index: {}]   ;;  %s9997_s3 = inlined_call_operand.vmem [shape: f32[1,384], index: 3, kind: input, shape index: {}]   ;;  %s9998_s4 = inlined_call_operand.vmem [shape: f32[1,128], index: 4, kind: input, shape index: {}]   ;;  %s9999_s5 = inlined_call_operand.hbm [shape: f32[128,384], index: 5, kind: input, shape index: {}]   ;;  %s10000_s6 = inlined_call_operand.hbm [shape: f32[128,384], index: 6, kind: input, shape index: {}]   ;;  %s10001_s7 = inlined_call_operand.vmem [shape: f32[1,384], index: 7, kind: input, shape index: {}]   ;;  %s10002_s8 = inlined_call_operand.vmem [shape: f32[1,128], index: 8, kind: input, shape index: {}]   ;;  %s10003_s9 = inlined_call_operand.vmem [shape: f32[128,128], index: 9, kind: input, shape index: {}]   ;;  %s10004_s10 = inlined_call_operand.vmem [shape: f32[1,128], index: 10, kind: input, shape index: {}]   ;;  %s10005_s11 = inlined_call_operand.vmem [shape: f32[8,128], index: 11, kind: output, shape index: {}]  }
   0x1   :  { %17 = vsyncpa [#allocation6], 0 }
   0x2   :  { %18 = vsyncpa [#allocation9], 0  ;;  %s8343_s17 = smov [#allocation5]   ;;  %s8344_s19 = smov [#allocation3]  }
   0x3   :  { %s38_s18 = sshll.u32 %s8343_s17, 4  ;;  %s26_s20 = sshll.u32 %s8344_s19, 4  ;;  %s39_s18 = int_to_ptr.vmem [resolvable:$true] %s38_s18  ;;  %s8412_s20 = int_to_ptr.vmem [resolvable:$true] %s26_s20 }
   0x4   :  { %s8249_s23 = scalar_lea.hbm %s9996_s2, 6144 }
   0x5   :  { %p8250_p0 = scmp.ne.s32.totalorder %s9996_s2, %s8249_s23  ;;  %p8253_p1 = scmp.lt.u32.totalorder %s8249_s23, %s9996_s2 }
   0x7   :  { %p8255_p2 = pnand %p8253_p1, %p8250_p0 }
   0x9   :  { %8258 = shalt.err (!%p8255_p2)
}
   0xa   :  { %s8259_s28 = scalar_lea.vmem %s39_s18, 6144  ;;  %p8264_p4 = scmp.lt.s32.totalorder %s39_s18, %s39_s18 }
   0xb   :  { %p8260_p3 = scmp.ne.s32.totalorder %s39_s18, %s8259_s28  ;;  %p8265_p5 = scmp.lt.s32.totalorder %s8259_s28, %s8259_s28 }
   0xd   :  { %p8266_p6 = por %p8265_p5, %p8264_p4 }
   0xf   :  { %p8267_p7 = pnand %p8266_p6, %p8260_p3 }
  0x11   :  { %8270 = shalt.err (!%p8267_p7)
}
  0x12   :  { %s8345_s29 = smov 384   ;;  %s8346_s30 = smov 24  }
  0x13   :  { %44 = dma.hbm_to_vmem [thread:$0]  %s9996_s2, 6144, %s39_s18, [#allocation6], %s8345_s29, %s8345_s29, %s8346_s30  }
  0x14   :  { %s8271_s16 = scalar_lea.hbm %s9995_s1, 6144 }
  0x15   :  { %p8272_p8 = scmp.ne.s32.totalorder %s9995_s1, %s8271_s16  ;;  %p8275_p9 = scmp.lt.u32.totalorder %s8271_s16, %s9995_s1 }
  0x17   :  { %p8277_p10 = pnand %p8275_p9, %p8272_p8 }
  0x19   :  { %8280 = shalt.err (!%p8277_p10)
}
  0x1a   :  { %s8281_s23 = scalar_lea.vmem %s8412_s20, 6144  ;;  %p8286_p12 = scmp.lt.s32.totalorder %s8412_s20, %s8412_s20 }
  0x1b   :  { %p8282_p11 = scmp.ne.s32.totalorder %s8412_s20, %s8281_s23  ;;  %p8287_p13 = scmp.lt.s32.totalorder %s8281_s23, %s8281_s23 }
  0x1d   :  { %p8288_p0 = por %p8287_p13, %p8286_p12 }
  0x1f   :  { %p8289_p1 = pnand %p8288_p0, %p8282_p11 }
  0x21   :  { %8292 = shalt.err (!%p8289_p1)
}
  0x22   :  { %32 = dma.hbm_to_vmem [thread:$0]  %s9995_s1, 6144, %s8412_s20, [#allocation4], %s8345_s29, %s8345_s29, %s8346_s30  }
  0x23   :  { %s8347_s24 = smov [#allocation7]   ;;  %s8348_s26 = smov [#allocation8]  }
  0x24   :  { %s54_s25 = sshll.u32 %s8347_s24, 4  ;;  %s66_s27 = sshll.u32 %s8348_s26, 4  ;;  %s55_s25 = int_to_ptr.vmem [resolvable:$true] %s54_s25  ;;  %s8449_s27 = int_to_ptr.vmem [resolvable:$true] %s66_s27 }
  0x25   :  { %s8293_s13 = scalar_lea.hbm %s9999_s5, 6144 }
  0x26   :  { %p8294_p2 = scmp.ne.s32.totalorder %s9999_s5, %s8293_s13  ;;  %p8297_p3 = scmp.lt.u32.totalorder %s8293_s13, %s9999_s5 }
  0x28   :  { %p8299_p4 = pnand %p8297_p3, %p8294_p2 }
  0x2a   :  { %8302 = shalt.err (!%p8299_p4)
}
  0x2b   :  { %s8303_s1 = scalar_lea.vmem %s55_s25, 6144  ;;  %p8308_p6 = scmp.lt.s32.totalorder %s55_s25, %s55_s25 }
  0x2c   :  { %p8304_p5 = scmp.ne.s32.totalorder %s55_s25, %s8303_s1  ;;  %p8309_p7 = scmp.lt.s32.totalorder %s8303_s1, %s8303_s1 }
  0x2e   :  { %p8310_p8 = por %p8309_p7, %p8308_p6 }
  0x30   :  { %p8311_p9 = pnand %p8310_p8, %p8304_p5 }
  0x32   :  { %8314 = shalt.err (!%p8311_p9)
}
  0x33   :  { %60 = dma.hbm_to_vmem [thread:$0]  %s9999_s5, 6144, %s55_s25, [#allocation6], %s8345_s29, %s8345_s29, %s8346_s30  }
  0x34   :  { %s8315_s23 = scalar_lea.hbm %s10000_s6, 6144 }
  0x35   :  { %p8316_p10 = scmp.ne.s32.totalorder %s10000_s6, %s8315_s23  ;;  %p8319_p11 = scmp.lt.u32.totalorder %s8315_s23, %s10000_s6 }
  0x37   :  { %p8321_p12 = pnand %p8319_p11, %p8316_p10 }
  0x39   :  { %8324 = shalt.err (!%p8321_p12)
}
  0x3a   :  { %s8325_s28 = scalar_lea.vmem %s8449_s27, 6144  ;;  %p8330_p0 = scmp.lt.s32.totalorder %s8449_s27, %s8449_s27 }
  0x3b   :  { %p8326_p13 = scmp.ne.s32.totalorder %s8449_s27, %s8325_s28  ;;  %p8331_p1 = scmp.lt.s32.totalorder %s8325_s28, %s8325_s28 }
  0x3d   :  { %p8332_p2 = por %p8331_p1, %p8330_p0 }
  0x3f   :  { %p8333_p3 = pnand %p8332_p2, %p8326_p13 }
  0x41   :  { %8336 = shalt.err (!%p8333_p3)
}
  0x42   :  { %72 = dma.hbm_to_vmem [thread:$0]  %s10000_s6, 6144, %s8449_s27, [#allocation9], %s8345_s29, %s8345_s29, %s8346_s30  }
  0x43   :  { %8337 = dma.done.wait [#allocation4], 6144  }
  0x44   :  { %8338 = vsyncadd [#allocation4], 4294961152 }
  0x45   :  { %8339 = dma.done.wait [#allocation6], 12288  }
  0x46   :  { %8340 = vsyncadd [#allocation6], 4294955008 }
  0x47   :  { %8341 = dma.done.wait [#allocation9], 6144  }
  0x48   :  { %8342 = vsyncadd [#allocation9], 4294961152  ;;  %v10006_v0 = vmov 0.0   ;;  %v102_v1 = vld [vmem:[#allocation3 + $0x8] sm:$0xff]  ;;  %v105_v2 = vld [vmem:[#allocation3 + $0x20] sm:$0xff]  ;;  %vm8351_vm0 = vmmov 0  }
  0x49   :  { %230 = vmatprep.mubr.f32.mxu0 %v10006_v0  ;;  %v101_v3 = vld [vmem:[#allocation3] sm:$0xff]  ;;  %v6583_v4 = vpack.c.bf16 %v105_v2, %v102_v1  ;;  %v104_v5 = vld [vmem:[#allocation3 + $0x18] sm:$0xff]  ;;  %v111_v7 = vld [vmem:[#allocation3 + $0x50] sm:$0xff] }
  0x4a   :  { %v108_v6 = vld [vmem:[#allocation3 + $0x38] sm:$0xff]  ;;  %v6585_v8 = vpack.c.bf16 %v104_v5, %v101_v3  ;;  %v107_v10 = vld [vmem:[#allocation3 + $0x30] sm:$0xff]  ;;  %v110_v11 = vld [vmem:[#allocation3 + $0x48] sm:$0xff] }
  0x4b   :  { %v6587_v9 = vpack.c.bf16 %v111_v7, %v108_v6  ;;  %v114_v12 = vld [vmem:[#allocation3 + $0x68] sm:$0xff]  ;;  %6584 = vmatprep.subr.bf16.mxu0 %v6583_v4  ;;  %v117_v13 = vld [vmem:[#allocation3 + $0x80] sm:$0xff]  ;;  %v6589_v14 = vpack.c.bf16 %v110_v11, %v107_v10  ;;  %v116_v17 = vld [vmem:[#allocation3 + $0x78] sm:$0xff] }
  0x4c   :  { %6586 = vmatpush1.bf16.msra.mxu0 %v6585_v8  ;;  %v6591_v15 = vpack.c.bf16 %v117_v13, %v114_v12  ;;  %v113_v16 = vld [vmem:[#allocation3 + $0x60] sm:$0xff]  ;;  %v120_v18 = vld [vmem:[#allocation3 + $0x98] sm:$0xff]  ;;  %v123_v19 = vld [vmem:[#allocation3 + $0xb0] sm:$0xff] }
  0x4d   :  { %6588 = vmatprep.subr.bf16.mxu0 %v6587_v9  ;;  %v6593_v20 = vpack.c.bf16 %v116_v17, %v113_v16  ;;  %v119_v21 = vld [vmem:[#allocation3 + $0x90] sm:$0xff]  ;;  %v6595_v22 = vpack.c.bf16 %v123_v19, %v120_v18  ;;  %v122_v23 = vld [vmem:[#allocation3 + $0xa8] sm:$0xff]  ;;  %v129_v27 = vld [vmem:[#allocation3 + $0xe0] sm:$0xff] }
  0x4e   :  { %v103_v24 = vld [vmem:[#allocation3 + $0x10] sm:$0xff]  ;;  %v106_v25 = vld [vmem:[#allocation3 + $0x28] sm:$0xff]  ;;  %v109_v29 = vld [vmem:[#allocation3 + $0x40] sm:$0xff]  ;;  %v6597_v31 = vpack.c.bf16 %v122_v23, %v119_v21 }
  0x4f   :  { %v126_v26 = vld [vmem:[#allocation3 + $0xc8] sm:$0xff]  ;;  %v6615_v28 = vpack.c.bf16 %v106_v25, %v103_v24  ;;  %v112_v30 = vld [vmem:[#allocation3 + $0x58] sm:$0xff]  ;;  %v125_v32 = vld [vmem:[#allocation3 + $0xc0] sm:$0xff] }
  0x50   :  { %6590 = vmatpush1.bf16.msra.mxu0 %v6589_v14  ;;  %v6619_v33 = vpack.c.bf16 %v112_v30, %v109_v29  ;;  %v6599_v34 = vpack.c.bf16 %v129_v27, %v126_v26  ;;  %v128_v35 = vld [vmem:[#allocation3 + $0xd8] sm:$0xff]  ;;  %v8490_v36 = vld [vmem:[%s9994_s0] sm:$0xff]  ;;  %v115_v37 = vld [vmem:[#allocation3 + $0x70] sm:$0xff] }
  0x51   :  { %6592 = vmatprep.subr.bf16.mxu0 %v6591_v15  ;;  %6616 = vmatprep.subr.bf16.mxu1 %v6615_v28  ;;  %v132_v38 = vld [vmem:[#allocation3 + $0xf8] sm:$0xff]  ;;  %v135_v39 = vld [vmem:[#allocation3 + $0x110] sm:$0xff]  ;;  %v118_v40 = vld [vmem:[#allocation3 + $0x88] sm:$0xff]  ;;  %v6601_v42 = vpack.c.bf16 %v128_v35, %v125_v32 }
  0x52   :  { %6618 = vmatpush3.bf16.msra.mxu1 %v6615_v28  ;;  %5696 = vmatprep.mubr.f32.mxu1 %v8490_v36  ;;  %v6623_v41 = vpack.c.bf16 %v118_v40, %v115_v37  ;;  %v121_v43 = vld [vmem:[#allocation3 + $0xa0] sm:$0xff]  ;;  %v124_v44 = vld [vmem:[#allocation3 + $0xb8] sm:$0xff]  ;;  %v6603_v45 = vpack.c.bf16 %v135_v39, %v132_v38  ;;  %v131_v46 = vld [vmem:[#allocation3 + $0xf0] sm:$0xff]  ;;  %v10008_v40 = vmov 0.0|0.0  }
  0x53   :  { %6620 = vmatprep.subr.bf16.mxu1 %v6619_v33  ;;  %v134_v47 = vld [vmem:[#allocation3 + $0x108] sm:$0xff]  ;;  %v141_v49 = vld [vmem:[#allocation3 + $0x140] sm:$0xff]  ;;  %v6627_v50 = vpack.c.bf16 %v124_v44, %v121_v43  ;;  %v127_v51 = vld [vmem:[#allocation3 + $0xd0] sm:$0xff] }
  0x54   :  { %6594 = vmatpush1.bf16.msra.mxu0 %v6593_v20  ;;  %v138_v48 = vld [vmem:[#allocation3 + $0x128] sm:$0xff]  ;;  %v6605_v53 = vpack.c.bf16 %v134_v47, %v131_v46  ;;  %v137_v55 = vld [vmem:[#allocation3 + $0x120] sm:$0xff]  ;;  %v140_v56 = vld [vmem:[#allocation3 + $0x138] sm:$0xff] }
  0x55   :  { %6596 = vmatprep.subr.bf16.mxu0 %v6595_v22  ;;  %v130_v52 = vld [vmem:[#allocation3 + $0xe8] sm:$0xff]  ;;  %v6607_v54 = vpack.c.bf16 %v141_v49, %v138_v48  ;;  %v144_v57 = vld [vmem:[#allocation3 + $0x158] sm:$0xff]  ;;  %v147_v58 = vld [vmem:[#allocation3 + $0x170] sm:$0xff]  ;;  %v6609_v62 = vpack.c.bf16 %v140_v56, %v137_v55 }
  0x56   :  { %6622 = vmatpush3.bf16.msra.mxu1 %v6619_v33  ;;  %v6631_v59 = vpack.c.bf16 %v130_v52, %v127_v51  ;;  %v133_v60 = vld [vmem:[#allocation3 + $0x100] sm:$0xff]  ;;  %v136_v61 = vld [vmem:[#allocation3 + $0x118] sm:$0xff]  ;;  %v6611_v63 = vpack.c.bf16 %v147_v58, %v144_v57  ;;  %v143_v1 = vld [vmem:[#allocation3 + $0x150] sm:$0xff] }
  0x57   :  { %6624 = vmatprep.subr.bf16.mxu1 %v6623_v41  ;;  %v146_v2 = vld [vmem:[#allocation3 + $0x168] sm:$0xff]  ;;  %v442_v4 = vld [vmem:[#allocation5 + $0x20] sm:$0xff]  ;;  %v6635_v5 = vpack.c.bf16 %v136_v61, %v133_v60  ;;  %v139_v6 = vld [vmem:[#allocation3 + $0x130] sm:$0xff] }
  0x58   :  { %6598 = vmatpush1.bf16.msra.mxu0 %v6597_v31  ;;  %v439_v3 = vld [vmem:[#allocation5 + $0x8] sm:$0xff]  ;;  %v6613_v8 = vpack.c.bf16 %v146_v2, %v143_v1  ;;  %v438_v10 = vld [vmem:[#allocation5] sm:$0xff]  ;;  %v441_v11 = vld [vmem:[#allocation5 + $0x18] sm:$0xff] }
  0x59   :  { %6600 = vmatprep.subr.bf16.mxu0 %v6599_v34  ;;  %v142_v7 = vld [vmem:[#allocation3 + $0x148] sm:$0xff]  ;;  %v8493_v9 = vpack.c.bf16 %v442_v4, %v439_v3  ;;  %v445_v12 = vld [vmem:[#allocation5 + $0x38] sm:$0xff]  ;;  %v448_v13 = vld [vmem:[#allocation5 + $0x50] sm:$0xff]  ;;  %v8495_v17 = vpack.c.bf16 %v441_v11, %v438_v10 }
  0x5a   :  { %6626 = vmatpush3.bf16.msra.mxu1 %v6623_v41  ;;  %v6639_v14 = vpack.c.bf16 %v142_v7, %v139_v6  ;;  %v145_v15 = vld [vmem:[#allocation3 + $0x160] sm:$0xff]  ;;  %v148_v16 = vld [vmem:[#allocation3 + $0x178] sm:$0xff]  ;;  %v8498_v18 = vpack.c.bf16 %v448_v13, %v445_v12  ;;  %v444_v19 = vld [vmem:[#allocation5 + $0x30] sm:$0xff] }
  0x5b   :  { %6628 = vmatprep.subr.bf16.mxu1 %v6627_v50  ;;  %v447_v20 = vld [vmem:[#allocation5 + $0x48] sm:$0xff]  ;;  %v454_v22 = vld [vmem:[#allocation5 + $0x80] sm:$0xff]  ;;  %v6643_v23 = vpack.c.bf16 %v148_v16, %v145_v15  ;;  %v453_v28 = vld [vmem:[#allocation5 + $0x78] sm:$0xff] }
  0x5c   :  { %6602 = vmatpush1.bf16.msra.mxu0 %v6601_v42  ;;  %v451_v21 = vld [vmem:[#allocation5 + $0x68] sm:$0xff]  ;;  %v8506_v25 = vpack.c.bf16 %v447_v20, %v444_v19  ;;  %v450_v27 = vld [vmem:[#allocation5 + $0x60] sm:$0xff]  ;;  %v457_v29 = vld [vmem:[#allocation5 + $0x98] sm:$0xff] }
  0x5d   :  { %6604 = vmatprep.subr.bf16.mxu0 %v6603_v45  ;;  %v94_v24 = vld [vmem:[%s9994_s0 + $0x8] sm:$0xff]  ;;  %v8509_v26 = vpack.c.bf16 %v454_v22, %v451_v21  ;;  %v460_v30 = vld [vmem:[#allocation5 + $0xb0] sm:$0xff]  ;;  %v8516_v34 = vpack.c.bf16 %v453_v28, %v450_v27  ;;  %v466_v39 = vld [vmem:[#allocation5 + $0xe0] sm:$0xff] }
  0x5e   :  { %6630 = vmatpush3.bf16.msra.mxu1 %v6627_v50  ;;  %v440_v31 = vld [vmem:[#allocation5 + $0x10] sm:$0xff]  ;;  %v443_v32 = vld [vmem:[#allocation5 + $0x28] sm:$0xff]  ;;  %v8519_v35 = vpack.c.bf16 %v460_v30, %v457_v29  ;;  %v446_v42 = vld [vmem:[#allocation5 + $0x40] sm:$0xff] }
  0x5f   :  { %6632 = vmatprep.subr.bf16.mxu1 %v6631_v59  ;;  %v95_v33 = vld [vmem:[%s9994_s0 + $0x10] sm:$0xff]  ;;  %v459_v37 = vld [vmem:[#allocation5 + $0xa8] sm:$0xff]  ;;  %v8522_v41 = vpack.c.bf16 %v443_v32, %v440_v31  ;;  %v449_v43 = vld [vmem:[#allocation5 + $0x58] sm:$0xff] }
  0x60   :  { %6606 = vmatpush1.bf16.msra.mxu0 %v6605_v53  ;;  %v463_v38 = vld [vmem:[#allocation5 + $0xc8] sm:$0xff]  ;;  %v96_v44 = vld [vmem:[%s9994_s0 + $0x18] sm:$0xff]  ;;  %v462_v47 = vld [vmem:[#allocation5 + $0xc0] sm:$0xff]  ;;  %v8535_v51 = vpack.c.bf16 %v449_v43, %v446_v42 }
  0x61   :  { %6608 = vmatprep.subr.bf16.mxu0 %v6607_v54  ;;  %v8532_v46 = vpack.c.bf16 %v466_v39, %v463_v38  ;;  %v465_v48 = vld [vmem:[#allocation5 + $0xd8] sm:$0xff]  ;;  %v472_v50 = vld [vmem:[#allocation5 + $0x110] sm:$0xff]  ;;  %v455_v53 = vld [vmem:[#allocation5 + $0x88] sm:$0xff] }
  0x62   :  { %6634 = vmatpush3.bf16.msra.mxu1 %v6631_v59  ;;  %v469_v49 = vld [vmem:[#allocation5 + $0xf8] sm:$0xff]  ;;  %v452_v52 = vld [vmem:[#allocation5 + $0x70] sm:$0xff]  ;;  %v97_v54 = vld [vmem:[%s9994_s0 + $0x20] sm:$0xff]  ;;  %v8543_v55 = vpack.c.bf16 %v465_v48, %v462_v47 }
  0x63   :  { %6636 = vmatprep.subr.bf16.mxu1 %v6635_v5  ;;  %v8546_v56 = vpack.c.bf16 %v472_v50, %v469_v49  ;;  %v468_v57 = vld [vmem:[#allocation5 + $0xf0] sm:$0xff]  ;;  %v471_v58 = vld [vmem:[#allocation5 + $0x108] sm:$0xff]  ;;  %v478_v60 = vld [vmem:[#allocation5 + $0x140] sm:$0xff]  ;;  %v8549_v61 = vpack.c.bf16 %v455_v53, %v452_v52 }
  0x64   :  { %6610 = vmatpush1.bf16.msra.mxu0 %v6609_v62  ;;  %v475_v59 = vld [vmem:[#allocation5 + $0x128] sm:$0xff]  ;;  %v458_v62 = vld [vmem:[#allocation5 + $0xa0] sm:$0xff]  ;;  %v8557_v2 = vpack.c.bf16 %v471_v58, %v468_v57  ;;  %v99_v3 = vld [vmem:[%s9994_s0 + $0x30] sm:$0xff] }
  0x65   :  { %6612 = vmatprep.subr.bf16.mxu0 %v6611_v63  ;;  %v461_v63 = vld [vmem:[#allocation5 + $0xb8] sm:$0xff]  ;;  %v98_v1 = vld [vmem:[%s9994_s0 + $0x28] sm:$0xff]  ;;  %v8563_v4 = vpack.c.bf16 %v478_v60, %v475_v59  ;;  %v464_v11 = vld [vmem:[#allocation5 + $0xd0] sm:$0xff] }
  0x66   :  { %6638 = vmatpush3.bf16.msra.mxu1 %v6635_v5  ;;  %v474_v5 = vld [vmem:[#allocation5 + $0x120] sm:$0xff]  ;;  %v477_v6 = vld [vmem:[#allocation5 + $0x138] sm:$0xff]  ;;  %v8566_v10 = vpack.c.bf16 %v461_v63, %v458_v62  ;;  %v467_v12 = vld [vmem:[#allocation5 + $0xe8] sm:$0xff] }
  0x67   :  { %6640 = vmatprep.subr.bf16.mxu1 %v6639_v14  ;;  %v481_v7 = vld [vmem:[#allocation5 + $0x158] sm:$0xff]  ;;  %v8571_v13 = vpack.c.bf16 %v477_v6, %v474_v5  ;;  %v480_v16 = vld [vmem:[#allocation5 + $0x150] sm:$0xff]  ;;  %v483_v19 = vld [vmem:[#allocation5 + $0x168] sm:$0xff]  ;;  %v8580_v20 = vpack.c.bf16 %v467_v12, %v464_v11 }
  0x68   :  { %6614 = vmatpush1.bf16.msra.mxu0 %v6613_v8  ;;  %v484_v8 = vld [vmem:[#allocation5 + $0x170] sm:$0xff]  ;;  %v470_v21 = vld [vmem:[#allocation5 + $0x100] sm:$0xff]  ;;  %v473_v22 = vld [vmem:[#allocation5 + $0x118] sm:$0xff] }
  0x69   :  { %6648 = vmatprep.subr.bf16.mxu0 %v8493_v9  ;;  %v8577_v15 = vpack.c.bf16 %v484_v8, %v481_v7  ;;  %v476_v27 = vld [vmem:[#allocation5 + $0x130] sm:$0xff]  ;;  %v479_v28 = vld [vmem:[#allocation5 + $0x148] sm:$0xff]  ;;  %v482_v30 = vld [vmem:[#allocation5 + $0x160] sm:$0xff] }
  0x6a   :  { %6642 = vmatpush3.bf16.msra.mxu1 %v6639_v14  ;;  %v100_v14 = vld [vmem:[%s9994_s0 + $0x38] sm:$0xff]  ;;  %v8597_v29 = vpack.c.bf16 %v479_v28, %v476_v27  ;;  %v648_v38 = vld [vmem:[#allocation7] sm:$0xff]  ;;  %v650_v42 = vld [vmem:[#allocation7 + $0x10] sm:$0xff] }
  0x6b   :  { %231 = vmatmul.mubr.f32.vlgmr.msra.gmra.mrb[0].mxu0 %v8490_v36  ;;  %6644 = vmatprep.subr.bf16.mxu1 %v6643_v23  ;;  %v456_v36 = vld [vmem:[#allocation5 + $0x90] sm:$0xff]  ;;  %v485_v31 = vld [vmem:[#allocation5 + $0x178] sm:$0xff]  ;;  %v657_v53 = vld [vmem:[#allocation7 + $0x48] sm:$0xff] }
  0x6c   :  { %6650 = vmatpush1.bf16.msra.mxu0 %v8495_v17  ;;  %236 = vmatprep.mubr.f32.mxu0 %v10006_v0  ;;  %v8529_v45 = vpack.c.bf16 %v459_v37, %v456_v36  ;;  %v8603_v32 = vpack.c.bf16 %v485_v31, %v482_v30  ;;  %v652_v36 = vld [vmem:[#allocation7 + $0x20] sm:$0xff]  ;;  %v651_v39 = vld [vmem:[#allocation7 + $0x18] sm:$0xff]  ;;  %v658_v49 = vld [vmem:[#allocation7 + $0x50] sm:$0xff] }
  0x6d   :  { %6652 = vmatprep.subr.bf16.mxu0 %v8498_v18  ;;  %v8613_v43 = vpack.c.bf16 %v651_v39, %v648_v38  ;;  %v655_v48 = vld [vmem:[#allocation7 + $0x38] sm:$0xff]  ;;  %v654_v52 = vld [vmem:[#allocation7 + $0x30] sm:$0xff]  ;;  %v661_v59 = vld [vmem:[#allocation7 + $0x68] sm:$0xff] }
  0x6e   :  { %6646 = vmatpush3.bf16.msra.mxu1 %v6643_v23  ;;  %v8587_v23 = vpack.c.bf16 %v483_v19, %v480_v16  ;;  %v8620_v50 = vpack.c.bf16 %v658_v49, %v655_v48  ;;  %v8623_v57 = vpack.c.bf16 %v657_v53, %v654_v52  ;;  %v659_v58 = vld [vmem:[#allocation7 + $0x58] sm:$0xff]  ;;  %v664_v60 = vld [vmem:[#allocation7 + $0x80] sm:$0xff]  ;;  %v662_v5 = vld [vmem:[#allocation7 + $0x70] sm:$0xff] }
  0x6f   :  { %237 = vmatmul.mubr.f32.gmra.mrb[2].mxu0 %v94_v24  ;;  %6679 = vmatprep.subr.bf16.mxu1 %v10008_v40  ;;  %v8628_v63 = vpack.c.bf16 %v664_v60, %v661_v59  ;;  %v665_v7 = vld [vmem:[#allocation7 + $0x88] sm:$0xff]  ;;  %v667_v11 = vld [vmem:[#allocation7 + $0x98] sm:$0xff]  ;;  %v670_v12 = vld [vmem:[#allocation7 + $0xb0] sm:$0xff] }
  0x70   :  { %6654 = vmatpush1.bf16.msra.mxu0 %v8506_v25  ;;  %242 = vmatprep.mubr.f32.mxu0 %v10006_v0  ;;  %v8636_v8 = vpack.c.bf16 %v665_v7, %v662_v5  ;;  %v666_v16 = vld [vmem:[#allocation7 + $0x90] sm:$0xff]  ;;  %v669_v19 = vld [vmem:[#allocation7 + $0xa8] sm:$0xff]  ;;  %v671_v27 = vld [vmem:[#allocation7 + $0xb8] sm:$0xff] }
  0x71   :  { %6656 = vmatprep.subr.bf16.mxu0 %v8509_v26  ;;  %5697 = vmatmul.mubr.f32.vlgmr.msra.gmra.mrb[0].mxu1 %v94_v24  ;;  %v8591_v24 = vpack.c.bf16 %v473_v22, %v470_v21  ;;  %v668_v21 = vld [vmem:[#allocation7 + $0xa0] sm:$0xff]  ;;  %v8643_v22 = vpack.c.bf16 %v669_v19, %v666_v16  ;;  %v673_v30 = vld [vmem:[#allocation7 + $0xc8] sm:$0xff]  ;;  %v675_v38 = vld [vmem:[#allocation7 + $0xd8] sm:$0xff] }
  0x72   :  { %6681 = vmatpush3.bf16.msra.mxu1 %v8522_v41  ;;  %5699 = vmatprep.mubr.f32.mxu1 %v95_v33  ;;  %v8646_v28 = vpack.c.bf16 %v671_v27, %v668_v21  ;;  %v676_v31 = vld [vmem:[#allocation7 + $0xe0] sm:$0xff]  ;;  %v674_v39 = vld [vmem:[#allocation7 + $0xd0] sm:$0xff]  ;;  %v679_v49 = vld [vmem:[#allocation7 + $0xf8] sm:$0xff] }
  0x73   :  { %243 = vmatmul.mubr.f32.gmra.mrb[4].mxu0 %v95_v33  ;;  %6682 = vmatprep.subr.bf16.mxu1 %v10008_v40  ;;  %v649_v33 = vld [vmem:[#allocation7 + $0x8] sm:$0xff]  ;;  %v682_v52 = vld [vmem:[#allocation7 + $0x110] sm:$0xff]  ;;  %v680_v59 = vld [vmem:[#allocation7 + $0x100] sm:$0xff] }
  0x74   :  { %6658 = vmatpush1.bf16.msra.mxu0 %v8516_v34  ;;  %248 = vmatprep.mubr.f32.mxu0 %v10006_v0  ;;  %v8611_v37 = vpack.c.bf16 %v652_v36, %v649_v33  ;;  %v8650_v33 = vpack.c.bf16 %v676_v31, %v673_v30  ;;  %v672_v36 = vld [vmem:[#allocation7 + $0xc0] sm:$0xff]  ;;  %v678_v53 = vld [vmem:[#allocation7 + $0xf0] sm:$0xff]  ;;  %v683_v60 = vld [vmem:[#allocation7 + $0x118] sm:$0xff] }
  0x75   :  { %6660 = vmatprep.subr.bf16.mxu0 %v8519_v35  ;;  %5700 = vmatmul.mubr.f32.gmra.mrb[2].mxu1 %v96_v44  ;;  %v685_v5 = vld [vmem:[#allocation7 + $0x128] sm:$0xff]  ;;  %v688_v7 = vld [vmem:[#allocation7 + $0x140] sm:$0xff]  ;;  %v687_v16 = vld [vmem:[#allocation7 + $0x138] sm:$0xff] }
  0x76   :  { %6684 = vmatpush3.bf16.msra.mxu1 %v8535_v51  ;;  %5702 = vmatprep.mubr.f32.mxu1 %v97_v54  ;;  %v686_v19 = vld [vmem:[#allocation7 + $0x130] sm:$0xff]  ;;  %v689_v21 = vld [vmem:[#allocation7 + $0x148] sm:$0xff]  ;;  %v691_v27 = vld [vmem:[#allocation7 + $0x158] sm:$0xff] }
  0x77   :  { %249 = vmatmul.mubr.f32.gmra.mrb[6].mxu0 %v96_v44  ;;  %6685 = vmatprep.subr.bf16.mxu1 %v10008_v40  ;;  %v653_v44 = vld [vmem:[#allocation7 + $0x28] sm:$0xff]  ;;  %v694_v30 = vld [vmem:[#allocation7 + $0x170] sm:$0xff] }
  0x78   :  { %6662 = vmatpush1.bf16.msra.mxu0 %v8529_v45  ;;  %254 = vmatprep.mubr.f32.mxu0 %v10006_v0  ;;  %v8616_v47 = vpack.c.bf16 %v653_v44, %v650_v42  ;;  %v8653_v42 = vpack.c.bf16 %v675_v38, %v672_v36  ;;  %v677_v44 = vld [vmem:[#allocation7 + $0xe8] sm:$0xff]  ;;  %v8675_v36 = vpack.c.bf16 %v689_v21, %v686_v19 }
  0x79   :  { %6664 = vmatprep.subr.bf16.mxu0 %v8532_v46  ;;  %5703 = vmatmul.mubr.f32.gmra.mrb[4].mxu1 %v98_v1  ;;  %v8656_v48 = vpack.c.bf16 %v677_v44, %v674_v39  ;;  %v8677_v38 = vpack.c.bf16 %v694_v30, %v691_v27  ;;  %v690_v39 = vld [vmem:[#allocation7 + $0x150] sm:$0xff]  ;;  %v693_v44 = vld [vmem:[#allocation7 + $0x168] sm:$0xff] }
  0x7a   :  { %6687 = vmatpush3.bf16.msra.mxu1 %v8549_v61  ;;  %5705 = vmatprep.mubr.f32.mxu1 %v99_v3 }
  0x7b   :  { %255 = vmatmul.mubr.f32.gmra.mrb[8].mxu0 %v97_v54  ;;  %6688 = vmatprep.subr.bf16.mxu1 %v10008_v40  ;;  %v656_v54 = vld [vmem:[#allocation7 + $0x40] sm:$0xff] }
  0x7c   :  { %6666 = vmatpush1.bf16.msra.mxu0 %v8543_v55  ;;  %260 = vmatprep.mubr.f32.mxu0 %v10006_v0  ;;  %v8626_v62 = vpack.c.bf16 %v659_v58, %v656_v54  ;;  %v8659_v54 = vpack.c.bf16 %v682_v52, %v679_v49  ;;  %v681_v58 = vld [vmem:[#allocation7 + $0x108] sm:$0xff]  ;;  %v692_v49 = vld [vmem:[#allocation7 + $0x160] sm:$0xff]  ;;  %v695_v52 = vld [vmem:[#allocation7 + $0x178] sm:$0xff] }
  0x7d   :  { %6668 = vmatprep.subr.bf16.mxu0 %v8546_v56  ;;  %5706 = vmatmul.mubr.f32.gmra.mrb[6].mxu1 %v100_v14 }
  0x7e   :  { %6690 = vmatpush3.bf16.msra.mxu1 %v8566_v10  ;;  %5740 = vmatprep.mubr.msk.f32.mxu1 %vm8351_vm0, %v10006_v0 }
  0x7f   :  { %261 = vmatmul.mubr.f32.gmra.mrb[10].mxu0 %v98_v1  ;;  %6691 = vmatprep.subr.bf16.mxu1 %v10008_v40  ;;  %v660_v1 = vld [vmem:[#allocation7 + $0x60] sm:$0xff] }
  0x80   :  { %6670 = vmatpush1.bf16.msra.mxu0 %v8557_v2  ;;  %266 = vmatprep.mubr.f32.mxu0 %v10006_v0 }
  0x81   :  { %6672 = vmatprep.subr.bf16.mxu0 %v8563_v4 }
  0x82   :  { %6693 = vmatpush3.bf16.msra.mxu1 %v8580_v20 }
  0x83   :  { %267 = vmatmul.mubr.f32.gmra.mrb[12].mxu0 %v99_v3  ;;  %6694 = vmatprep.subr.bf16.mxu1 %v10008_v40  ;;  %v663_v3 = vld [vmem:[#allocation7 + $0x78] sm:$0xff] }
  0x84   :  { %6674 = vmatpush1.bf16.msra.mxu0 %v8571_v13  ;;  %272 = vmatprep.mubr.f32.mxu0 %v10006_v0  ;;  %v8634_v6 = vpack.c.bf16 %v663_v3, %v660_v1  ;;  %v8662_v1 = vpack.c.bf16 %v681_v58, %v678_v53  ;;  %v8664_v3 = vpack.c.bf16 %v683_v60, %v680_v59  ;;  %v151_v59 = vlaneseq }
  0x85   :  { %6676 = vmatprep.subr.bf16.mxu0 %v8577_v15  ;;  %v8681_v53 = vpack.c.bf16 %v693_v44, %v690_v39  ;;  %v8685_v58 = vpack.c.bf16 %v695_v52, %v692_v49 }
  0x86   :  { %6696 = vmatpush3.bf16.msra.mxu1 %v8591_v24  ;;  %v8692_v60 = vshrl.u32 %v151_v59, 7 }
  0x87   :  { %273 = vmatmul.mubr.f32.gmra.mrb[14].mxu0 %v100_v14  ;;  %6697 = vmatprep.subr.bf16.mxu1 %v10008_v40  ;;  %v8640_v14 = vpack.c.bf16 %v670_v12, %v667_v11  ;;  %v684_v11 = vld [vmem:[#allocation7 + $0x120] sm:$0xff]  ;;  %v8668_v12 = vpack.c.bf16 %v688_v7, %v685_v5  ;;  %10035 = vst [vmem:[#allocation13_spill] sm:$0xff] %v8685_v58 }
  0x88   :  { %6678 = vmatpush1.bf16.msra.mxu0 %v8587_v23  ;;  %550 = vmatprep.mubr.f32.mxu0 %v10006_v0  ;;  %v8671_v31 = vpack.c.bf16 %v687_v16, %v684_v11  ;;  %10036 = vst [vmem:[#allocation14_spill] sm:$0xff] %v8692_v60  ;;  %v10010_v5 = vsub.s32 2, %v8692_v60  ;;  %v149_v7 = vld [vmem:[%s9997_s3] sm:$0x7] }
  0x89   :  { %6704 = vmatprep.subr.bf16.mxu0 %v8611_v37 }
  0x8a   :  { %6699 = vmatpush3.bf16.msra.mxu1 %v8597_v29  ;;  %v162_v11 = vrot.slane %v149_v7, %v10010_v5 }
  0x8b   :  { %551 = vmatmul.mubr.f32.vlgmr.msra.gmra.mrb[0].mxu0 %v10006_v0  ;;  %6700 = vmatprep.subr.bf16.mxu1 %v10008_v40 }
  0x8c   :  { %760 = vmatprep.mubr.f32.mxu0 %v10006_v0  ;;  %6706 = vmatpush1.bf16.msra.mxu0 %v8613_v43 }
  0x8d   :  { %6708 = vmatprep.subr.bf16.mxu0 %v8620_v50 }
  0x8e   :  { %6702 = vmatpush3.bf16.msra.mxu1 %v8603_v32 }
  0x8f   :  { %6735 = vmatprep.subr.bf16.mxu1 %v10008_v40 }
  0x90   :  { %6710 = vmatpush1.bf16.msra.mxu0 %v8623_v57 }
  0x91   :  { %5741 = vmatmul.mubr.f32.vlgmr.msra.gmra.mrb[8].mxu1 %v10006_v0  ;;  %6712 = vmatprep.subr.bf16.mxu0 %v8628_v63 }
  0x92   :  { %5775 = vmatprep.mubr.msk.f32.mxu1 %vm8351_vm0, %v10006_v0  ;;  %6737 = vmatpush3.bf16.msra.mxu1 %v8616_v47 }
  0x93   :  { %6738 = vmatprep.subr.bf16.mxu1 %v10008_v40 }
  0x94   :  { %6714 = vmatpush1.bf16.msra.mxu0 %v8634_v6 }
  0x95   :  { %6716 = vmatprep.subr.bf16.mxu0 %v8640_v14 }
  0x96   :  { %6740 = vmatpush3.bf16.msra.mxu1 %v8626_v62 }
  0x97   :  { %6741 = vmatprep.subr.bf16.mxu1 %v10008_v40 }
  0x98   :  { %6718 = vmatpush1.bf16.msra.mxu0 %v8643_v22 }
  0x99   :  { %6720 = vmatprep.subr.bf16.mxu0 %v8650_v33 }
  0x9a   :  { %6743 = vmatpush3.bf16.msra.mxu1 %v8636_v8 }
  0x9b   :  { %6744 = vmatprep.subr.bf16.mxu1 %v10008_v40 }
  0x9c   :  { %6722 = vmatpush1.bf16.msra.mxu0 %v8653_v42 }
  0x9d   :  { %6724 = vmatprep.subr.bf16.mxu0 %v8659_v54 }
  0x9e   :  { %6746 = vmatpush3.bf16.msra.mxu1 %v8646_v28 }
  0x9f   :  { %6747 = vmatprep.subr.bf16.mxu1 %v10008_v40 }
  0xa0   :  { %6726 = vmatpush1.bf16.msra.mxu0 %v8662_v1 }
  0xa1   :  { %6728 = vmatprep.subr.bf16.mxu0 %v8668_v12 }
  0xa2   :  { %6749 = vmatpush3.bf16.msra.mxu1 %v8656_v48 }
  0xa3   :  { %6750 = vmatprep.subr.bf16.mxu1 %v10008_v40 }
  0xa4   :  { %6730 = vmatpush1.bf16.msra.mxu0 %v8671_v31 }
  0xa5   :  { %6732 = vmatprep.subr.bf16.mxu0 %v8677_v38 }
  0xa6   :  { %6752 = vmatpush3.bf16.msra.mxu1 %v8664_v3 }
  0xa7   :  { %6753 = vmatprep.subr.bf16.mxu1 %v10008_v40 }
  0xa8   :  { %6734 = vmatpush1.bf16.msra.mxu0 %v8681_v53 }
  0xa9   :  { %6760 = vmatprep.subr.bf16.mxu0 %v8493_v9 }
  0xaa   :  { %6755 = vmatpush3.bf16.msra.mxu1 %v8675_v36 }
  0xab   :  { %6756 = vmatprep.subr.bf16.mxu1 %v10008_v40 }
  0xae   :  { %6758 = vmatpush3.bf16.msra.mxu1 %v8685_v58 }
  0xaf   :  { %6791 = vmatprep.subr.bf16.mxu1 %v10008_v40 }
 0x144   :  { %v5698_v16 = vpop.f32.mrb[0].mxu1 }
 0x145   :  { %v8700_v19 = vadd.f32 %v5698_v16, %v162_v11  ;;  %v345_v21 = vpop.f32.mrb[1].mxu1  ;;  %v10013_v16 = vsub.s32 0, %v8692_v60 }
 0x147   :  { %10037 = vst [vmem:[#allocation15_spill] sm:$0xff] %v8700_v19 }
 0x148   :  { %v5701_v27 = vpop.f32.mrb[2].mxu1 }
 0x149   :  { %v8702_v9 = vadd.f32 %v5701_v27, %v162_v11  ;;  %v355_v30 = vpop.f32.mrb[3].mxu1  ;;  %v8717_v27 = vrot.slane %v149_v7, %v10013_v16 }
 0x14a   :  { %v8704_v39 = vadd.f32 %v355_v30, %v162_v11 }
 0x14b   :  { %10038 = vst [vmem:[#allocation16_spill] sm:$0xff] %v8702_v9 }
 0x14c   :  { %10039 = vst [vmem:[#allocation17_spill] sm:$0xff] %v8704_v39  ;;  %v5704_v44 = vpop.f32.mrb[4].mxu1 }
 0x14d   :  { %v8706_v49 = vadd.f32 %v5704_v44, %v162_v11  ;;  %v365_v52 = vpop.f32.mrb[5].mxu1  ;;  %v10016_v44 = vsub.s32 1, %v8692_v60 }
 0x14e   :  { %v8708_v59 = vadd.f32 %v365_v52, %v162_v11 }
 0x14f   :  { %10040 = vst [vmem:[#allocation18_spill] sm:$0xff] %v8706_v49 }
 0x150   :  { %10041 = vst [vmem:[#allocation19_spill] sm:$0xff] %v8708_v59  ;;  %v5707_v0 = vpop.f32.mrb[6].mxu1 }
 0x151   :  { %v8710_v40 = vadd.f32 %v5707_v0, %v162_v11  ;;  %v375_v5 = vpop.f32.mrb[7].mxu1  ;;  %v8723_v0 = vrot.slane %v149_v7, %v10016_v44  ;;  %v346_v7 = vadd.f32 %v345_v21, %v162_v11 }
 0x152   :  { %v8712_v58 = vadd.f32 %v375_v5, %v162_v11 }
 0x153   :  { %10042 = vst [vmem:[#allocation20_spill] sm:$0xff] %v8710_v40 }
 0x154   :  { %10043 = vst [vmem:[#allocation21_spill] sm:$0xff] %v8712_v58 }
 0x15e   :  { %v552_v30 = vpop.f32.mrb[0].mxu0 }
 0x15f   :  { %v8015_v9 = vadd.f32 %v552_v30, %v8717_v27  ;;  %v554_v49 = vpop.f32.mrb[1].mxu0  ;;  %v8729_v30 = vld [vmem:[%s9998_s4] ss:$0 sm:$0xff] }
 0x160   :  { %v8016_v5 = vadd.f32 %v554_v49, %v8723_v0 }
 0x161   :  { %v5181_v52 = vmul.f32 -1.442695, %v8015_v9 }
 0x162   :  { %v5182_v59 = vmul.f32 -1.442695, %v8016_v5 }
 0x163   :  { %8088 = vpow2.f32 %v5181_v52 }
 0x164   :  { %v623_v40 = vpop.f32.mrb[8].mxu1  ;;  %8090 = vpow2.f32 %v5182_v59 }
 0x165   :  { %v5742_v58 = vpop.f32.mrb[9].mxu1  ;;  %v641_v9 = vadd.f32 %v8729_v30, %v623_v40  ;;  %v10044_v40 = vmov 0.0|0.0  }
 0x16d   :  { %v8089_v39 = vpop.eup %8088 }
 0x16e   :  { %v631_v16 = vadd.f32 1.0, %v8089_v39  ;;  %v8091_v52 = vpop.eup %8090 }
 0x16f   :  { %v638_v19 = vadd.f32 1.0, %v8091_v52  ;;  %v10048_v52 = vld [vmem:[#allocation15_spill] sm:$0xff] }
 0x170   :  { %8092 = vrcp.f32 %v631_v16 }
 0x17a   :  { %v8093_v60 = vpop.eup %8092 }
 0x17b   :  { %v642_v44 = vmul.f32 %v8093_v60, %v641_v9  ;;  %v10045_v60 = vmov 0.0  }
 0x17d   :  { %v643_v49 = vadd.f32 %v642_v44, %v346_v7 }
 0x17f   :  { %8094 = vtanh.f32 %v643_v49 }
 0x180   :  { %8096 = vrcp.f32 %v638_v19 }
 0x189   :  { %v8095_v58 = vpop.eup %8094 }
 0x18a   :  { %v645_v5 = vsub.f32 0.0, %v8095_v58  ;;  %v8097_v39 = vpop.eup %8096 }
 0x18c   :  { %v646_v59 = vmul.f32 %v8097_v39, %v645_v5  ;;  %v1254_v39 = vld [vmem:[#allocation5] sm:$0xff] }
 0x18e   :  { %v8732_v16 = vadd.f32 %v8095_v58, %v646_v59  ;;  %v1257_v59 = vld [vmem:[#allocation5 + $0x18] sm:$0xff] }
 0x190   :  { %761 = vmatmul.mubr.f32.vlgmr.msra.gmra.mrb[16].mxu0 %v8732_v16  ;;  %5776 = vmatmul.mubr.f32.vlgmr.msra.gmra.mrb[10].mxu1 %v8732_v16 }
 0x191   :  { %6762 = vmatpush1.bf16.msra.mxu0 %v8495_v17  ;;  %6793 = vmatpush3.bf16.msra.mxu1 %v8522_v41  ;;  %v10046_v17 = vld [vmem:[#allocation13_spill] sm:$0xff] }
 0x192   :  { %6764 = vmatprep.subr.bf16.mxu0 %v8498_v18  ;;  %6794 = vmatprep.subr.bf16.mxu1 %v10044_v40  ;;  %v1255_v18 = vld [vmem:[#allocation5 + $0x8] sm:$0xff] }
 0x193   :  { %958 = vmatprep.mubr.f32.mxu0 %v10045_v60  ;;  %5810 = vmatprep.mubr.msk.f32.mxu1 %vm8351_vm0, %v10045_v60 }
 0x195   :  { %6766 = vmatpush1.bf16.msra.mxu0 %v8506_v25  ;;  %6796 = vmatpush3.bf16.msra.mxu1 %v8535_v51  ;;  %v1258_v25 = vld [vmem:[#allocation5 + $0x20] sm:$0xff] }
 0x196   :  { %6768 = vmatprep.subr.bf16.mxu0 %v8509_v26  ;;  %6797 = vmatprep.subr.bf16.mxu1 %v10044_v40  ;;  %v8807_v26 = vpack.c.bf16 %v1258_v25, %v1255_v18  ;;  %v1261_v25 = vld [vmem:[#allocation5 + $0x38] sm:$0xff] }
 0x199   :  { %6770 = vmatpush1.bf16.msra.mxu0 %v8516_v34  ;;  %6799 = vmatpush3.bf16.msra.mxu1 %v8549_v61 }
 0x19a   :  { %6772 = vmatprep.subr.bf16.mxu0 %v8519_v35  ;;  %6800 = vmatprep.subr.bf16.mxu1 %v10044_v40 }
 0x19d   :  { %6774 = vmatpush1.bf16.msra.mxu0 %v8529_v45  ;;  %6802 = vmatpush3.bf16.msra.mxu1 %v8566_v10 }
 0x19e   :  { %6776 = vmatprep.subr.bf16.mxu0 %v8532_v46  ;;  %6803 = vmatprep.subr.bf16.mxu1 %v10044_v40 }
 0x1a1   :  { %6778 = vmatpush1.bf16.msra.mxu0 %v8543_v55  ;;  %6805 = vmatpush3.bf16.msra.mxu1 %v8580_v20 }
 0x1a2   :  { %6780 = vmatprep.subr.bf16.mxu0 %v8546_v56  ;;  %6806 = vmatprep.subr.bf16.mxu1 %v10044_v40 }
 0x1a5   :  { %6782 = vmatpush1.bf16.msra.mxu0 %v8557_v2  ;;  %6808 = vmatpush3.bf16.msra.mxu1 %v8591_v24 }
 0x1a6   :  { %6784 = vmatprep.subr.bf16.mxu0 %v8563_v4  ;;  %6809 = vmatprep.subr.bf16.mxu1 %v10044_v40 }
 0x1a9   :  { %6786 = vmatpush1.bf16.msra.mxu0 %v8571_v13  ;;  %6811 = vmatpush3.bf16.msra.mxu1 %v8597_v29 }
 0x1aa   :  { %6788 = vmatprep.subr.bf16.mxu0 %v8577_v15  ;;  %6812 = vmatprep.subr.bf16.mxu1 %v10044_v40 }
 0x1ad   :  { %6790 = vmatpush1.bf16.msra.mxu0 %v8587_v23  ;;  %6814 = vmatpush3.bf16.msra.mxu1 %v8603_v32 }
 0x1ae   :  { %6816 = vmatprep.subr.bf16.mxu0 %v8611_v37  ;;  %6847 = vmatprep.subr.bf16.mxu1 %v10044_v40 }
 0x1b0   :  { %959 = vmatmul.mubr.f32.vlgmr.msra.gmra.mrb[2].mxu0 %v8732_v16  ;;  %5811 = vmatmul.mubr.f32.vlgmr.msra.gmra.mrb[12].mxu1 %v8732_v16 }
 0x1b1   :  { %6818 = vmatpush1.bf16.msra.mxu0 %v8613_v43  ;;  %6849 = vmatpush3.bf16.msra.mxu1 %v8616_v47 }
 0x1b2   :  { %6820 = vmatprep.subr.bf16.mxu0 %v8620_v50  ;;  %6850 = vmatprep.subr.bf16.mxu1 %v10044_v40 }
 0x1b3   :  { %1168 = vmatprep.mubr.f32.mxu0 %v10045_v60  ;;  %5845 = vmatprep.mubr.msk.f32.mxu1 %vm8351_vm0, %v10045_v60 }
 0x1b5   :  { %6822 = vmatpush1.bf16.msra.mxu0 %v8623_v57  ;;  %6852 = vmatpush3.bf16.msra.mxu1 %v8626_v62 }
 0x1b6   :  { %6824 = vmatprep.subr.bf16.mxu0 %v8628_v63  ;;  %6853 = vmatprep.subr.bf16.mxu1 %v10044_v40 }
 0x1b9   :  { %6826 = vmatpush1.bf16.msra.mxu0 %v8634_v6  ;;  %6855 = vmatpush3.bf16.msra.mxu1 %v8636_v8 }
 0x1ba   :  { %6828 = vmatprep.subr.bf16.mxu0 %v8640_v14  ;;  %6856 = vmatprep.subr.bf16.mxu1 %v10044_v40 }
 0x1bd   :  { %6830 = vmatpush1.bf16.msra.mxu0 %v8643_v22  ;;  %6858 = vmatpush3.bf16.msra.mxu1 %v8646_v28 }
 0x1be   :  { %6832 = vmatprep.subr.bf16.mxu0 %v8650_v33  ;;  %6859 = vmatprep.subr.bf16.mxu1 %v10044_v40 }
 0x1c1   :  { %6834 = vmatpush1.bf16.msra.mxu0 %v8653_v42  ;;  %6861 = vmatpush3.bf16.msra.mxu1 %v8656_v48 }
 0x1c2   :  { %6836 = vmatprep.subr.bf16.mxu0 %v8659_v54  ;;  %6862 = vmatprep.subr.bf16.mxu1 %v10044_v40 }
 0x1c5   :  { %6838 = vmatpush1.bf16.msra.mxu0 %v8662_v1  ;;  %6864 = vmatpush3.bf16.msra.mxu1 %v8664_v3 }
 0x1c6   :  { %6840 = vmatprep.subr.bf16.mxu0 %v8668_v12  ;;  %6865 = vmatprep.subr.bf16.mxu1 %v10044_v40 }
 0x1c9   :  { %6842 = vmatpush1.bf16.msra.mxu0 %v8671_v31  ;;  %6867 = vmatpush3.bf16.msra.mxu1 %v8675_v36 }
 0x1ca   :  { %6844 = vmatprep.subr.bf16.mxu0 %v8677_v38  ;;  %6868 = vmatprep.subr.bf16.mxu1 %v10044_v40 }
 0x1cd   :  { %6846 = vmatpush1.bf16.msra.mxu0 %v8681_v53  ;;  %6870 = vmatpush3.bf16.msra.mxu1 %v10046_v17 }
 0x1ce   :  { %6903 = vmatprep.subr.bf16.mxu1 %v10044_v40  ;;  %6872 = vmatprep.subr.bf16.mxu0 %v8807_v26 }
 0x263   :  { %v8810_v34 = vpop.f32.mrb[10].mxu1 }
 0x264   :  { %10047 = vst [vmem:[#allocation13_spill] sm:$0xff] %v8810_v34  ;;  %v5777_v35 = vpop.f32.mrb[11].mxu1 }
 0x265   :  { %v1264_v35 = vld [vmem:[#allocation5 + $0x50] sm:$0xff] }
 0x283   :  { %v960_v45 = vpop.f32.mrb[2].mxu0  ;;  %v1031_v46 = vpop.f32.mrb[12].mxu1 }
 0x284   :  { %v8017_v55 = vadd.f32 %v960_v45, %v8717_v27  ;;  %v962_v56 = vpop.f32.mrb[3].mxu0  ;;  %v5812_v2 = vpop.f32.mrb[13].mxu1  ;;  %v1049_v21 = vadd.f32 %v8729_v30, %v1031_v46  ;;  %v8821_v46 = vpack.c.bf16 %v1264_v35, %v1261_v25  ;;  %v1288_v25 = vld [vmem:[#allocation5 + $0x110] sm:$0xff] }
 0x285   :  { %v8018_v13 = vadd.f32 %v962_v56, %v8723_v0  ;;  %v1260_v2 = vld [vmem:[#allocation5 + $0x30] sm:$0xff] }
 0x286   :  { %v5183_v4 = vmul.f32 -1.442695, %v8017_v55  ;;  %v8817_v55 = vpack.c.bf16 %v1257_v59, %v1254_v39  ;;  %v1278_v39 = vld [vmem:[#allocation5 + $0xc0] sm:$0xff]  ;;  %v1281_v59 = vld [vmem:[#allocation5 + $0xd8] sm:$0xff] }
 0x287   :  { %v5184_v15 = vmul.f32 -1.442695, %v8018_v13  ;;  %v1267_v13 = vld [vmem:[#allocation5 + $0x68] sm:$0xff]  ;;  %v8854_v35 = vpack.c.bf16 %v1281_v59, %v1278_v39  ;;  %v1670_v39 = vld [vmem:[#allocation5 + $0x40] sm:$0xff]  ;;  %v1673_v59 = vld [vmem:[#allocation5 + $0x58] sm:$0xff] }
 0x288   :  { %8098 = vpow2.f32 %v5183_v4  ;;  %v1263_v4 = vld [vmem:[#allocation5 + $0x48] sm:$0xff] }
 0x289   :  { %8100 = vpow2.f32 %v5184_v15  ;;  %v1270_v15 = vld [vmem:[#allocation5 + $0x80] sm:$0xff] }
 0x292   :  { %v8099_v23 = vpop.eup %8098 }
 0x293   :  { %v1039_v11 = vadd.f32 1.0, %v8099_v23  ;;  %v8101_v19 = vpop.eup %8100  ;;  %v8831_v23 = vpack.c.bf16 %v1270_v15, %v1267_v13  ;;  %v1294_v13 = vld [vmem:[#allocation5 + $0x140] sm:$0xff] }
 0x294   :  { %v1046_v49 = vadd.f32 1.0, %v8101_v19  ;;  %v1269_v19 = vld [vmem:[#allocation5 + $0x78] sm:$0xff] }
 0x295   :  { %8102 = vrcp.f32 %v1039_v11  ;;  %v1266_v11 = vld [vmem:[#allocation5 + $0x60] sm:$0xff] }
 0x29f   :  { %v8103_v44 = vpop.eup %8102 }
 0x2a0   :  { %v1050_v9 = vmul.f32 %v8103_v44, %v1049_v21  ;;  %v1273_v21 = vld [vmem:[#allocation5 + $0x98] sm:$0xff]  ;;  %v1276_v44 = vld [vmem:[#allocation5 + $0xb0] sm:$0xff] }
 0x2a2   :  { %v1051_v7 = vadd.f32 %v1050_v9, %v10048_v52  ;;  %v8842_v9 = vpack.c.bf16 %v1276_v44, %v1273_v21  ;;  %v1272_v52 = vld [vmem:[#allocation5 + $0x90] sm:$0xff]  ;;  %v1297_v21 = vld [vmem:[#allocation5 + $0x158] sm:$0xff] }
 0x2a3   :  { %v1300_v44 = vld [vmem:[#allocation5 + $0x170] sm:$0xff] }
 0x2a4   :  { %8104 = vtanh.f32 %v1051_v7  ;;  %v1275_v7 = vld [vmem:[#allocation5 + $0xa8] sm:$0xff] }
 0x2a5   :  { %8106 = vrcp.f32 %v1046_v49  ;;  %v1279_v49 = vld [vmem:[#allocation5 + $0xc8] sm:$0xff] }
 0x2ae   :  { %v8105_v58 = vpop.eup %8104 }
 0x2af   :  { %v1053_v5 = vsub.f32 %v8732_v16, %v8105_v58  ;;  %v8107_v18 = vpop.eup %8106  ;;  %v8827_v16 = vpack.c.bf16 %v1263_v4, %v1260_v2  ;;  %v1287_v2 = vld [vmem:[#allocation5 + $0x108] sm:$0xff] }
 0x2b0   :  { %v1291_v4 = vld [vmem:[#allocation5 + $0x128] sm:$0xff] }
 0x2b1   :  { %v1054_v45 = vmul.f32 %v8107_v18, %v1053_v5  ;;  %v8846_v5 = vpack.c.bf16 %v1275_v7, %v1272_v52  ;;  %v1285_v18 = vld [vmem:[#allocation5 + $0xf8] sm:$0xff]  ;;  %v1296_v7 = vld [vmem:[#allocation5 + $0x150] sm:$0xff] }
 0x2b3   :  { %v8819_v56 = vadd.f32 %v8105_v58, %v1054_v45  ;;  %v1282_v58 = vld [vmem:[#allocation5 + $0xe0] sm:$0xff]  ;;  %v1284_v45 = vld [vmem:[#allocation5 + $0xf0] sm:$0xff] }
 0x2b4   :  { %v8862_v15 = vpack.c.bf16 %v1287_v2, %v1284_v45  ;;  %v1682_v2 = vld [vmem:[#allocation5 + $0xa0] sm:$0xff] }
 0x2b5   :  { %1169 = vmatmul.mubr.f32.vlgmr.msra.gmra.mrb[18].mxu0 %v8819_v56  ;;  %5846 = vmatmul.mubr.f32.vlgmr.msra.gmra.mrb[14].mxu1 %v8819_v56 }
 0x2b6   :  { %6874 = vmatpush1.bf16.msra.mxu0 %v8817_v55  ;;  %6905 = vmatpush3.bf16.msra.mxu1 %v8522_v41  ;;  %v8838_v41 = vpack.c.bf16 %v1269_v19, %v1266_v11  ;;  %v1290_v11 = vld [vmem:[#allocation5 + $0x120] sm:$0xff]  ;;  %v1293_v19 = vld [vmem:[#allocation5 + $0x138] sm:$0xff] }
 0x2b7   :  { %6876 = vmatprep.subr.bf16.mxu0 %v8821_v46  ;;  %6906 = vmatprep.subr.bf16.mxu1 %v10044_v40  ;;  %v8870_v52 = vpack.c.bf16 %v1293_v19, %v1290_v11  ;;  %v1688_v11 = vld [vmem:[#allocation5 + $0xd0] sm:$0xff]  ;;  %v1691_v19 = vld [vmem:[#allocation5 + $0xe8] sm:$0xff] }
 0x2b8   :  { %1366 = vmatprep.mubr.f32.mxu0 %v10045_v60  ;;  %5880 = vmatprep.mubr.msk.f32.mxu1 %vm8351_vm0, %v10045_v60 }
 0x2ba   :  { %6878 = vmatpush1.bf16.msra.mxu0 %v8827_v16  ;;  %6908 = vmatpush3.bf16.msra.mxu1 %v8535_v51  ;;  %v8850_v51 = vpack.c.bf16 %v1282_v58, %v1279_v49  ;;  %v1299_v49 = vld [vmem:[#allocation5 + $0x168] sm:$0xff] }
 0x2bb   :  { %6880 = vmatprep.subr.bf16.mxu0 %v8831_v23  ;;  %6909 = vmatprep.subr.bf16.mxu1 %v10044_v40  ;;  %v8878_v58 = vpack.c.bf16 %v1299_v49, %v1296_v7  ;;  %v1697_v7 = vld [vmem:[#allocation5 + $0x118] sm:$0xff] }
 0x2be   :  { %6882 = vmatpush1.bf16.msra.mxu0 %v8838_v41  ;;  %6911 = vmatpush3.bf16.msra.mxu1 %v8549_v61  ;;  %v8858_v61 = vpack.c.bf16 %v1288_v25, %v1285_v18  ;;  %v8938_v18 = vpack.c.bf16 %v1673_v59, %v1670_v39  ;;  %v1679_v25 = vld [vmem:[#allocation5 + $0x88] sm:$0xff]  ;;  %v1888_v59 = vld [vmem:[#allocation7 + $0x80] sm:$0xff] }
 0x2bf   :  { %6884 = vmatprep.subr.bf16.mxu0 %v8842_v9  ;;  %6912 = vmatprep.subr.bf16.mxu1 %v10044_v40  ;;  %v1885_v39 = vld [vmem:[#allocation7 + $0x68] sm:$0xff] }
 0x2c2   :  { %6886 = vmatpush1.bf16.msra.mxu0 %v8846_v5  ;;  %6914 = vmatpush3.bf16.msra.mxu1 %v8566_v10  ;;  %v8866_v10 = vpack.c.bf16 %v1294_v13, %v1291_v4  ;;  %v1685_v4 = vld [vmem:[#allocation5 + $0xb8] sm:$0xff] }
 0x2c3   :  { %6888 = vmatprep.subr.bf16.mxu0 %v8850_v51  ;;  %6915 = vmatprep.subr.bf16.mxu1 %v10044_v40  ;;  %v8953_v13 = vpack.c.bf16 %v1685_v4, %v1682_v2  ;;  %v1887_v2 = vld [vmem:[#allocation7 + $0x78] sm:$0xff]  ;;  %v1886_v4 = vld [vmem:[#allocation7 + $0x70] sm:$0xff] }
 0x2c6   :  { %6890 = vmatpush1.bf16.msra.mxu0 %v8854_v35  ;;  %6917 = vmatpush3.bf16.msra.mxu1 %v8580_v20  ;;  %v8874_v20 = vpack.c.bf16 %v1300_v44, %v1297_v21  ;;  %v8959_v21 = vpack.c.bf16 %v1691_v19, %v1688_v11  ;;  %v1694_v44 = vld [vmem:[#allocation5 + $0x100] sm:$0xff]  ;;  %v1889_v19 = vld [vmem:[#allocation7 + $0x88] sm:$0xff] }
 0x2c7   :  { %6892 = vmatprep.subr.bf16.mxu0 %v8858_v61  ;;  %6918 = vmatprep.subr.bf16.mxu1 %v10044_v40  ;;  %v8965_v49 = vpack.c.bf16 %v1697_v7, %v1694_v44  ;;  %v9014_v44 = vpack.c.bf16 %v1889_v19, %v1886_v4  ;;  %v1891_v7 = vld [vmem:[#allocation7 + $0x98] sm:$0xff]  ;;  %v1905_v19 = vld [vmem:[#allocation7 + $0x108] sm:$0xff] }
 0x2ca   :  { %6894 = vmatpush1.bf16.msra.mxu0 %v8862_v15  ;;  %6920 = vmatpush3.bf16.msra.mxu1 %v8591_v24 }
 0x2cb   :  { %6896 = vmatprep.subr.bf16.mxu0 %v8866_v10  ;;  %6921 = vmatprep.subr.bf16.mxu1 %v10044_v40 }
 0x2ce   :  { %6898 = vmatpush1.bf16.msra.mxu0 %v8870_v52  ;;  %6923 = vmatpush3.bf16.msra.mxu1 %v8597_v29 }
 0x2cf   :  { %6900 = vmatprep.subr.bf16.mxu0 %v8874_v20  ;;  %6924 = vmatprep.subr.bf16.mxu1 %v10044_v40 }
 0x2d2   :  { %6902 = vmatpush1.bf16.msra.mxu0 %v8878_v58  ;;  %6926 = vmatpush3.bf16.msra.mxu1 %v8603_v32 }
 0x2d3   :  { %6928 = vmatprep.subr.bf16.mxu0 %v8611_v37  ;;  %6959 = vmatprep.subr.bf16.mxu1 %v10044_v40 }
 0x2d5   :  { %1367 = vmatmul.mubr.f32.vlgmr.msra.gmra.mrb[4].mxu0 %v8819_v56  ;;  %5881 = vmatmul.mubr.f32.vlgmr.msra.gmra.mrb[16].mxu1 %v8819_v56 }
 0x2d6   :  { %6930 = vmatpush1.bf16.msra.mxu0 %v8613_v43  ;;  %6961 = vmatpush3.bf16.msra.mxu1 %v8616_v47 }
 0x2d7   :  { %6932 = vmatprep.subr.bf16.mxu0 %v8620_v50  ;;  %6962 = vmatprep.subr.bf16.mxu1 %v10044_v40 }
 0x2d8   :  { %1576 = vmatprep.mubr.f32.mxu0 %v10045_v60  ;;  %5915 = vmatprep.mubr.msk.f32.mxu1 %vm8351_vm0, %v10045_v60 }
 0x2da   :  { %6934 = vmatpush1.bf16.msra.mxu0 %v8623_v57  ;;  %6964 = vmatpush3.bf16.msra.mxu1 %v8626_v62 }
 0x2db   :  { %6936 = vmatprep.subr.bf16.mxu0 %v8628_v63  ;;  %6965 = vmatprep.subr.bf16.mxu1 %v10044_v40 }
 0x2de   :  { %6938 = vmatpush1.bf16.msra.mxu0 %v8634_v6  ;;  %6967 = vmatpush3.bf16.msra.mxu1 %v8636_v8 }
 0x2df   :  { %6940 = vmatprep.subr.bf16.mxu0 %v8640_v14  ;;  %6968 = vmatprep.subr.bf16.mxu1 %v10044_v40 }
 0x2e2   :  { %6942 = vmatpush1.bf16.msra.mxu0 %v8643_v22  ;;  %6970 = vmatpush3.bf16.msra.mxu1 %v8646_v28 }
 0x2e3   :  { %6944 = vmatprep.subr.bf16.mxu0 %v8650_v33  ;;  %6971 = vmatprep.subr.bf16.mxu1 %v10044_v40 }
 0x2e6   :  { %6946 = vmatpush1.bf16.msra.mxu0 %v8653_v42  ;;  %6973 = vmatpush3.bf16.msra.mxu1 %v8656_v48  ;;  %v10050_v42 = vld [vmem:[#allocation17_spill] sm:$0xff] }
 0x2e7   :  { %6948 = vmatprep.subr.bf16.mxu0 %v8659_v54  ;;  %6974 = vmatprep.subr.bf16.mxu1 %v10044_v40 }
 0x2ea   :  { %6950 = vmatpush1.bf16.msra.mxu0 %v8662_v1  ;;  %6976 = vmatpush3.bf16.msra.mxu1 %v8664_v3 }
 0x2eb   :  { %6952 = vmatprep.subr.bf16.mxu0 %v8668_v12  ;;  %6977 = vmatprep.subr.bf16.mxu1 %v10044_v40  ;;  %v1664_v12 = vld [vmem:[#allocation5 + $0x10] sm:$0xff] }
 0x2ee   :  { %6954 = vmatpush1.bf16.msra.mxu0 %v8671_v31  ;;  %6979 = vmatpush3.bf16.msra.mxu1 %v8675_v36  ;;  %v1667_v31 = vld [vmem:[#allocation5 + $0x28] sm:$0xff] }
 0x2ef   :  { %6956 = vmatprep.subr.bf16.mxu0 %v8677_v38  ;;  %6980 = vmatprep.subr.bf16.mxu1 %v10044_v40 }
 0x2f2   :  { %6958 = vmatpush1.bf16.msra.mxu0 %v8681_v53  ;;  %6982 = vmatpush3.bf16.msra.mxu1 %v10046_v17  ;;  %v8930_v53 = vpack.c.bf16 %v1667_v31, %v1664_v12  ;;  %v1880_v12 = vld [vmem:[#allocation7 + $0x40] sm:$0xff] }
 0x2f3   :  { %6984 = vmatprep.subr.bf16.mxu0 %v8807_v26  ;;  %7015 = vmatprep.subr.bf16.mxu1 %v10044_v40 }
 0x388   :  { %v8923_v24 = vpop.f32.mrb[14].mxu1 }
 0x389   :  { %10049 = vst [vmem:[#allocation15_spill] sm:$0xff] %v8923_v24  ;;  %v5847_v29 = vpop.f32.mrb[15].mxu1 }
 0x38a   :  { %v1700_v29 = vld [vmem:[#allocation5 + $0x130] sm:$0xff] }
 0x3a8   :  { %v1368_v32 = vpop.f32.mrb[4].mxu0  ;;  %v1439_v37 = vpop.f32.mrb[16].mxu1 }
 0x3a9   :  { %v8019_v43 = vadd.f32 %v1368_v32, %v8717_v27  ;;  %v1370_v47 = vpop.f32.mrb[5].mxu0  ;;  %v5882_v50 = vpop.f32.mrb[17].mxu1  ;;  %v1457_v22 = vadd.f32 %v8729_v30, %v1439_v37  ;;  %v1703_v32 = vld [vmem:[#allocation5 + $0x148] sm:$0xff] }
 0x3aa   :  { %v8020_v62 = vadd.f32 %v1370_v47, %v8723_v0  ;;  %v8971_v37 = vpack.c.bf16 %v1703_v32, %v1700_v29  ;;  %v1709_v47 = vld [vmem:[#allocation5 + $0x178] sm:$0xff]  ;;  %v1894_v29 = vld [vmem:[#allocation7 + $0xb0] sm:$0xff] }
 0x3ab   :  { %v5185_v57 = vmul.f32 -1.442695, %v8019_v43  ;;  %v1706_v43 = vld [vmem:[#allocation5 + $0x160] sm:$0xff]  ;;  %v9018_v32 = vpack.c.bf16 %v1894_v29, %v1891_v7  ;;  %v1907_v29 = vld [vmem:[#allocation7 + $0x118] sm:$0xff] }
 0x3ac   :  { %v5186_v63 = vmul.f32 -1.442695, %v8020_v62  ;;  %v8977_v50 = vpack.c.bf16 %v1709_v47, %v1706_v43  ;;  %v1876_v62 = vld [vmem:[#allocation7 + $0x20] sm:$0xff]  ;;  %v1890_v43 = vld [vmem:[#allocation7 + $0x90] sm:$0xff]  ;;  %v1893_v47 = vld [vmem:[#allocation7 + $0xa8] sm:$0xff] }
 0x3ad   :  { %8108 = vpow2.f32 %v5185_v57  ;;  %v1873_v57 = vld [vmem:[#allocation7 + $0x8] sm:$0xff]  ;;  %v1904_v7 = vld [vmem:[#allocation7 + $0x100] sm:$0xff] }
 0x3ae   :  { %8110 = vpow2.f32 %v5186_v63  ;;  %v8989_v63 = vpack.c.bf16 %v1876_v62, %v1873_v57  ;;  %v1892_v57 = vld [vmem:[#allocation7 + $0xa0] sm:$0xff]  ;;  %v9021_v62 = vpack.c.bf16 %v1893_v47, %v1890_v43  ;;  %v9042_v47 = vpack.c.bf16 %v1907_v29, %v1904_v7  ;;  %v1914_v7 = vld [vmem:[#allocation7 + $0x150] sm:$0xff]  ;;  %v1917_v29 = vld [vmem:[#allocation7 + $0x168] sm:$0xff] }
 0x3af   :  { %v9059_v24 = vpack.c.bf16 %v1917_v29, %v1914_v7 }
 0x3b1   :  { %10055 = vst [vmem:[#allocation25_spill] sm:$0xff] %v9059_v24 }
 0x3b7   :  { %v8109_v6 = vpop.eup %8108 }
 0x3b8   :  { %v1447_v8 = vadd.f32 1.0, %v8109_v6  ;;  %v8111_v14 = vpop.eup %8110  ;;  %v1872_v6 = vld [vmem:[#allocation7] sm:$0xff] }
 0x3b9   :  { %v1454_v54 = vadd.f32 1.0, %v8111_v14  ;;  %v1874_v14 = vld [vmem:[#allocation7 + $0x10] sm:$0xff] }
 0x3ba   :  { %8112 = vrcp.f32 %v1447_v8  ;;  %v1875_v8 = vld [vmem:[#allocation7 + $0x18] sm:$0xff] }
 0x3c4   :  { %v8113_v28 = vpop.eup %8112 }
 0x3c5   :  { %v1458_v33 = vmul.f32 %v8113_v28, %v1457_v22  ;;  %v8991_v22 = vpack.c.bf16 %v1875_v8, %v1872_v6  ;;  %v1877_v28 = vld [vmem:[#allocation7 + $0x28] sm:$0xff]  ;;  %v1895_v6 = vld [vmem:[#allocation7 + $0xb8] sm:$0xff] }
 0x3c6   :  { %v9024_v8 = vpack.c.bf16 %v1895_v6, %v1892_v57  ;;  %v1909_v57 = vld [vmem:[#allocation7 + $0x128] sm:$0xff]  ;;  %v1912_v6 = vld [vmem:[#allocation7 + $0x140] sm:$0xff] }
 0x3c7   :  { %v1459_v48 = vadd.f32 %v1458_v33, %v10050_v42  ;;  %v8994_v33 = vpack.c.bf16 %v1877_v28, %v1874_v14  ;;  %v1879_v42 = vld [vmem:[#allocation7 + $0x38] sm:$0xff]  ;;  %v1897_v14 = vld [vmem:[#allocation7 + $0xc8] sm:$0xff]  ;;  %v1900_v28 = vld [vmem:[#allocation7 + $0xe0] sm:$0xff] }
 0x3c9   :  { %8114 = vtanh.f32 %v1459_v48  ;;  %v1882_v48 = vld [vmem:[#allocation7 + $0x50] sm:$0xff] }
 0x3ca   :  { %8116 = vrcp.f32 %v1454_v54  ;;  %v8998_v54 = vpack.c.bf16 %v1882_v48, %v1879_v42  ;;  %v9028_v42 = vpack.c.bf16 %v1900_v28, %v1897_v14  ;;  %v1896_v48 = vld [vmem:[#allocation7 + $0xc0] sm:$0xff]  ;;  %v9046_v28 = vpack.c.bf16 %v1912_v6, %v1909_v57  ;;  %v1919_v6 = vld [vmem:[#allocation7 + $0x178] sm:$0xff] }
 0x3cb   :  { %v1908_v14 = vld [vmem:[#allocation7 + $0x120] sm:$0xff] }
 0x3cc   :  { %10051 = vst [vmem:[#allocation17_spill] sm:$0xff] %v9046_v28  ;;  %v1916_v57 = vld [vmem:[#allocation7 + $0x160] sm:$0xff] }
 0x3d3   :  { %v8115_v1 = vpop.eup %8114 }
 0x3d4   :  { %v1461_v3 = vsub.f32 %v8819_v56, %v8115_v1  ;;  %v8117_v36 = vpop.eup %8116  ;;  %v1676_v56 = vld [vmem:[#allocation5 + $0x70] sm:$0xff] }
 0x3d5   :  { %v8947_v45 = vpack.c.bf16 %v1679_v25, %v1676_v56  ;;  %v9008_v56 = vpack.c.bf16 %v1888_v59, %v1885_v39  ;;  %v1884_v25 = vld [vmem:[#allocation7 + $0x60] sm:$0xff]  ;;  %v1903_v59 = vld [vmem:[#allocation7 + $0xf8] sm:$0xff] }
 0x3d6   :  { %v1462_v38 = vmul.f32 %v8117_v36, %v1461_v3  ;;  %v1881_v3 = vld [vmem:[#allocation7 + $0x48] sm:$0xff]  ;;  %v1883_v36 = vld [vmem:[#allocation7 + $0x58] sm:$0xff]  ;;  %v9011_v11 = vpack.c.bf16 %v1887_v2, %v1884_v25  ;;  %v1906_v25 = vld [vmem:[#allocation7 + $0x110] sm:$0xff] }
 0x3d7   :  { %v1902_v2 = vld [vmem:[#allocation7 + $0xf0] sm:$0xff]  ;;  %v9037_v4 = vpack.c.bf16 %v1906_v25, %v1903_v59 }
 0x3d8   :  { %v8932_v17 = vadd.f32 %v8115_v1, %v1462_v38  ;;  %v1878_v1 = vld [vmem:[#allocation7 + $0x30] sm:$0xff]  ;;  %v9004_v38 = vpack.c.bf16 %v1883_v36, %v1880_v12  ;;  %v1901_v36 = vld [vmem:[#allocation7 + $0xe8] sm:$0xff]  ;;  %v9040_v43 = vpack.c.bf16 %v1905_v19, %v1902_v2 }
 0x3d9   :  { %v9001_v31 = vpack.c.bf16 %v1881_v3, %v1878_v1  ;;  %v1899_v1 = vld [vmem:[#allocation7 + $0xd8] sm:$0xff]  ;;  %v1898_v3 = vld [vmem:[#allocation7 + $0xd0] sm:$0xff] }
 0x3da   :  { %1577 = vmatmul.mubr.f32.vlgmr.msra.gmra.mrb[20].mxu0 %v8932_v17  ;;  %5916 = vmatmul.mubr.f32.vlgmr.msra.gmra.mrb[18].mxu1 %v8932_v17  ;;  %v9031_v12 = vpack.c.bf16 %v1899_v1, %v1896_v48  ;;  %v9034_v39 = vpack.c.bf16 %v1901_v36, %v1898_v3  ;;  %v1911_v48 = vld [vmem:[#allocation7 + $0x138] sm:$0xff]  ;;  %v1910_v1 = vld [vmem:[#allocation7 + $0x130] sm:$0xff]  ;;  %v1913_v3 = vld [vmem:[#allocation7 + $0x148] sm:$0xff] }
 0x3db   :  { %6986 = vmatpush1.bf16.msra.mxu0 %v8817_v55  ;;  %7017 = vmatpush3.bf16.msra.mxu1 %v8930_v53  ;;  %v1915_v36 = vld [vmem:[#allocation7 + $0x158] sm:$0xff]  ;;  %v1918_v59 = vld [vmem:[#allocation7 + $0x170] sm:$0xff]  ;;  %v9049_v25 = vpack.c.bf16 %v1911_v48, %v1908_v14  ;;  %v9053_v2 = vpack.c.bf16 %v1913_v3, %v1910_v1  ;;  %v9063_v14 = vpack.c.bf16 %v1919_v6, %v1916_v57 }
 0x3dc   :  { %6988 = vmatprep.subr.bf16.mxu0 %v8821_v46  ;;  %7018 = vmatprep.subr.bf16.mxu1 %v10044_v40  ;;  %v9055_v19 = vpack.c.bf16 %v1918_v59, %v1915_v36 }
 0x3dd   :  { %1774 = vmatprep.mubr.f32.mxu0 %v10045_v60  ;;  %5950 = vmatprep.mubr.msk.f32.mxu1 %vm8351_vm0, %v10045_v60  ;;  %10052 = vst [vmem:[#allocation22_spill] sm:$0xff] %v9049_v25  ;;  %10053 = vst [vmem:[#allocation23_spill] sm:$0xff] %v9053_v2 }
 0x3de   :  { %10054 = vst [vmem:[#allocation24_spill] sm:$0xff] %v9055_v19  ;;  %10056 = vst [vmem:[#allocation26_spill] sm:$0xff] %v9063_v14 }
 0x3df   :  { %6990 = vmatpush1.bf16.msra.mxu0 %v8827_v16  ;;  %7020 = vmatpush3.bf16.msra.mxu1 %v8938_v18 }
 0x3e0   :  { %6992 = vmatprep.subr.bf16.mxu0 %v8831_v23  ;;  %7021 = vmatprep.subr.bf16.mxu1 %v10044_v40 }
 0x3e3   :  { %6994 = vmatpush1.bf16.msra.mxu0 %v8838_v41  ;;  %7023 = vmatpush3.bf16.msra.mxu1 %v8947_v45 }
 0x3e4   :  { %6996 = vmatprep.subr.bf16.mxu0 %v8842_v9  ;;  %7024 = vmatprep.subr.bf16.mxu1 %v10044_v40 }
 0x3e7   :  { %6998 = vmatpush1.bf16.msra.mxu0 %v8846_v5  ;;  %7026 = vmatpush3.bf16.msra.mxu1 %v8953_v13 }
 0x3e8   :  { %7000 = vmatprep.subr.bf16.mxu0 %v8850_v51  ;;  %7027 = vmatprep.subr.bf16.mxu1 %v10044_v40 }
 0x3eb   :  { %7002 = vmatpush1.bf16.msra.mxu0 %v8854_v35  ;;  %7029 = vmatpush3.bf16.msra.mxu1 %v8959_v21 }
 0x3ec   :  { %7004 = vmatprep.subr.bf16.mxu0 %v8858_v61  ;;  %7030 = vmatprep.subr.bf16.mxu1 %v10044_v40 }
 0x3ef   :  { %7006 = vmatpush1.bf16.msra.mxu0 %v8862_v15  ;;  %7032 = vmatpush3.bf16.msra.mxu1 %v8965_v49 }
 0x3f0   :  { %7008 = vmatprep.subr.bf16.mxu0 %v8866_v10  ;;  %7033 = vmatprep.subr.bf16.mxu1 %v10044_v40 }
 0x3f3   :  { %7010 = vmatpush1.bf16.msra.mxu0 %v8870_v52  ;;  %7035 = vmatpush3.bf16.msra.mxu1 %v8971_v37 }
 0x3f4   :  { %7012 = vmatprep.subr.bf16.mxu0 %v8874_v20  ;;  %7036 = vmatprep.subr.bf16.mxu1 %v10044_v40 }
 0x3f7   :  { %7014 = vmatpush1.bf16.msra.mxu0 %v8878_v58  ;;  %7038 = vmatpush3.bf16.msra.mxu1 %v8977_v50 }
 0x3f8   :  { %7071 = vmatprep.subr.bf16.mxu1 %v10044_v40  ;;  %7040 = vmatprep.subr.bf16.mxu0 %v8989_v63 }
 0x3fa   :  { %1775 = vmatmul.mubr.f32.vlgmr.msra.gmra.mrb[6].mxu0 %v8932_v17  ;;  %5951 = vmatmul.mubr.f32.vlgmr.msra.gmra.mrb[20].mxu1 %v8932_v17 }
 0x3fb   :  { %1984 = vmatprep.mubr.f32.mxu0 %v10045_v60  ;;  %5985 = vmatprep.mubr.msk.f32.mxu1 %vm8351_vm0, %v10045_v60 }
 0x3fc   :  { %7042 = vmatpush1.bf16.msra.mxu0 %v8991_v22  ;;  %7073 = vmatpush3.bf16.msra.mxu1 %v8994_v33 }
 0x3fd   :  { %7074 = vmatprep.subr.bf16.mxu1 %v10044_v40  ;;  %7044 = vmatprep.subr.bf16.mxu0 %v8998_v54 }
 0x400   :  { %7046 = vmatpush1.bf16.msra.mxu0 %v9001_v31  ;;  %7076 = vmatpush3.bf16.msra.mxu1 %v9004_v38 }
 0x401   :  { %7077 = vmatprep.subr.bf16.mxu1 %v10044_v40  ;;  %7048 = vmatprep.subr.bf16.mxu0 %v9008_v56 }
 0x404   :  { %7050 = vmatpush1.bf16.msra.mxu0 %v9011_v11  ;;  %7079 = vmatpush3.bf16.msra.mxu1 %v9014_v44 }
 0x405   :  { %7080 = vmatprep.subr.bf16.mxu1 %v10044_v40  ;;  %7052 = vmatprep.subr.bf16.mxu0 %v9018_v32 }
 0x408   :  { %7054 = vmatpush1.bf16.msra.mxu0 %v9021_v62  ;;  %7082 = vmatpush3.bf16.msra.mxu1 %v9024_v8 }
 0x409   :  { %7083 = vmatprep.subr.bf16.mxu1 %v10044_v40  ;;  %7056 = vmatprep.subr.bf16.mxu0 %v9028_v42 }
 0x40c   :  { %7058 = vmatpush1.bf16.msra.mxu0 %v9031_v12  ;;  %7085 = vmatpush3.bf16.msra.mxu1 %v9034_v39 }
 0x40d   :  { %7060 = vmatprep.subr.bf16.mxu0 %v9037_v4  ;;  %7086 = vmatprep.subr.bf16.mxu1 %v10044_v40 }
 0x410   :  { %7062 = vmatpush1.bf16.msra.mxu0 %v9040_v43  ;;  %7088 = vmatpush3.bf16.msra.mxu1 %v9042_v47 }
 0x411   :  { %7064 = vmatprep.subr.bf16.mxu0 %v9046_v28  ;;  %7089 = vmatprep.subr.bf16.mxu1 %v10044_v40 }
 0x414   :  { %7066 = vmatpush1.bf16.msra.mxu0 %v9049_v25  ;;  %7091 = vmatpush3.bf16.msra.mxu1 %v9053_v2  ;;  %v10058_v2 = vld [vmem:[#allocation16_spill] sm:$0xff] }
 0x415   :  { %7068 = vmatprep.subr.bf16.mxu0 %v9055_v19  ;;  %7092 = vmatprep.subr.bf16.mxu1 %v10044_v40 }
 0x418   :  { %7070 = vmatpush1.bf16.msra.mxu0 %v9059_v24  ;;  %7094 = vmatpush3.bf16.msra.mxu1 %v9063_v14 }
 0x419   :  { %7096 = vmatprep.subr.bf16.mxu0 %v8807_v26  ;;  %7127 = vmatprep.subr.bf16.mxu1 %v10044_v40 }
 0x4ad   :  { %v9070_v48 = vpop.f32.mrb[18].mxu1 }
 0x4ae   :  { %10057 = vst [vmem:[#allocation27_spill] sm:$0xff] %v9070_v48  ;;  %v5917_v1 = vpop.f32.mrb[19].mxu1 }
 0x4cd   :  { %v1776_v3 = vpop.f32.mrb[6].mxu0  ;;  %v1847_v36 = vpop.f32.mrb[20].mxu1 }
 0x4ce   :  { %v8021_v59 = vadd.f32 %v1776_v3, %v8717_v27  ;;  %v1778_v7 = vpop.f32.mrb[7].mxu0  ;;  %v5952_v29 = vpop.f32.mrb[21].mxu1  ;;  %v1865_v19 = vadd.f32 %v8729_v30, %v1847_v36  ;;  %v10059_v30 = vld [vmem:[#allocation17_spill] sm:$0xff] }
 0x4cf   :  { %v8022_v6 = vadd.f32 %v1778_v7, %v8723_v0 }
 0x4d0   :  { %v5187_v57 = vmul.f32 -1.442695, %v8021_v59 }
 0x4d1   :  { %v5188_v34 = vmul.f32 -1.442695, %v8022_v6  ;;  %v10066_v6 = vld [vmem:[#allocation19_spill] sm:$0xff] }
 0x4d2   :  { %8118 = vpow2.f32 %v5187_v57 }
 0x4d3   :  { %8120 = vpow2.f32 %v5188_v34  ;;  %v10060_v34 = vld [vmem:[#allocation22_spill] sm:$0xff] }
 0x4dc   :  { %v8119_v24 = vpop.eup %8118 }
 0x4dd   :  { %v1855_v14 = vadd.f32 1.0, %v8119_v24  ;;  %v8121_v26 = vpop.eup %8120 }
 0x4de   :  { %v1862_v28 = vadd.f32 1.0, %v8121_v26 }
 0x4df   :  { %8122 = vrcp.f32 %v1855_v14 }
 0x4e9   :  { %v8123_v48 = vpop.eup %8122 }
 0x4ea   :  { %v1866_v1 = vmul.f32 %v8123_v48, %v1865_v19  ;;  %v9162_v19 = vld [vmem:[%s9998_s4] ss:$0 sm:$0xff] }
 0x4ec   :  { %v1867_v25 = vadd.f32 %v1866_v1, %v10058_v2 }
 0x4ee   :  { %8124 = vtanh.f32 %v1867_v25 }
 0x4ef   :  { %8126 = vrcp.f32 %v1862_v28 }
 0x4f8   :  { %v8125_v3 = vpop.eup %8124 }
 0x4f9   :  { %v1869_v59 = vsub.f32 %v8932_v17, %v8125_v3  ;;  %v8127_v29 = vpop.eup %8126 }
 0x4fb   :  { %v1870_v7 = vmul.f32 %v8127_v29, %v1869_v59  ;;  %v2478_v29 = vld [vmem:[#allocation5] sm:$0xff] }
 0x4fd   :  { %v9077_v57 = vadd.f32 %v8125_v3, %v1870_v7  ;;  %v2481_v7 = vld [vmem:[#allocation5 + $0x18] sm:$0xff] }
 0x4ff   :  { %1985 = vmatmul.mubr.f32.vlgmr.msra.gmra.mrb[22].mxu0 %v9077_v57  ;;  %5986 = vmatmul.mubr.f32.vlgmr.msra.gmra.mrb[22].mxu1 %v9077_v57 }
 0x500   :  { %7098 = vmatpush1.bf16.msra.mxu0 %v8817_v55  ;;  %7129 = vmatpush3.bf16.msra.mxu1 %v8930_v53  ;;  %v10061_v55 = vld [vmem:[#allocation23_spill] sm:$0xff] }
 0x501   :  { %7100 = vmatprep.subr.bf16.mxu0 %v8821_v46  ;;  %7130 = vmatprep.subr.bf16.mxu1 %v10044_v40  ;;  %v10062_v46 = vld [vmem:[#allocation24_spill] sm:$0xff] }
 0x502   :  { %2182 = vmatprep.mubr.f32.mxu0 %v10045_v60  ;;  %6020 = vmatprep.mubr.msk.f32.mxu1 %vm8351_vm0, %v10045_v60 }
 0x504   :  { %7102 = vmatpush1.bf16.msra.mxu0 %v8827_v16  ;;  %7132 = vmatpush3.bf16.msra.mxu1 %v8938_v18  ;;  %v10063_v16 = vld [vmem:[#allocation25_spill] sm:$0xff] }
 0x505   :  { %7104 = vmatprep.subr.bf16.mxu0 %v8831_v23  ;;  %7133 = vmatprep.subr.bf16.mxu1 %v10044_v40  ;;  %v10064_v23 = vld [vmem:[#allocation26_spill] sm:$0xff] }
 0x508   :  { %7106 = vmatpush1.bf16.msra.mxu0 %v8838_v41  ;;  %7135 = vmatpush3.bf16.msra.mxu1 %v8947_v45  ;;  %v2479_v41 = vld [vmem:[#allocation5 + $0x8] sm:$0xff] }
 0x509   :  { %7108 = vmatprep.subr.bf16.mxu0 %v8842_v9  ;;  %7136 = vmatprep.subr.bf16.mxu1 %v10044_v40  ;;  %v2482_v9 = vld [vmem:[#allocation5 + $0x20] sm:$0xff] }
 0x50c   :  { %7110 = vmatpush1.bf16.msra.mxu0 %v8846_v5  ;;  %7138 = vmatpush3.bf16.msra.mxu1 %v8953_v13  ;;  %v9152_v5 = vpack.c.bf16 %v2482_v9, %v2479_v41  ;;  %v2485_v9 = vld [vmem:[#allocation5 + $0x38] sm:$0xff] }
 0x50d   :  { %7112 = vmatprep.subr.bf16.mxu0 %v8850_v51  ;;  %7139 = vmatprep.subr.bf16.mxu1 %v10044_v40 }
 0x510   :  { %7114 = vmatpush1.bf16.msra.mxu0 %v8854_v35  ;;  %7141 = vmatpush3.bf16.msra.mxu1 %v8959_v21 }
 0x511   :  { %7116 = vmatprep.subr.bf16.mxu0 %v8858_v61  ;;  %7142 = vmatprep.subr.bf16.mxu1 %v10044_v40 }
 0x514   :  { %7118 = vmatpush1.bf16.msra.mxu0 %v8862_v15  ;;  %7144 = vmatpush3.bf16.msra.mxu1 %v8965_v49 }
 0x515   :  { %7120 = vmatprep.subr.bf16.mxu0 %v8866_v10  ;;  %7145 = vmatprep.subr.bf16.mxu1 %v10044_v40 }
 0x518   :  { %7122 = vmatpush1.bf16.msra.mxu0 %v8870_v52  ;;  %7147 = vmatpush3.bf16.msra.mxu1 %v8971_v37 }
 0x519   :  { %7124 = vmatprep.subr.bf16.mxu0 %v8874_v20  ;;  %7148 = vmatprep.subr.bf16.mxu1 %v10044_v40 }
 0x51c   :  { %7126 = vmatpush1.bf16.msra.mxu0 %v8878_v58  ;;  %7150 = vmatpush3.bf16.msra.mxu1 %v8977_v50 }
 0x51d   :  { %7152 = vmatprep.subr.bf16.mxu0 %v8989_v63  ;;  %7183 = vmatprep.subr.bf16.mxu1 %v10044_v40 }
 0x51f   :  { %2183 = vmatmul.mubr.f32.vlgmr.msra.gmra.mrb[8].mxu0 %v9077_v57  ;;  %6021 = vmatmul.mubr.f32.vlgmr.msra.gmra.mrb[24].mxu1 %v9077_v57 }
 0x520   :  { %7154 = vmatpush1.bf16.msra.mxu0 %v8991_v22  ;;  %7185 = vmatpush3.bf16.msra.mxu1 %v8994_v33 }
 0x521   :  { %7156 = vmatprep.subr.bf16.mxu0 %v8998_v54  ;;  %7186 = vmatprep.subr.bf16.mxu1 %v10044_v40 }
 0x522   :  { %2392 = vmatprep.mubr.f32.mxu0 %v10045_v60  ;;  %6055 = vmatprep.mubr.msk.f32.mxu1 %vm8351_vm0, %v10045_v60 }
 0x524   :  { %7158 = vmatpush1.bf16.msra.mxu0 %v9001_v31  ;;  %7188 = vmatpush3.bf16.msra.mxu1 %v9004_v38 }
 0x525   :  { %7160 = vmatprep.subr.bf16.mxu0 %v9008_v56  ;;  %7189 = vmatprep.subr.bf16.mxu1 %v10044_v40 }
 0x528   :  { %7162 = vmatpush1.bf16.msra.mxu0 %v9011_v11  ;;  %7191 = vmatpush3.bf16.msra.mxu1 %v9014_v44 }
 0x529   :  { %7164 = vmatprep.subr.bf16.mxu0 %v9018_v32  ;;  %7192 = vmatprep.subr.bf16.mxu1 %v10044_v40 }
 0x52c   :  { %7166 = vmatpush1.bf16.msra.mxu0 %v9021_v62  ;;  %7194 = vmatpush3.bf16.msra.mxu1 %v9024_v8 }
 0x52d   :  { %7168 = vmatprep.subr.bf16.mxu0 %v9028_v42  ;;  %7195 = vmatprep.subr.bf16.mxu1 %v10044_v40 }
 0x530   :  { %7170 = vmatpush1.bf16.msra.mxu0 %v9031_v12  ;;  %7197 = vmatpush3.bf16.msra.mxu1 %v9034_v39 }
 0x531   :  { %7172 = vmatprep.subr.bf16.mxu0 %v9037_v4  ;;  %7198 = vmatprep.subr.bf16.mxu1 %v10044_v40 }
 0x534   :  { %7174 = vmatpush1.bf16.msra.mxu0 %v9040_v43  ;;  %7200 = vmatpush3.bf16.msra.mxu1 %v9042_v47 }
 0x535   :  { %7176 = vmatprep.subr.bf16.mxu0 %v10059_v30  ;;  %7201 = vmatprep.subr.bf16.mxu1 %v10044_v40 }
 0x538   :  { %7178 = vmatpush1.bf16.msra.mxu0 %v10060_v34  ;;  %7203 = vmatpush3.bf16.msra.mxu1 %v10061_v55 }
 0x539   :  { %7180 = vmatprep.subr.bf16.mxu0 %v10062_v46  ;;  %7204 = vmatprep.subr.bf16.mxu1 %v10044_v40 }
 0x53c   :  { %7182 = vmatpush1.bf16.msra.mxu0 %v10063_v16  ;;  %7206 = vmatpush3.bf16.msra.mxu1 %v10064_v23 }
 0x53d   :  { %7239 = vmatprep.subr.bf16.mxu1 %v10044_v40  ;;  %7208 = vmatprep.subr.bf16.mxu0 %v9152_v5 }
 0x5d2   :  { %v9155_v51 = vpop.f32.mrb[22].mxu1 }
 0x5d3   :  { %10065 = vst [vmem:[#allocation16_spill] sm:$0xff] %v9155_v51  ;;  %v5987_v35 = vpop.f32.mrb[23].mxu1 }
 0x5d4   :  { %v2488_v35 = vld [vmem:[#allocation5 + $0x50] sm:$0xff] }
 0x5f2   :  { %v2184_v61 = vpop.f32.mrb[8].mxu0  ;;  %v2255_v15 = vpop.f32.mrb[24].mxu1 }
 0x5f3   :  { %v8023_v10 = vadd.f32 %v2184_v61, %v8717_v27  ;;  %v2186_v52 = vpop.f32.mrb[9].mxu0  ;;  %v6022_v20 = vpop.f32.mrb[25].mxu1  ;;  %v2273_v14 = vadd.f32 %v9162_v19, %v2255_v15  ;;  %v9171_v15 = vpack.c.bf16 %v2488_v35, %v2485_v9  ;;  %v2512_v9 = vld [vmem:[#allocation5 + $0x110] sm:$0xff] }
 0x5f4   :  { %v8024_v24 = vadd.f32 %v2186_v52, %v8723_v0  ;;  %v2484_v20 = vld [vmem:[#allocation5 + $0x30] sm:$0xff] }
 0x5f5   :  { %v5189_v58 = vmul.f32 -1.442695, %v8023_v10  ;;  %v9167_v10 = vpack.c.bf16 %v2481_v7, %v2478_v29  ;;  %v2502_v29 = vld [vmem:[#allocation5 + $0xc0] sm:$0xff]  ;;  %v2505_v7 = vld [vmem:[#allocation5 + $0xd8] sm:$0xff] }
 0x5f6   :  { %v5190_v17 = vmul.f32 -1.442695, %v8024_v24  ;;  %v2491_v24 = vld [vmem:[#allocation5 + $0x68] sm:$0xff]  ;;  %v9204_v35 = vpack.c.bf16 %v2505_v7, %v2502_v29  ;;  %v2894_v29 = vld [vmem:[#allocation5 + $0x40] sm:$0xff]  ;;  %v2897_v7 = vld [vmem:[#allocation5 + $0x58] sm:$0xff] }
 0x5f7   :  { %8128 = vpow2.f32 %v5189_v58  ;;  %v2487_v58 = vld [vmem:[#allocation5 + $0x48] sm:$0xff] }
 0x5f8   :  { %8130 = vpow2.f32 %v5190_v17  ;;  %v2494_v17 = vld [vmem:[#allocation5 + $0x80] sm:$0xff] }
 0x601   :  { %v8129_v28 = vpop.eup %8128 }
 0x602   :  { %v2263_v25 = vadd.f32 1.0, %v8129_v28  ;;  %v8131_v2 = vpop.eup %8130  ;;  %v9181_v28 = vpack.c.bf16 %v2494_v17, %v2491_v24  ;;  %v2518_v24 = vld [vmem:[#allocation5 + $0x140] sm:$0xff] }
 0x603   :  { %v2270_v1 = vadd.f32 1.0, %v8131_v2  ;;  %v2493_v2 = vld [vmem:[#allocation5 + $0x78] sm:$0xff] }
 0x604   :  { %8132 = vrcp.f32 %v2263_v25  ;;  %v2490_v25 = vld [vmem:[#allocation5 + $0x60] sm:$0xff] }
 0x60e   :  { %v8133_v48 = vpop.eup %8132 }
 0x60f   :  { %v2274_v36 = vmul.f32 %v8133_v48, %v2273_v14  ;;  %v2497_v14 = vld [vmem:[#allocation5 + $0x98] sm:$0xff]  ;;  %v2500_v48 = vld [vmem:[#allocation5 + $0xb0] sm:$0xff] }
 0x611   :  { %v2275_v26 = vadd.f32 %v2274_v36, %v10066_v6  ;;  %v9192_v36 = vpack.c.bf16 %v2500_v48, %v2497_v14  ;;  %v2496_v6 = vld [vmem:[#allocation5 + $0x90] sm:$0xff]  ;;  %v2521_v14 = vld [vmem:[#allocation5 + $0x158] sm:$0xff] }
 0x612   :  { %v2524_v48 = vld [vmem:[#allocation5 + $0x170] sm:$0xff] }
 0x613   :  { %8134 = vtanh.f32 %v2275_v26  ;;  %v2499_v26 = vld [vmem:[#allocation5 + $0xa8] sm:$0xff] }
 0x614   :  { %8136 = vrcp.f32 %v2270_v1  ;;  %v2503_v1 = vld [vmem:[#allocation5 + $0xc8] sm:$0xff] }
 0x61d   :  { %v8135_v3 = vpop.eup %8134 }
 0x61e   :  { %v2277_v59 = vsub.f32 %v9077_v57, %v8135_v3  ;;  %v8137_v41 = vpop.eup %8136  ;;  %v9177_v57 = vpack.c.bf16 %v2487_v58, %v2484_v20  ;;  %v2511_v20 = vld [vmem:[#allocation5 + $0x108] sm:$0xff] }
 0x61f   :  { %v2515_v58 = vld [vmem:[#allocation5 + $0x128] sm:$0xff] }
 0x620   :  { %v2278_v61 = vmul.f32 %v8137_v41, %v2277_v59  ;;  %v9196_v59 = vpack.c.bf16 %v2499_v26, %v2496_v6  ;;  %v2509_v41 = vld [vmem:[#allocation5 + $0xf8] sm:$0xff]  ;;  %v2520_v26 = vld [vmem:[#allocation5 + $0x150] sm:$0xff] }
 0x622   :  { %v9169_v52 = vadd.f32 %v8135_v3, %v2278_v61  ;;  %v2506_v3 = vld [vmem:[#allocation5 + $0xe0] sm:$0xff]  ;;  %v2508_v61 = vld [vmem:[#allocation5 + $0xf0] sm:$0xff] }
 0x623   :  { %v9212_v17 = vpack.c.bf16 %v2511_v20, %v2508_v61  ;;  %v2906_v20 = vld [vmem:[#allocation5 + $0xa0] sm:$0xff] }
 0x624   :  { %2393 = vmatmul.mubr.f32.vlgmr.msra.gmra.mrb[24].mxu0 %v9169_v52  ;;  %6056 = vmatmul.mubr.f32.vlgmr.msra.gmra.mrb[26].mxu1 %v9169_v52 }
 0x625   :  { %7210 = vmatpush1.bf16.msra.mxu0 %v9167_v10  ;;  %7241 = vmatpush3.bf16.msra.mxu1 %v8930_v53  ;;  %v9188_v53 = vpack.c.bf16 %v2493_v2, %v2490_v25  ;;  %v2514_v25 = vld [vmem:[#allocation5 + $0x120] sm:$0xff]  ;;  %v2517_v2 = vld [vmem:[#allocation5 + $0x138] sm:$0xff] }
 0x626   :  { %7212 = vmatprep.subr.bf16.mxu0 %v9171_v15  ;;  %7242 = vmatprep.subr.bf16.mxu1 %v10044_v40  ;;  %v9220_v6 = vpack.c.bf16 %v2517_v2, %v2514_v25  ;;  %v2912_v25 = vld [vmem:[#allocation5 + $0xd0] sm:$0xff]  ;;  %v2915_v2 = vld [vmem:[#allocation5 + $0xe8] sm:$0xff] }
 0x627   :  { %2590 = vmatprep.mubr.f32.mxu0 %v10045_v60  ;;  %6090 = vmatprep.mubr.msk.f32.mxu1 %vm8351_vm0, %v10045_v60 }
 0x629   :  { %7214 = vmatpush1.bf16.msra.mxu0 %v9177_v57  ;;  %7244 = vmatpush3.bf16.msra.mxu1 %v8938_v18  ;;  %v9200_v18 = vpack.c.bf16 %v2506_v3, %v2503_v1  ;;  %v2523_v1 = vld [vmem:[#allocation5 + $0x168] sm:$0xff] }
 0x62a   :  { %7216 = vmatprep.subr.bf16.mxu0 %v9181_v28  ;;  %7245 = vmatprep.subr.bf16.mxu1 %v10044_v40  ;;  %v9228_v3 = vpack.c.bf16 %v2523_v1, %v2520_v26  ;;  %v2921_v26 = vld [vmem:[#allocation5 + $0x118] sm:$0xff] }
 0x62d   :  { %7218 = vmatpush1.bf16.msra.mxu0 %v9188_v53  ;;  %7247 = vmatpush3.bf16.msra.mxu1 %v8947_v45  ;;  %v9208_v45 = vpack.c.bf16 %v2512_v9, %v2509_v41  ;;  %v9288_v41 = vpack.c.bf16 %v2897_v7, %v2894_v29  ;;  %v2903_v9 = vld [vmem:[#allocation5 + $0x88] sm:$0xff]  ;;  %v3112_v7 = vld [vmem:[#allocation7 + $0x80] sm:$0xff] }
 0x62e   :  { %7220 = vmatprep.subr.bf16.mxu0 %v9192_v36  ;;  %7248 = vmatprep.subr.bf16.mxu1 %v10044_v40  ;;  %v3109_v29 = vld [vmem:[#allocation7 + $0x68] sm:$0xff] }
 0x631   :  { %7222 = vmatpush1.bf16.msra.mxu0 %v9196_v59  ;;  %7250 = vmatpush3.bf16.msra.mxu1 %v8953_v13  ;;  %v9216_v13 = vpack.c.bf16 %v2518_v24, %v2515_v58  ;;  %v2909_v58 = vld [vmem:[#allocation5 + $0xb8] sm:$0xff] }
 0x632   :  { %7224 = vmatprep.subr.bf16.mxu0 %v9200_v18  ;;  %7251 = vmatprep.subr.bf16.mxu1 %v10044_v40  ;;  %v9303_v24 = vpack.c.bf16 %v2909_v58, %v2906_v20  ;;  %v3111_v20 = vld [vmem:[#allocation7 + $0x78] sm:$0xff]  ;;  %v3110_v58 = vld [vmem:[#allocation7 + $0x70] sm:$0xff] }
 0x635   :  { %7226 = vmatpush1.bf16.msra.mxu0 %v9204_v35  ;;  %7253 = vmatpush3.bf16.msra.mxu1 %v8959_v21  ;;  %v9224_v21 = vpack.c.bf16 %v2524_v48, %v2521_v14  ;;  %v9309_v14 = vpack.c.bf16 %v2915_v2, %v2912_v25  ;;  %v2918_v48 = vld [vmem:[#allocation5 + $0x100] sm:$0xff]  ;;  %v3113_v2 = vld [vmem:[#allocation7 + $0x88] sm:$0xff] }
 0x636   :  { %7228 = vmatprep.subr.bf16.mxu0 %v9208_v45  ;;  %7254 = vmatprep.subr.bf16.mxu1 %v10044_v40  ;;  %v9315_v1 = vpack.c.bf16 %v2921_v26, %v2918_v48  ;;  %v9364_v48 = vpack.c.bf16 %v3113_v2, %v3110_v58  ;;  %v3115_v26 = vld [vmem:[#allocation7 + $0x98] sm:$0xff]  ;;  %v3129_v2 = vld [vmem:[#allocation7 + $0x108] sm:$0xff] }
 0x639   :  { %7230 = vmatpush1.bf16.msra.mxu0 %v9212_v17  ;;  %7256 = vmatpush3.bf16.msra.mxu1 %v8965_v49 }
 0x63a   :  { %7232 = vmatprep.subr.bf16.mxu0 %v9216_v13  ;;  %7257 = vmatprep.subr.bf16.mxu1 %v10044_v40 }
 0x63d   :  { %7234 = vmatpush1.bf16.msra.mxu0 %v9220_v6  ;;  %7259 = vmatpush3.bf16.msra.mxu1 %v8971_v37 }
 0x63e   :  { %7236 = vmatprep.subr.bf16.mxu0 %v9224_v21  ;;  %7260 = vmatprep.subr.bf16.mxu1 %v10044_v40 }
 0x641   :  { %7238 = vmatpush1.bf16.msra.mxu0 %v9228_v3  ;;  %7262 = vmatpush3.bf16.msra.mxu1 %v8977_v50 }
 0x642   :  { %7264 = vmatprep.subr.bf16.mxu0 %v8989_v63  ;;  %7295 = vmatprep.subr.bf16.mxu1 %v10044_v40 }
 0x644   :  { %2591 = vmatmul.mubr.f32.vlgmr.msra.gmra.mrb[10].mxu0 %v9169_v52  ;;  %6091 = vmatmul.mubr.f32.vlgmr.msra.gmra.mrb[28].mxu1 %v9169_v52 }
 0x645   :  { %7266 = vmatpush1.bf16.msra.mxu0 %v8991_v22  ;;  %7297 = vmatpush3.bf16.msra.mxu1 %v8994_v33 }
 0x646   :  { %7268 = vmatprep.subr.bf16.mxu0 %v8998_v54  ;;  %7298 = vmatprep.subr.bf16.mxu1 %v10044_v40 }
 0x647   :  { %2800 = vmatprep.mubr.f32.mxu0 %v10045_v60  ;;  %6125 = vmatprep.mubr.msk.f32.mxu1 %vm8351_vm0, %v10045_v60 }
 0x649   :  { %7270 = vmatpush1.bf16.msra.mxu0 %v9001_v31  ;;  %7300 = vmatpush3.bf16.msra.mxu1 %v9004_v38 }
 0x64a   :  { %7272 = vmatprep.subr.bf16.mxu0 %v9008_v56  ;;  %7301 = vmatprep.subr.bf16.mxu1 %v10044_v40 }
 0x64d   :  { %7274 = vmatpush1.bf16.msra.mxu0 %v9011_v11  ;;  %7303 = vmatpush3.bf16.msra.mxu1 %v9014_v44 }
 0x64e   :  { %7276 = vmatprep.subr.bf16.mxu0 %v9018_v32  ;;  %7304 = vmatprep.subr.bf16.mxu1 %v10044_v40 }
 0x651   :  { %7278 = vmatpush1.bf16.msra.mxu0 %v9021_v62  ;;  %7306 = vmatpush3.bf16.msra.mxu1 %v9024_v8 }
 0x652   :  { %7280 = vmatprep.subr.bf16.mxu0 %v9028_v42  ;;  %7307 = vmatprep.subr.bf16.mxu1 %v10044_v40 }
 0x655   :  { %7282 = vmatpush1.bf16.msra.mxu0 %v9031_v12  ;;  %7309 = vmatpush3.bf16.msra.mxu1 %v9034_v39  ;;  %v10068_v12 = vld [vmem:[#allocation18_spill] sm:$0xff] }
 0x656   :  { %7284 = vmatprep.subr.bf16.mxu0 %v9037_v4  ;;  %7310 = vmatprep.subr.bf16.mxu1 %v10044_v40 }
 0x659   :  { %7286 = vmatpush1.bf16.msra.mxu0 %v9040_v43  ;;  %7312 = vmatpush3.bf16.msra.mxu1 %v9042_v47 }
 0x65a   :  { %7288 = vmatprep.subr.bf16.mxu0 %v10059_v30  ;;  %7313 = vmatprep.subr.bf16.mxu1 %v10044_v40  ;;  %v2888_v30 = vld [vmem:[#allocation5 + $0x10] sm:$0xff] }
 0x65d   :  { %7290 = vmatpush1.bf16.msra.mxu0 %v10060_v34  ;;  %7315 = vmatpush3.bf16.msra.mxu1 %v10061_v55  ;;  %v2891_v34 = vld [vmem:[#allocation5 + $0x28] sm:$0xff] }
 0x65e   :  { %7292 = vmatprep.subr.bf16.mxu0 %v10062_v46  ;;  %7316 = vmatprep.subr.bf16.mxu1 %v10044_v40 }
 0x661   :  { %7294 = vmatpush1.bf16.msra.mxu0 %v10063_v16  ;;  %7318 = vmatpush3.bf16.msra.mxu1 %v10064_v23  ;;  %v9280_v16 = vpack.c.bf16 %v2891_v34, %v2888_v30  ;;  %v3104_v30 = vld [vmem:[#allocation7 + $0x40] sm:$0xff] }
 0x662   :  { %7320 = vmatprep.subr.bf16.mxu0 %v9152_v5  ;;  %7351 = vmatprep.subr.bf16.mxu1 %v10044_v40 }
 0x6f7   :  { %v9273_v49 = vpop.f32.mrb[26].mxu1 }
 0x6f8   :  { %10067 = vst [vmem:[#allocation17_spill] sm:$0xff] %v9273_v49  ;;  %v6057_v37 = vpop.f32.mrb[27].mxu1 }
 0x6f9   :  { %v2924_v37 = vld [vmem:[#allocation5 + $0x130] sm:$0xff] }
 0x717   :  { %v2592_v50 = vpop.f32.mrb[10].mxu0  ;;  %v2663_v63 = vpop.f32.mrb[28].mxu1 }
 0x718   :  { %v8025_v22 = vadd.f32 %v2592_v50, %v8717_v27  ;;  %v2594_v33 = vpop.f32.mrb[11].mxu0  ;;  %v6092_v54 = vpop.f32.mrb[29].mxu1  ;;  %v2681_v62 = vadd.f32 %v9162_v19, %v2663_v63  ;;  %v2927_v50 = vld [vmem:[#allocation5 + $0x148] sm:$0xff] }
 0x719   :  { %v8026_v38 = vadd.f32 %v2594_v33, %v8723_v0  ;;  %v9321_v63 = vpack.c.bf16 %v2927_v50, %v2924_v37  ;;  %v2933_v33 = vld [vmem:[#allocation5 + $0x178] sm:$0xff]  ;;  %v3118_v37 = vld [vmem:[#allocation7 + $0xb0] sm:$0xff] }
 0x71a   :  { %v5191_v31 = vmul.f32 -1.442695, %v8025_v22  ;;  %v2930_v22 = vld [vmem:[#allocation5 + $0x160] sm:$0xff]  ;;  %v9368_v50 = vpack.c.bf16 %v3118_v37, %v3115_v26  ;;  %v3131_v37 = vld [vmem:[#allocation7 + $0x118] sm:$0xff] }
 0x71b   :  { %v5192_v56 = vmul.f32 -1.442695, %v8026_v38  ;;  %v9327_v54 = vpack.c.bf16 %v2933_v33, %v2930_v22  ;;  %v3100_v38 = vld [vmem:[#allocation7 + $0x20] sm:$0xff]  ;;  %v3114_v22 = vld [vmem:[#allocation7 + $0x90] sm:$0xff]  ;;  %v3117_v33 = vld [vmem:[#allocation7 + $0xa8] sm:$0xff] }
 0x71c   :  { %8138 = vpow2.f32 %v5191_v31  ;;  %v3097_v31 = vld [vmem:[#allocation7 + $0x8] sm:$0xff]  ;;  %v3128_v26 = vld [vmem:[#allocation7 + $0x100] sm:$0xff] }
 0x71d   :  { %8140 = vpow2.f32 %v5192_v56  ;;  %v9339_v56 = vpack.c.bf16 %v3100_v38, %v3097_v31  ;;  %v3116_v31 = vld [vmem:[#allocation7 + $0xa0] sm:$0xff]  ;;  %v9371_v38 = vpack.c.bf16 %v3117_v33, %v3114_v22  ;;  %v9392_v33 = vpack.c.bf16 %v3131_v37, %v3128_v26  ;;  %v3138_v26 = vld [vmem:[#allocation7 + $0x150] sm:$0xff]  ;;  %v3141_v37 = vld [vmem:[#allocation7 + $0x168] sm:$0xff] }
 0x71e   :  { %v9409_v49 = vpack.c.bf16 %v3141_v37, %v3138_v26 }
 0x720   :  { %10073 = vst [vmem:[#allocation26_spill] sm:$0xff] %v9409_v49 }
 0x726   :  { %v8139_v11 = vpop.eup %8138 }
 0x727   :  { %v2671_v44 = vadd.f32 1.0, %v8139_v11  ;;  %v8141_v32 = vpop.eup %8140  ;;  %v3096_v11 = vld [vmem:[#allocation7] sm:$0xff] }
 0x728   :  { %v2678_v4 = vadd.f32 1.0, %v8141_v32  ;;  %v3098_v32 = vld [vmem:[#allocation7 + $0x10] sm:$0xff] }
 0x729   :  { %8142 = vrcp.f32 %v2671_v44  ;;  %v3099_v44 = vld [vmem:[#allocation7 + $0x18] sm:$0xff] }
 0x733   :  { %v8143_v8 = vpop.eup %8142 }
 0x734   :  { %v2682_v42 = vmul.f32 %v8143_v8, %v2681_v62  ;;  %v9341_v62 = vpack.c.bf16 %v3099_v44, %v3096_v11  ;;  %v3101_v8 = vld [vmem:[#allocation7 + $0x28] sm:$0xff]  ;;  %v3119_v11 = vld [vmem:[#allocation7 + $0xb8] sm:$0xff] }
 0x735   :  { %v9374_v44 = vpack.c.bf16 %v3119_v11, %v3116_v31  ;;  %v3133_v31 = vld [vmem:[#allocation7 + $0x128] sm:$0xff]  ;;  %v3136_v11 = vld [vmem:[#allocation7 + $0x140] sm:$0xff] }
 0x736   :  { %v2683_v39 = vadd.f32 %v2682_v42, %v10068_v12  ;;  %v9344_v42 = vpack.c.bf16 %v3101_v8, %v3098_v32  ;;  %v3103_v12 = vld [vmem:[#allocation7 + $0x38] sm:$0xff]  ;;  %v3121_v32 = vld [vmem:[#allocation7 + $0xc8] sm:$0xff]  ;;  %v3124_v8 = vld [vmem:[#allocation7 + $0xe0] sm:$0xff] }
 0x738   :  { %8144 = vtanh.f32 %v2683_v39  ;;  %v3106_v39 = vld [vmem:[#allocation7 + $0x50] sm:$0xff] }
 0x739   :  { %8146 = vrcp.f32 %v2678_v4  ;;  %v9348_v4 = vpack.c.bf16 %v3106_v39, %v3103_v12  ;;  %v9378_v12 = vpack.c.bf16 %v3124_v8, %v3121_v32  ;;  %v3120_v39 = vld [vmem:[#allocation7 + $0xc0] sm:$0xff]  ;;  %v9396_v8 = vpack.c.bf16 %v3136_v11, %v3133_v31  ;;  %v3143_v11 = vld [vmem:[#allocation7 + $0x178] sm:$0xff] }
 0x73a   :  { %v3132_v32 = vld [vmem:[#allocation7 + $0x120] sm:$0xff] }
 0x73b   :  { %10069 = vst [vmem:[#allocation22_spill] sm:$0xff] %v9396_v8  ;;  %v3140_v31 = vld [vmem:[#allocation7 + $0x160] sm:$0xff] }
 0x742   :  { %v8145_v43 = vpop.eup %8144 }
 0x743   :  { %v2685_v47 = vsub.f32 %v9169_v52, %v8145_v43  ;;  %v8147_v55 = vpop.eup %8146  ;;  %v2900_v52 = vld [vmem:[#allocation5 + $0x70] sm:$0xff] }
 0x744   :  { %v9297_v61 = vpack.c.bf16 %v2903_v9, %v2900_v52  ;;  %v9358_v52 = vpack.c.bf16 %v3112_v7, %v3109_v29  ;;  %v3108_v9 = vld [vmem:[#allocation7 + $0x60] sm:$0xff]  ;;  %v3127_v7 = vld [vmem:[#allocation7 + $0xf8] sm:$0xff] }
 0x745   :  { %v2686_v46 = vmul.f32 %v8147_v55, %v2685_v47  ;;  %v3105_v47 = vld [vmem:[#allocation7 + $0x48] sm:$0xff]  ;;  %v3107_v55 = vld [vmem:[#allocation7 + $0x58] sm:$0xff]  ;;  %v9361_v25 = vpack.c.bf16 %v3111_v20, %v3108_v9  ;;  %v3130_v9 = vld [vmem:[#allocation7 + $0x110] sm:$0xff] }
 0x746   :  { %v3126_v20 = vld [vmem:[#allocation7 + $0xf0] sm:$0xff]  ;;  %v9387_v58 = vpack.c.bf16 %v3130_v9, %v3127_v7 }
 0x747   :  { %v9282_v23 = vadd.f32 %v8145_v43, %v2686_v46  ;;  %v3102_v43 = vld [vmem:[#allocation7 + $0x30] sm:$0xff]  ;;  %v9354_v46 = vpack.c.bf16 %v3107_v55, %v3104_v30  ;;  %v3125_v55 = vld [vmem:[#allocation7 + $0xe8] sm:$0xff]  ;;  %v9390_v22 = vpack.c.bf16 %v3129_v2, %v3126_v20 }
 0x748   :  { %v9351_v34 = vpack.c.bf16 %v3105_v47, %v3102_v43  ;;  %v3123_v43 = vld [vmem:[#allocation7 + $0xd8] sm:$0xff]  ;;  %v3122_v47 = vld [vmem:[#allocation7 + $0xd0] sm:$0xff] }
 0x749   :  { %2801 = vmatmul.mubr.f32.vlgmr.msra.gmra.mrb[26].mxu0 %v9282_v23  ;;  %6126 = vmatmul.mubr.f32.vlgmr.msra.gmra.mrb[30].mxu1 %v9282_v23  ;;  %v9381_v30 = vpack.c.bf16 %v3123_v43, %v3120_v39  ;;  %v9384_v29 = vpack.c.bf16 %v3125_v55, %v3122_v47  ;;  %v3135_v39 = vld [vmem:[#allocation7 + $0x138] sm:$0xff]  ;;  %v3134_v43 = vld [vmem:[#allocation7 + $0x130] sm:$0xff]  ;;  %v3137_v47 = vld [vmem:[#allocation7 + $0x148] sm:$0xff] }
 0x74a   :  { %7322 = vmatpush1.bf16.msra.mxu0 %v9167_v10  ;;  %7353 = vmatpush3.bf16.msra.mxu1 %v9280_v16  ;;  %v3139_v55 = vld [vmem:[#allocation7 + $0x158] sm:$0xff]  ;;  %v3142_v7 = vld [vmem:[#allocation7 + $0x170] sm:$0xff]  ;;  %v9399_v9 = vpack.c.bf16 %v3135_v39, %v3132_v32  ;;  %v9403_v20 = vpack.c.bf16 %v3137_v47, %v3134_v43  ;;  %v9413_v32 = vpack.c.bf16 %v3143_v11, %v3140_v31 }
 0x74b   :  { %7324 = vmatprep.subr.bf16.mxu0 %v9171_v15  ;;  %7354 = vmatprep.subr.bf16.mxu1 %v10044_v40  ;;  %v9405_v2 = vpack.c.bf16 %v3142_v7, %v3139_v55 }
 0x74c   :  { %2998 = vmatprep.mubr.f32.mxu0 %v10045_v60  ;;  %6160 = vmatprep.mubr.msk.f32.mxu1 %vm8351_vm0, %v10045_v60  ;;  %10070 = vst [vmem:[#allocation23_spill] sm:$0xff] %v9399_v9  ;;  %10071 = vst [vmem:[#allocation24_spill] sm:$0xff] %v9403_v20 }
 0x74d   :  { %10072 = vst [vmem:[#allocation25_spill] sm:$0xff] %v9405_v2  ;;  %10074 = vst [vmem:[#allocation19_spill] sm:$0xff] %v9413_v32 }
 0x74e   :  { %7326 = vmatpush1.bf16.msra.mxu0 %v9177_v57  ;;  %7356 = vmatpush3.bf16.msra.mxu1 %v9288_v41 }
 0x74f   :  { %7328 = vmatprep.subr.bf16.mxu0 %v9181_v28  ;;  %7357 = vmatprep.subr.bf16.mxu1 %v10044_v40 }
 0x752   :  { %7330 = vmatpush1.bf16.msra.mxu0 %v9188_v53  ;;  %7359 = vmatpush3.bf16.msra.mxu1 %v9297_v61 }
 0x753   :  { %7332 = vmatprep.subr.bf16.mxu0 %v9192_v36  ;;  %7360 = vmatprep.subr.bf16.mxu1 %v10044_v40 }
 0x756   :  { %7334 = vmatpush1.bf16.msra.mxu0 %v9196_v59  ;;  %7362 = vmatpush3.bf16.msra.mxu1 %v9303_v24 }
 0x757   :  { %7336 = vmatprep.subr.bf16.mxu0 %v9200_v18  ;;  %7363 = vmatprep.subr.bf16.mxu1 %v10044_v40 }
 0x75a   :  { %7338 = vmatpush1.bf16.msra.mxu0 %v9204_v35  ;;  %7365 = vmatpush3.bf16.msra.mxu1 %v9309_v14 }
 0x75b   :  { %7340 = vmatprep.subr.bf16.mxu0 %v9208_v45  ;;  %7366 = vmatprep.subr.bf16.mxu1 %v10044_v40 }
 0x75e   :  { %7342 = vmatpush1.bf16.msra.mxu0 %v9212_v17  ;;  %7368 = vmatpush3.bf16.msra.mxu1 %v9315_v1 }
 0x75f   :  { %7344 = vmatprep.subr.bf16.mxu0 %v9216_v13  ;;  %7369 = vmatprep.subr.bf16.mxu1 %v10044_v40 }
 0x762   :  { %7346 = vmatpush1.bf16.msra.mxu0 %v9220_v6  ;;  %7371 = vmatpush3.bf16.msra.mxu1 %v9321_v63 }
 0x763   :  { %7348 = vmatprep.subr.bf16.mxu0 %v9224_v21  ;;  %7372 = vmatprep.subr.bf16.mxu1 %v10044_v40 }
 0x766   :  { %7350 = vmatpush1.bf16.msra.mxu0 %v9228_v3  ;;  %7374 = vmatpush3.bf16.msra.mxu1 %v9327_v54 }
 0x767   :  { %7407 = vmatprep.subr.bf16.mxu1 %v10044_v40  ;;  %7376 = vmatprep.subr.bf16.mxu0 %v9339_v56 }
 0x769   :  { %2999 = vmatmul.mubr.f32.vlgmr.msra.gmra.mrb[12].mxu0 %v9282_v23  ;;  %6161 = vmatmul.mubr.f32.vlgmr.msra.gmra.mrb[32].mxu1 %v9282_v23 }
 0x76a   :  { %3208 = vmatprep.mubr.f32.mxu0 %v10045_v60  ;;  %6195 = vmatprep.mubr.msk.f32.mxu1 %vm8351_vm0, %v10045_v60 }
 0x76b   :  { %7378 = vmatpush1.bf16.msra.mxu0 %v9341_v62  ;;  %7409 = vmatpush3.bf16.msra.mxu1 %v9344_v42 }
 0x76c   :  { %7410 = vmatprep.subr.bf16.mxu1 %v10044_v40  ;;  %7380 = vmatprep.subr.bf16.mxu0 %v9348_v4 }
 0x76f   :  { %7382 = vmatpush1.bf16.msra.mxu0 %v9351_v34  ;;  %7412 = vmatpush3.bf16.msra.mxu1 %v9354_v46 }
 0x770   :  { %7413 = vmatprep.subr.bf16.mxu1 %v10044_v40  ;;  %7384 = vmatprep.subr.bf16.mxu0 %v9358_v52 }
 0x773   :  { %7386 = vmatpush1.bf16.msra.mxu0 %v9361_v25  ;;  %7415 = vmatpush3.bf16.msra.mxu1 %v9364_v48 }
 0x774   :  { %7416 = vmatprep.subr.bf16.mxu1 %v10044_v40  ;;  %7388 = vmatprep.subr.bf16.mxu0 %v9368_v50 }
 0x777   :  { %7390 = vmatpush1.bf16.msra.mxu0 %v9371_v38  ;;  %7418 = vmatpush3.bf16.msra.mxu1 %v9374_v44 }
 0x778   :  { %7419 = vmatprep.subr.bf16.mxu1 %v10044_v40  ;;  %7392 = vmatprep.subr.bf16.mxu0 %v9378_v12 }
 0x77b   :  { %7394 = vmatpush1.bf16.msra.mxu0 %v9381_v30  ;;  %7421 = vmatpush3.bf16.msra.mxu1 %v9384_v29 }
 0x77c   :  { %7396 = vmatprep.subr.bf16.mxu0 %v9387_v58  ;;  %7422 = vmatprep.subr.bf16.mxu1 %v10044_v40 }
 0x77f   :  { %7398 = vmatpush1.bf16.msra.mxu0 %v9390_v22  ;;  %7424 = vmatpush3.bf16.msra.mxu1 %v9392_v33 }
 0x780   :  { %7400 = vmatprep.subr.bf16.mxu0 %v9396_v8  ;;  %7425 = vmatprep.subr.bf16.mxu1 %v10044_v40 }
 0x783   :  { %7402 = vmatpush1.bf16.msra.mxu0 %v9399_v9  ;;  %7427 = vmatpush3.bf16.msra.mxu1 %v9403_v20  ;;  %v10076_v20 = vld [vmem:[#allocation21_spill] sm:$0xff] }
 0x784   :  { %7404 = vmatprep.subr.bf16.mxu0 %v9405_v2  ;;  %7428 = vmatprep.subr.bf16.mxu1 %v10044_v40 }
 0x787   :  { %7406 = vmatpush1.bf16.msra.mxu0 %v9409_v49  ;;  %7430 = vmatpush3.bf16.msra.mxu1 %v9413_v32 }
 0x788   :  { %7432 = vmatprep.subr.bf16.mxu0 %v9152_v5  ;;  %7463 = vmatprep.subr.bf16.mxu1 %v10044_v40 }
 0x81c   :  { %v9420_v39 = vpop.f32.mrb[30].mxu1 }
 0x81d   :  { %10075 = vst [vmem:[#allocation18_spill] sm:$0xff] %v9420_v39  ;;  %v6127_v43 = vpop.f32.mrb[31].mxu1 }
 0x83c   :  { %v3000_v47 = vpop.f32.mrb[12].mxu0  ;;  %v3071_v55 = vpop.f32.mrb[32].mxu1 }
 0x83d   :  { %v8027_v7 = vadd.f32 %v3000_v47, %v8717_v27  ;;  %v3002_v26 = vpop.f32.mrb[13].mxu0  ;;  %v6162_v37 = vpop.f32.mrb[33].mxu1  ;;  %v3089_v2 = vadd.f32 %v9162_v19, %v3071_v55  ;;  %v3720_v55 = vld [vmem:[#allocation8 + $0x70] sm:$0xff] }
 0x83e   :  { %v8028_v11 = vadd.f32 %v3002_v26, %v8723_v0 }
 0x83f   :  { %v5193_v31 = vmul.f32 -1.442695, %v8027_v7 }
 0x840   :  { %v5194_v51 = vmul.f32 -1.442695, %v8028_v11  ;;  %v3723_v11 = vld [vmem:[#allocation8 + $0x88] sm:$0xff] }
 0x841   :  { %8148 = vpow2.f32 %v5193_v31 }
 0x842   :  { %8150 = vpow2.f32 %v5194_v51  ;;  %v10077_v51 = vld [vmem:[#allocation22_spill] sm:$0xff] }
 0x84b   :  { %v8149_v49 = vpop.eup %8148 }
 0x84c   :  { %v3079_v32 = vadd.f32 1.0, %v8149_v49  ;;  %v8151_v5 = vpop.eup %8150 }
 0x84d   :  { %v3086_v8 = vadd.f32 1.0, %v8151_v5  ;;  %v3725_v5 = vld [vmem:[#allocation8 + $0x98] sm:$0xff] }
 0x84e   :  { %8152 = vrcp.f32 %v3079_v32 }
 0x858   :  { %v8153_v39 = vpop.eup %8152 }
 0x859   :  { %v3090_v43 = vmul.f32 %v8153_v39, %v3089_v2  ;;  %v3721_v39 = vld [vmem:[#allocation8 + $0x78] sm:$0xff] }
 0x85b   :  { %v3091_v9 = vadd.f32 %v3090_v43, %v10076_v20  ;;  %v3718_v20 = vld [vmem:[#allocation8 + $0x60] sm:$0xff]  ;;  %v3728_v43 = vld [vmem:[#allocation8 + $0xb0] sm:$0xff] }
 0x85d   :  { %8154 = vtanh.f32 %v3091_v9 }
 0x85e   :  { %8156 = vrcp.f32 %v3086_v8  ;;  %v3722_v8 = vld [vmem:[#allocation8 + $0x80] sm:$0xff] }
 0x867   :  { %v8155_v47 = vpop.eup %8154 }
 0x868   :  { %v3093_v7 = vsub.f32 %v9282_v23, %v8155_v47  ;;  %v8157_v37 = vpop.eup %8156 }
 0x86a   :  { %v3094_v26 = vmul.f32 %v8157_v37, %v3093_v7  ;;  %v3724_v7 = vld [vmem:[#allocation8 + $0x90] sm:$0xff]  ;;  %v9535_v37 = vpack.c.bf16 %v3723_v11, %v3720_v55 }
 0x86c   :  { %v9427_v31 = vadd.f32 %v8155_v47, %v3094_v26  ;;  %v9532_v47 = vpack.c.bf16 %v3721_v39, %v3718_v20  ;;  %v9538_v26 = vpack.c.bf16 %v3728_v43, %v3725_v5  ;;  %v10084_v20 = vld [vmem:[#allocation14_spill] sm:$0xff] }
 0x86d   :  { %v10085_v39 = vsub.s32 0, %v10084_v20 }
 0x86e   :  { %3209 = vmatmul.mubr.f32.vlgmr.msra.gmra.mrb[28].mxu0 %v9427_v31  ;;  %6196 = vmatmul.mubr.f32.vlgmr.msra.gmra.mrb[34].mxu1 %v9427_v31 }
 0x86f   :  { %7434 = vmatpush1.bf16.msra.mxu0 %v9167_v10  ;;  %7465 = vmatpush3.bf16.msra.mxu1 %v9280_v16  ;;  %v10078_v10 = vld [vmem:[#allocation23_spill] sm:$0xff] }
 0x870   :  { %7436 = vmatprep.subr.bf16.mxu0 %v9171_v15  ;;  %7466 = vmatprep.subr.bf16.mxu1 %v10044_v40  ;;  %v10079_v15 = vld [vmem:[#allocation24_spill] sm:$0xff] }
 0x871   :  { %3406 = vmatprep.mubr.f32.mxu0 %v10045_v60  ;;  %6230 = vmatprep.mubr.msk.f32.mxu1 %vm8351_vm0, %v10045_v60 }
 0x873   :  { %7438 = vmatpush1.bf16.msra.mxu0 %v9177_v57  ;;  %7468 = vmatpush3.bf16.msra.mxu1 %v9288_v41  ;;  %v10080_v57 = vld [vmem:[#allocation25_spill] sm:$0xff] }
 0x874   :  { %7440 = vmatprep.subr.bf16.mxu0 %v9181_v28  ;;  %7469 = vmatprep.subr.bf16.mxu1 %v10044_v40  ;;  %v10081_v28 = vld [vmem:[#allocation26_spill] sm:$0xff] }
 0x877   :  { %7442 = vmatpush1.bf16.msra.mxu0 %v9188_v53  ;;  %7471 = vmatpush3.bf16.msra.mxu1 %v9297_v61  ;;  %v10082_v53 = vld [vmem:[#allocation19_spill] sm:$0xff] }
 0x878   :  { %7444 = vmatprep.subr.bf16.mxu0 %v9192_v36  ;;  %7472 = vmatprep.subr.bf16.mxu1 %v10044_v40  ;;  %v3707_v36 = vld [vmem:[#allocation8 + $0x8] sm:$0xff] }
 0x87b   :  { %7446 = vmatpush1.bf16.msra.mxu0 %v9196_v59  ;;  %7474 = vmatpush3.bf16.msra.mxu1 %v9303_v24  ;;  %v3710_v59 = vld [vmem:[#allocation8 + $0x20] sm:$0xff] }
 0x87c   :  { %7448 = vmatprep.subr.bf16.mxu0 %v9200_v18  ;;  %7475 = vmatprep.subr.bf16.mxu1 %v10044_v40  ;;  %v9502_v18 = vpack.c.bf16 %v3710_v59, %v3707_v36 }
 0x87f   :  { %7450 = vmatpush1.bf16.msra.mxu0 %v9204_v35  ;;  %7477 = vmatpush3.bf16.msra.mxu1 %v9309_v14 }
 0x880   :  { %7452 = vmatprep.subr.bf16.mxu0 %v9208_v45  ;;  %7478 = vmatprep.subr.bf16.mxu1 %v10044_v40 }
 0x883   :  { %7454 = vmatpush1.bf16.msra.mxu0 %v9212_v17  ;;  %7480 = vmatpush3.bf16.msra.mxu1 %v9315_v1 }
 0x884   :  { %7456 = vmatprep.subr.bf16.mxu0 %v9216_v13  ;;  %7481 = vmatprep.subr.bf16.mxu1 %v10044_v40 }
 0x887   :  { %7458 = vmatpush1.bf16.msra.mxu0 %v9220_v6  ;;  %7483 = vmatpush3.bf16.msra.mxu1 %v9321_v63 }
 0x888   :  { %7460 = vmatprep.subr.bf16.mxu0 %v9224_v21  ;;  %7484 = vmatprep.subr.bf16.mxu1 %v10044_v40 }
 0x88b   :  { %7462 = vmatpush1.bf16.msra.mxu0 %v9228_v3  ;;  %7486 = vmatpush3.bf16.msra.mxu1 %v9327_v54  ;;  %v10083_v54 = vld [vmem:[#allocation20_spill] sm:$0xff] }
 0x88c   :  { %7488 = vmatprep.subr.bf16.mxu0 %v9339_v56  ;;  %7519 = vmatprep.subr.bf16.mxu1 %v10044_v40 }
 0x88e   :  { %3407 = vmatmul.mubr.f32.vlgmr.msra.gmra.mrb[14].mxu0 %v9427_v31  ;;  %6231 = vmatmul.mubr.f32.vlgmr.msra.gmra.mrb[36].mxu1 %v9427_v31 }
 0x88f   :  { %7490 = vmatpush1.bf16.msra.mxu0 %v9341_v62  ;;  %7521 = vmatpush3.bf16.msra.mxu1 %v9344_v42  ;;  %v3706_v42 = vld [vmem:[#allocation8] sm:$0xff] }
 0x890   :  { %7492 = vmatprep.subr.bf16.mxu0 %v9348_v4  ;;  %7522 = vmatprep.subr.bf16.mxu1 %v10044_v40 }
 0x891   :  { %3616 = vmatprep.mubr.f32.mxu0 %v10045_v60  ;;  %6265 = vmatprep.mubr.msk.f32.mxu1 %vm8351_vm0, %v10045_v60 }
 0x893   :  { %7494 = vmatpush1.bf16.msra.mxu0 %v9351_v34  ;;  %7524 = vmatpush3.bf16.msra.mxu1 %v9354_v46  ;;  %v3708_v34 = vld [vmem:[#allocation8 + $0x10] sm:$0xff]  ;;  %v3711_v46 = vld [vmem:[#allocation8 + $0x28] sm:$0xff] }
 0x894   :  { %7496 = vmatprep.subr.bf16.mxu0 %v9358_v52  ;;  %7525 = vmatprep.subr.bf16.mxu1 %v10044_v40 }
 0x897   :  { %7498 = vmatpush1.bf16.msra.mxu0 %v9361_v25  ;;  %7527 = vmatpush3.bf16.msra.mxu1 %v9364_v48  ;;  %v3713_v25 = vld [vmem:[#allocation8 + $0x38] sm:$0xff]  ;;  %v3716_v48 = vld [vmem:[#allocation8 + $0x50] sm:$0xff] }
 0x898   :  { %7500 = vmatprep.subr.bf16.mxu0 %v9368_v50  ;;  %7528 = vmatprep.subr.bf16.mxu1 %v10044_v40 }
 0x89b   :  { %7502 = vmatpush1.bf16.msra.mxu0 %v9371_v38  ;;  %7530 = vmatpush3.bf16.msra.mxu1 %v9374_v44  ;;  %v9514_v44 = vpack.c.bf16 %v3711_v46, %v3708_v34  ;;  %v3752_v34 = vld [vmem:[#allocation8 + $0x170] sm:$0xff] }
 0x89c   :  { %7504 = vmatprep.subr.bf16.mxu0 %v9378_v12  ;;  %7531 = vmatprep.subr.bf16.mxu1 %v10044_v40 }
 0x89f   :  { %7506 = vmatpush1.bf16.msra.mxu0 %v9381_v30  ;;  %7533 = vmatpush3.bf16.msra.mxu1 %v9384_v29  ;;  %v9516_v30 = vpack.c.bf16 %v3716_v48, %v3713_v25  ;;  %v3715_v29 = vld [vmem:[#allocation8 + $0x48] sm:$0xff] }
 0x8a0   :  { %7508 = vmatprep.subr.bf16.mxu0 %v9387_v58  ;;  %7534 = vmatprep.subr.bf16.mxu1 %v10044_v40  ;;  %v3714_v58 = vld [vmem:[#allocation8 + $0x40] sm:$0xff] }
 0x8a3   :  { %7510 = vmatpush1.bf16.msra.mxu0 %v9390_v22  ;;  %7536 = vmatpush3.bf16.msra.mxu1 %v9392_v33  ;;  %v3717_v22 = vld [vmem:[#allocation8 + $0x58] sm:$0xff]  ;;  %v3719_v33 = vld [vmem:[#allocation8 + $0x68] sm:$0xff] }
 0x8a4   :  { %7512 = vmatprep.subr.bf16.mxu0 %v10077_v51  ;;  %7537 = vmatprep.subr.bf16.mxu1 %v10044_v40  ;;  %v9522_v2 = vpack.c.bf16 %v3717_v22, %v3714_v58  ;;  %v9525_v32 = vpack.c.bf16 %v3722_v8, %v3719_v33  ;;  %v3726_v51 = vld [vmem:[#allocation8 + $0xa0] sm:$0xff] }
 0x8a5   :  { %v415_v8 = vld [vmem:[%s10001_s7] sm:$0x7] }
 0x8a6   :  { %v9637_v55 = vrot.slane %v415_v8, %v10085_v39 }
 0x8a7   :  { %7514 = vmatpush1.bf16.msra.mxu0 %v10078_v10  ;;  %7539 = vmatpush3.bf16.msra.mxu1 %v10079_v15  ;;  %v3729_v10 = vld [vmem:[#allocation8 + $0xb8] sm:$0xff]  ;;  %v3731_v15 = vld [vmem:[#allocation8 + $0xc8] sm:$0xff] }
 0x8a8   :  { %7516 = vmatprep.subr.bf16.mxu0 %v10080_v57  ;;  %7540 = vmatprep.subr.bf16.mxu1 %v10044_v40  ;;  %v3734_v57 = vld [vmem:[#allocation8 + $0xe0] sm:$0xff]  ;;  %v9545_v36 = vpack.c.bf16 %v3729_v10, %v3726_v51  ;;  %v10086_v10 = vsub.s32 1, %v10084_v20 }
 0x8a9   :  { %v9548_v59 = vpack.c.bf16 %v3734_v57, %v3731_v15 }
 0x8aa   :  { %v9642_v15 = vrot.slane %v415_v8, %v10086_v10  ;;  %v10089_v10 = vld [vmem:[#allocation15_spill] sm:$0xff] }
 0x8ab   :  { %7518 = vmatpush1.bf16.msra.mxu0 %v10081_v28  ;;  %7542 = vmatpush3.bf16.msra.mxu1 %v10082_v53  ;;  %v3730_v53 = vld [vmem:[#allocation8 + $0xc0] sm:$0xff] }
 0x8ac   :  { %7575 = vmatprep.subr.bf16.mxu1 %v10044_v40  ;;  %7544 = vmatprep.subr.bf16.mxu0 %v9502_v18 }
 0x941   :  { %v9505_v35 = vpop.f32.mrb[34].mxu1 }
 0x942   :  { %v6197_v45 = vpop.f32.mrb[35].mxu1 }
 0x943   :  { %v3733_v45 = vld [vmem:[#allocation8 + $0xd8] sm:$0xff] }
 0x961   :  { %v3408_v17 = vpop.f32.mrb[14].mxu0  ;;  %v3479_v13 = vpop.f32.mrb[36].mxu1 }
 0x962   :  { %v8029_v6 = vadd.f32 %v3408_v17, %v8717_v27  ;;  %v3410_v21 = vpop.f32.mrb[15].mxu0  ;;  %v6232_v3 = vpop.f32.mrb[37].mxu1  ;;  %v3497_v14 = vadd.f32 %v9162_v19, %v3479_v13  ;;  %v3712_v19 = vld [vmem:[#allocation8 + $0x30] sm:$0xff]  ;;  %v3735_v13 = vld [vmem:[#allocation8 + $0xe8] sm:$0xff] }
 0x963   :  { %v8030_v16 = vadd.f32 %v3410_v21, %v8723_v0  ;;  %v3709_v0 = vld [vmem:[#allocation8 + $0x18] sm:$0xff]  ;;  %v9519_v9 = vpack.c.bf16 %v3715_v29, %v3712_v19  ;;  %v3732_v17 = vld [vmem:[#allocation8 + $0xd0] sm:$0xff]  ;;  %v9552_v3 = vpack.c.bf16 %v3733_v45, %v3730_v53  ;;  %v3750_v19 = vld [vmem:[#allocation8 + $0x160] sm:$0xff] }
 0x964   :  { %v5195_v49 = vmul.f32 -1.442695, %v8029_v6  ;;  %v9512_v38 = vpack.c.bf16 %v3709_v0, %v3706_v42  ;;  %v3737_v6 = vld [vmem:[#allocation8 + $0xf8] sm:$0xff]  ;;  %v3740_v21 = vld [vmem:[#allocation8 + $0x110] sm:$0xff] }
 0x965   :  { %v5196_v23 = vmul.f32 -1.442695, %v8030_v16  ;;  %v9555_v16 = vpack.c.bf16 %v3735_v13, %v3732_v17  ;;  %v3744_v42 = vld [vmem:[#allocation8 + $0x130] sm:$0xff]  ;;  %v3749_v0 = vld [vmem:[#allocation8 + $0x158] sm:$0xff]  ;;  %v9648_v13 = vld [vmem:[%s10002_s8] ss:$0 sm:$0xff] }
 0x966   :  { %8158 = vpow2.f32 %v5195_v49  ;;  %v3736_v49 = vld [vmem:[#allocation8 + $0xf0] sm:$0xff]  ;;  %v9578_v48 = vpack.c.bf16 %v3752_v34, %v3749_v0 }
 0x967   :  { %8160 = vpow2.f32 %v5196_v23  ;;  %v9558_v23 = vpack.c.bf16 %v3740_v21, %v3737_v6  ;;  %v10087_v6 = vsub.s32 2, %v10084_v20 }
 0x969   :  { %v9652_v21 = vrot.slane %v415_v8, %v10087_v6 }
 0x970   :  { %v8159_v41 = vpop.eup %8158 }
 0x971   :  { %v3487_v61 = vadd.f32 1.0, %v8159_v41  ;;  %v8161_v24 = vpop.eup %8160  ;;  %v3739_v41 = vld [vmem:[#allocation8 + $0x108] sm:$0xff] }
 0x972   :  { %v3494_v62 = vadd.f32 1.0, %v8161_v24  ;;  %v3741_v24 = vld [vmem:[#allocation8 + $0x118] sm:$0xff] }
 0x973   :  { %8162 = vrcp.f32 %v3487_v61  ;;  %v3738_v61 = vld [vmem:[#allocation8 + $0x100] sm:$0xff] }
 0x97d   :  { %v8163_v1 = vpop.eup %8162 }
 0x97e   :  { %v3498_v63 = vmul.f32 %v8163_v1, %v3497_v14  ;;  %v3743_v14 = vld [vmem:[#allocation8 + $0x128] sm:$0xff]  ;;  %v3746_v1 = vld [vmem:[#allocation8 + $0x140] sm:$0xff] }
 0x980   :  { %v3499_v56 = vadd.f32 %v3498_v63, %v10083_v54  ;;  %v9562_v63 = vpack.c.bf16 %v3739_v41, %v3736_v49  ;;  %v3742_v54 = vld [vmem:[#allocation8 + $0x120] sm:$0xff] }
 0x982   :  { %8164 = vtanh.f32 %v3499_v56  ;;  %v9565_v56 = vpack.c.bf16 %v3741_v24, %v3738_v61  ;;  %v10088_v24 = vld [vmem:[#allocation13_spill] sm:$0xff] }
 0x983   :  { %8166 = vrcp.f32 %v3494_v62  ;;  %v9568_v62 = vpack.c.bf16 %v3746_v1, %v3743_v14  ;;  %v834_v14 = vadd.f32 %v10088_v24, %v9652_v21 }
 0x98c   :  { %v8165_v27 = vpop.eup %8164 }
 0x98d   :  { %v3501_v4 = vsub.f32 %v9427_v31, %v8165_v27  ;;  %v8167_v52 = vpop.eup %8166  ;;  %v3727_v31 = vld [vmem:[#allocation8 + $0xa8] sm:$0xff] }
 0x98e   :  { %v9542_v28 = vpack.c.bf16 %v3727_v31, %v3724_v7 }
 0x98f   :  { %v3502_v50 = vmul.f32 %v8167_v52, %v3501_v4  ;;  %v3747_v4 = vld [vmem:[#allocation8 + $0x148] sm:$0xff]  ;;  %v3748_v52 = vld [vmem:[#allocation8 + $0x150] sm:$0xff] }
 0x990   :  { %v9575_v25 = vpack.c.bf16 %v3747_v4, %v3744_v42 }
 0x991   :  { %v3503_v12 = vadd.f32 %v8165_v27, %v3502_v50  ;;  %v3745_v27 = vld [vmem:[#allocation8 + $0x138] sm:$0xff]  ;;  %v3751_v50 = vld [vmem:[#allocation8 + $0x168] sm:$0xff] }
 0x992   :  { %v9572_v46 = vpack.c.bf16 %v3745_v27, %v3742_v54  ;;  %v9582_v29 = vpack.c.bf16 %v3751_v50, %v3748_v52 }
 0x993   :  { %3617 = vmatmul.mubr.f32.vlgmr.msra.gmra.mrb[30].mxu0 %v3503_v12  ;;  %6266 = vmatmul.mubr.f32.vlgmr.msra.gmra.mrb[38].mxu1 %v3503_v12  ;;  %v3753_v12 = vld [vmem:[#allocation8 + $0x178] sm:$0xff] }
 0x994   :  { %7546 = vmatpush1.bf16.msra.mxu0 %v9512_v38  ;;  %7577 = vmatpush3.bf16.msra.mxu1 %v9514_v44  ;;  %v9585_v58 = vpack.c.bf16 %v3753_v12, %v3750_v19 }
 0x995   :  { %7548 = vmatprep.subr.bf16.mxu0 %v9516_v30  ;;  %7578 = vmatprep.subr.bf16.mxu1 %v10044_v40 }
 0x996   :  { %3818 = vmatprep.mubr.f32.mxu0 %v10045_v60  ;;  %6300 = vmatprep.mubr.msk.f32.mxu1 %vm8351_vm0, %v10045_v60 }
 0x998   :  { %7550 = vmatpush1.bf16.msra.mxu0 %v9519_v9  ;;  %7580 = vmatpush3.bf16.msra.mxu1 %v9522_v2 }
 0x999   :  { %7552 = vmatprep.subr.bf16.mxu0 %v9525_v32  ;;  %7581 = vmatprep.subr.bf16.mxu1 %v10044_v40 }
 0x99c   :  { %7554 = vmatpush1.bf16.msra.mxu0 %v9532_v47  ;;  %7583 = vmatpush3.bf16.msra.mxu1 %v9535_v37 }
 0x99d   :  { %7556 = vmatprep.subr.bf16.mxu0 %v9538_v26  ;;  %7584 = vmatprep.subr.bf16.mxu1 %v10044_v40 }
 0x9a0   :  { %7558 = vmatpush1.bf16.msra.mxu0 %v9542_v28  ;;  %7586 = vmatpush3.bf16.msra.mxu1 %v9545_v36 }
 0x9a1   :  { %7560 = vmatprep.subr.bf16.mxu0 %v9548_v59  ;;  %7587 = vmatprep.subr.bf16.mxu1 %v10044_v40 }
 0x9a4   :  { %7562 = vmatpush1.bf16.msra.mxu0 %v9552_v3  ;;  %7589 = vmatpush3.bf16.msra.mxu1 %v9555_v16 }
 0x9a5   :  { %7564 = vmatprep.subr.bf16.mxu0 %v9558_v23  ;;  %7590 = vmatprep.subr.bf16.mxu1 %v10044_v40 }
 0x9a8   :  { %7566 = vmatpush1.bf16.msra.mxu0 %v9562_v63  ;;  %7592 = vmatpush3.bf16.msra.mxu1 %v9565_v56 }
 0x9a9   :  { %7568 = vmatprep.subr.bf16.mxu0 %v9568_v62  ;;  %7593 = vmatprep.subr.bf16.mxu1 %v10044_v40 }
 0x9ac   :  { %7570 = vmatpush1.bf16.msra.mxu0 %v9572_v46  ;;  %7595 = vmatpush3.bf16.msra.mxu1 %v9575_v25 }
 0x9ad   :  { %7572 = vmatprep.subr.bf16.mxu0 %v9578_v48  ;;  %7596 = vmatprep.subr.bf16.mxu1 %v10044_v40 }
 0x9b0   :  { %7574 = vmatpush1.bf16.msra.mxu0 %v9582_v29  ;;  %7598 = vmatpush3.bf16.msra.mxu1 %v9585_v58 }
 0x9b1   :  { %7600 = vmatprep.subr.bf16.mxu0 %v9502_v18  ;;  %7631 = vmatprep.subr.bf16.mxu1 %v10044_v40 }
 0x9b3   :  { %3819 = vmatmul.mubr.f32.vlgmr.msra.gmra.mrb[16].mxu0 %v10045_v60  ;;  %6301 = vmatmul.mubr.f32.vlgmr.msra.gmra.mrb[40].mxu1 %v10045_v60 }
 0x9b4   :  { %7602 = vmatpush1.bf16.msra.mxu0 %v9512_v38  ;;  %7633 = vmatpush3.bf16.msra.mxu1 %v9514_v44 }
 0x9b5   :  { %7604 = vmatprep.subr.bf16.mxu0 %v9516_v30  ;;  %7634 = vmatprep.subr.bf16.mxu1 %v10044_v40 }
 0x9b6   :  { %3983 = vmatprep.mubr.f32.mxu0 %v10045_v60  ;;  %6335 = vmatprep.mubr.msk.f32.mxu1 %vm8351_vm0, %v10045_v60 }
 0x9b8   :  { %7606 = vmatpush1.bf16.msra.mxu0 %v9519_v9  ;;  %7636 = vmatpush3.bf16.msra.mxu1 %v9522_v2 }
 0x9b9   :  { %7608 = vmatprep.subr.bf16.mxu0 %v9525_v32  ;;  %7637 = vmatprep.subr.bf16.mxu1 %v10044_v40 }
 0x9bc   :  { %7610 = vmatpush1.bf16.msra.mxu0 %v9532_v47  ;;  %7639 = vmatpush3.bf16.msra.mxu1 %v9535_v37 }
 0x9bd   :  { %7612 = vmatprep.subr.bf16.mxu0 %v9538_v26  ;;  %7640 = vmatprep.subr.bf16.mxu1 %v10044_v40 }
 0x9c0   :  { %7614 = vmatpush1.bf16.msra.mxu0 %v9542_v28  ;;  %7642 = vmatpush3.bf16.msra.mxu1 %v9545_v36 }
 0x9c1   :  { %7616 = vmatprep.subr.bf16.mxu0 %v9548_v59  ;;  %7643 = vmatprep.subr.bf16.mxu1 %v10044_v40 }
 0x9c4   :  { %7618 = vmatpush1.bf16.msra.mxu0 %v9552_v3  ;;  %7645 = vmatpush3.bf16.msra.mxu1 %v9555_v16 }
 0x9c5   :  { %7620 = vmatprep.subr.bf16.mxu0 %v9558_v23  ;;  %7646 = vmatprep.subr.bf16.mxu1 %v10044_v40 }
 0x9c8   :  { %7622 = vmatpush1.bf16.msra.mxu0 %v9562_v63  ;;  %7648 = vmatpush3.bf16.msra.mxu1 %v9565_v56 }
 0x9c9   :  { %7624 = vmatprep.subr.bf16.mxu0 %v9568_v62  ;;  %7649 = vmatprep.subr.bf16.mxu1 %v10044_v40 }
 0x9cc   :  { %7626 = vmatpush1.bf16.msra.mxu0 %v9572_v46  ;;  %7651 = vmatpush3.bf16.msra.mxu1 %v9575_v25 }
 0x9cd   :  { %7628 = vmatprep.subr.bf16.mxu0 %v9578_v48  ;;  %7652 = vmatprep.subr.bf16.mxu1 %v10044_v40 }
 0x9d0   :  { %7630 = vmatpush1.bf16.msra.mxu0 %v9582_v29  ;;  %7654 = vmatpush3.bf16.msra.mxu1 %v9585_v58 }
 0x9d1   :  { %7656 = vmatprep.subr.bf16.mxu0 %v9502_v18  ;;  %7687 = vmatprep.subr.bf16.mxu1 %v10044_v40 }
 0xa66   :  { %v9630_v22 = vpop.f32.mrb[38].mxu1 }
 0xa67   :  { %v6267_v33 = vpop.f32.mrb[39].mxu1 }
 0xa86   :  { %v3820_v11 = vpop.f32.mrb[16].mxu0  ;;  %v3891_v5 = vpop.f32.mrb[40].mxu1 }
 0xa87   :  { %v8031_v43 = vadd.f32 %v3820_v11, %v9637_v55  ;;  %v3822_v7 = vpop.f32.mrb[17].mxu0  ;;  %v6302_v31 = vpop.f32.mrb[41].mxu1  ;;  %v3909_v49 = vadd.f32 %v9648_v13, %v3891_v5 }
 0xa88   :  { %v8032_v57 = vadd.f32 %v3822_v7, %v9642_v15 }
 0xa89   :  { %v5198_v51 = vmul.f32 -1.442695, %v8031_v43 }
 0xa8a   :  { %v5199_v53 = vmul.f32 -1.442695, %v8032_v57  ;;  %v1242_v57 = vadd.f32 %v10089_v10, %v9652_v21 }
 0xa8b   :  { %8168 = vpow2.f32 %v5198_v51 }
 0xa8c   :  { %8170 = vpow2.f32 %v5199_v53 }
 0xa95   :  { %v8169_v45 = vpop.eup %8168 }
 0xa96   :  { %v3899_v17 = vadd.f32 1.0, %v8169_v45  ;;  %v8171_v41 = vpop.eup %8170 }
 0xa97   :  { %v3906_v54 = vadd.f32 1.0, %v8171_v41 }
 0xa98   :  { %8172 = vrcp.f32 %v3899_v17 }
 0xaa2   :  { %v8173_v61 = vpop.eup %8172 }
 0xaa3   :  { %v3910_v1 = vmul.f32 %v8173_v61, %v3909_v49 }
 0xaa5   :  { %v3911_v27 = vadd.f32 %v3910_v1, %v834_v14 }
 0xaa7   :  { %8174 = vtanh.f32 %v3911_v27 }
 0xaa8   :  { %8176 = vrcp.f32 %v3906_v54 }
 0xab1   :  { %v8175_v42 = vpop.eup %8174 }
 0xab2   :  { %v3913_v4 = vsub.f32 0.0, %v8175_v42  ;;  %v8177_v0 = vpop.eup %8176 }
 0xab4   :  { %v3914_v34 = vmul.f32 %v8177_v0, %v3913_v4 }
 0xab6   :  { %v9657_v52 = vadd.f32 %v8175_v42, %v3914_v34 }
 0xab8   :  { %3984 = vmatmul.mubr.f32.vlgmr.msra.gmra.mrb[18].mxu0 %v9657_v52  ;;  %6336 = vmatmul.mubr.f32.vlgmr.msra.gmra.mrb[42].mxu1 %v9657_v52 }
 0xab9   :  { %7658 = vmatpush1.bf16.msra.mxu0 %v9512_v38  ;;  %7689 = vmatpush3.bf16.msra.mxu1 %v9514_v44 }
 0xaba   :  { %7660 = vmatprep.subr.bf16.mxu0 %v9516_v30  ;;  %7690 = vmatprep.subr.bf16.mxu1 %v10044_v40 }
 0xabb   :  { %4148 = vmatprep.mubr.f32.mxu0 %v10045_v60  ;;  %6370 = vmatprep.mubr.msk.f32.mxu1 %vm8351_vm0, %v10045_v60 }
 0xabd   :  { %7662 = vmatpush1.bf16.msra.mxu0 %v9519_v9  ;;  %7692 = vmatpush3.bf16.msra.mxu1 %v9522_v2 }
 0xabe   :  { %7664 = vmatprep.subr.bf16.mxu0 %v9525_v32  ;;  %7693 = vmatprep.subr.bf16.mxu1 %v10044_v40 }
 0xac1   :  { %7666 = vmatpush1.bf16.msra.mxu0 %v9532_v47  ;;  %7695 = vmatpush3.bf16.msra.mxu1 %v9535_v37 }
 0xac2   :  { %7668 = vmatprep.subr.bf16.mxu0 %v9538_v26  ;;  %7696 = vmatprep.subr.bf16.mxu1 %v10044_v40 }
 0xac5   :  { %7670 = vmatpush1.bf16.msra.mxu0 %v9542_v28  ;;  %7698 = vmatpush3.bf16.msra.mxu1 %v9545_v36 }
 0xac6   :  { %7672 = vmatprep.subr.bf16.mxu0 %v9548_v59  ;;  %7699 = vmatprep.subr.bf16.mxu1 %v10044_v40 }
 0xac9   :  { %7674 = vmatpush1.bf16.msra.mxu0 %v9552_v3  ;;  %7701 = vmatpush3.bf16.msra.mxu1 %v9555_v16 }
 0xaca   :  { %7676 = vmatprep.subr.bf16.mxu0 %v9558_v23  ;;  %7702 = vmatprep.subr.bf16.mxu1 %v10044_v40 }
 0xacd   :  { %7678 = vmatpush1.bf16.msra.mxu0 %v9562_v63  ;;  %7704 = vmatpush3.bf16.msra.mxu1 %v9565_v56 }
 0xace   :  { %7680 = vmatprep.subr.bf16.mxu0 %v9568_v62  ;;  %7705 = vmatprep.subr.bf16.mxu1 %v10044_v40 }
 0xad1   :  { %7682 = vmatpush1.bf16.msra.mxu0 %v9572_v46  ;;  %7707 = vmatpush3.bf16.msra.mxu1 %v9575_v25 }
 0xad2   :  { %7684 = vmatprep.subr.bf16.mxu0 %v9578_v48  ;;  %7708 = vmatprep.subr.bf16.mxu1 %v10044_v40 }
 0xad5   :  { %7686 = vmatpush1.bf16.msra.mxu0 %v9582_v29  ;;  %7710 = vmatpush3.bf16.msra.mxu1 %v9585_v58 }
 0xad6   :  { %7712 = vmatprep.subr.bf16.mxu0 %v9502_v18  ;;  %7743 = vmatprep.subr.bf16.mxu1 %v10044_v40 }
 0xb8b   :  { %v3985_v50 = vpop.f32.mrb[18].mxu0  ;;  %v4056_v19 = vpop.f32.mrb[42].mxu1 }
 0xb8c   :  { %v8033_v12 = vadd.f32 %v3985_v50, %v9637_v55  ;;  %v3987_v33 = vpop.f32.mrb[19].mxu0  ;;  %v6337_v8 = vpop.f32.mrb[43].mxu1  ;;  %v4074_v31 = vadd.f32 %v9648_v13, %v4056_v19 }
 0xb8d   :  { %v8034_v39 = vadd.f32 %v3987_v33, %v9642_v15  ;;  %v10090_v8 = vld [vmem:[#allocation27_spill] sm:$0xff] }
 0xb8e   :  { %v5200_v20 = vmul.f32 -1.442695, %v8033_v12 }
 0xb8f   :  { %v5201_v11 = vmul.f32 -1.442695, %v8034_v39 }
 0xb90   :  { %8178 = vpow2.f32 %v5200_v20  ;;  %v1650_v20 = vadd.f32 %v10090_v8, %v9652_v21 }
 0xb91   :  { %8180 = vpow2.f32 %v5201_v11 }
 0xb9a   :  { %v8179_v5 = vpop.eup %8178 }
 0xb9b   :  { %v4064_v43 = vadd.f32 1.0, %v8179_v5  ;;  %v8181_v7 = vpop.eup %8180 }
 0xb9c   :  { %v4071_v17 = vadd.f32 1.0, %v8181_v7 }
 0xb9d   :  { %8182 = vrcp.f32 %v4064_v43 }
 0xba7   :  { %v8183_v51 = vpop.eup %8182 }
 0xba8   :  { %v4075_v53 = vmul.f32 %v8183_v51, %v4074_v31 }
 0xbaa   :  { %v4076_v45 = vadd.f32 %v4075_v53, %v1242_v57 }
 0xbac   :  { %8184 = vtanh.f32 %v4076_v45 }
 0xbad   :  { %8186 = vrcp.f32 %v4071_v17 }
 0xbb6   :  { %v8185_v6 = vpop.eup %8184 }
 0xbb7   :  { %v4078_v49 = vsub.f32 %v9657_v52, %v8185_v6  ;;  %v8187_v41 = vpop.eup %8186 }
 0xbb9   :  { %v4079_v61 = vmul.f32 %v8187_v41, %v4078_v49 }
 0xbbb   :  { %v9702_v24 = vadd.f32 %v8185_v6, %v4079_v61 }
 0xbbd   :  { %4149 = vmatmul.mubr.f32.vlgmr.msra.gmra.mrb[20].mxu0 %v9702_v24  ;;  %6371 = vmatmul.mubr.f32.vlgmr.msra.gmra.mrb[44].mxu1 %v9702_v24 }
 0xbbe   :  { %7714 = vmatpush1.bf16.msra.mxu0 %v9512_v38  ;;  %7745 = vmatpush3.bf16.msra.mxu1 %v9514_v44 }
 0xbbf   :  { %7716 = vmatprep.subr.bf16.mxu0 %v9516_v30  ;;  %7746 = vmatprep.subr.bf16.mxu1 %v10044_v40 }
 0xbc0   :  { %4313 = vmatprep.mubr.f32.mxu0 %v10045_v60  ;;  %6405 = vmatprep.mubr.msk.f32.mxu1 %vm8351_vm0, %v10045_v60 }
 0xbc2   :  { %7718 = vmatpush1.bf16.msra.mxu0 %v9519_v9  ;;  %7748 = vmatpush3.bf16.msra.mxu1 %v9522_v2 }
 0xbc3   :  { %7720 = vmatprep.subr.bf16.mxu0 %v9525_v32  ;;  %7749 = vmatprep.subr.bf16.mxu1 %v10044_v40 }
 0xbc6   :  { %7722 = vmatpush1.bf16.msra.mxu0 %v9532_v47  ;;  %7751 = vmatpush3.bf16.msra.mxu1 %v9535_v37 }
 0xbc7   :  { %7724 = vmatprep.subr.bf16.mxu0 %v9538_v26  ;;  %7752 = vmatprep.subr.bf16.mxu1 %v10044_v40 }
 0xbca   :  { %7726 = vmatpush1.bf16.msra.mxu0 %v9542_v28  ;;  %7754 = vmatpush3.bf16.msra.mxu1 %v9545_v36 }
 0xbcb   :  { %7728 = vmatprep.subr.bf16.mxu0 %v9548_v59  ;;  %7755 = vmatprep.subr.bf16.mxu1 %v10044_v40 }
 0xbce   :  { %7730 = vmatpush1.bf16.msra.mxu0 %v9552_v3  ;;  %7757 = vmatpush3.bf16.msra.mxu1 %v9555_v16 }
 0xbcf   :  { %7732 = vmatprep.subr.bf16.mxu0 %v9558_v23  ;;  %7758 = vmatprep.subr.bf16.mxu1 %v10044_v40 }
 0xbd2   :  { %7734 = vmatpush1.bf16.msra.mxu0 %v9562_v63  ;;  %7760 = vmatpush3.bf16.msra.mxu1 %v9565_v56 }
 0xbd3   :  { %7736 = vmatprep.subr.bf16.mxu0 %v9568_v62  ;;  %7761 = vmatprep.subr.bf16.mxu1 %v10044_v40 }
 0xbd6   :  { %7738 = vmatpush1.bf16.msra.mxu0 %v9572_v46  ;;  %7763 = vmatpush3.bf16.msra.mxu1 %v9575_v25 }
 0xbd7   :  { %7740 = vmatprep.subr.bf16.mxu0 %v9578_v48  ;;  %7764 = vmatprep.subr.bf16.mxu1 %v10044_v40 }
 0xbda   :  { %7742 = vmatpush1.bf16.msra.mxu0 %v9582_v29  ;;  %7766 = vmatpush3.bf16.msra.mxu1 %v9585_v58 }
 0xbdb   :  { %7768 = vmatprep.subr.bf16.mxu0 %v9502_v18  ;;  %7799 = vmatprep.subr.bf16.mxu1 %v10044_v40 }
 0xc90   :  { %v4150_v14 = vpop.f32.mrb[20].mxu0  ;;  %v4221_v1 = vpop.f32.mrb[44].mxu1 }
 0xc91   :  { %v8035_v54 = vadd.f32 %v4150_v14, %v9637_v55  ;;  %v4152_v27 = vpop.f32.mrb[21].mxu0  ;;  %v6372_v42 = vpop.f32.mrb[45].mxu1  ;;  %v4239_v12 = vadd.f32 %v9648_v13, %v4221_v1 }
 0xc92   :  { %v8036_v0 = vadd.f32 %v4152_v27, %v9642_v15  ;;  %v10091_v42 = vld [vmem:[#allocation16_spill] sm:$0xff] }
 0xc93   :  { %v5202_v4 = vmul.f32 -1.442695, %v8035_v54 }
 0xc94   :  { %v5203_v34 = vmul.f32 -1.442695, %v8036_v0 }
 0xc95   :  { %8188 = vpow2.f32 %v5202_v4  ;;  %v2058_v4 = vadd.f32 %v10091_v42, %v9652_v21 }
 0xc96   :  { %8190 = vpow2.f32 %v5203_v34 }
 0xc9f   :  { %v8189_v52 = vpop.eup %8188 }
 0xca0   :  { %v4229_v50 = vadd.f32 1.0, %v8189_v52  ;;  %v8191_v19 = vpop.eup %8190 }
 0xca1   :  { %v4236_v5 = vadd.f32 1.0, %v8191_v19 }
 0xca2   :  { %8192 = vrcp.f32 %v4229_v50 }
 0xcac   :  { %v8193_v33 = vpop.eup %8192 }
 0xcad   :  { %v4240_v39 = vmul.f32 %v8193_v33, %v4239_v12 }
 0xcaf   :  { %v4241_v11 = vadd.f32 %v4240_v39, %v1650_v20 }
 0xcb1   :  { %8194 = vtanh.f32 %v4241_v11 }
 0xcb2   :  { %8196 = vrcp.f32 %v4236_v5 }
 0xcbb   :  { %v8195_v43 = vpop.eup %8194 }
 0xcbc   :  { %v4243_v7 = vsub.f32 %v9702_v24, %v8195_v43  ;;  %v8197_v31 = vpop.eup %8196 }
 0xcbe   :  { %v4244_v51 = vmul.f32 %v8197_v31, %v4243_v7 }
 0xcc0   :  { %v9747_v10 = vadd.f32 %v8195_v43, %v4244_v51 }
 0xcc2   :  { %4314 = vmatmul.mubr.f32.vlgmr.msra.gmra.mrb[22].mxu0 %v9747_v10  ;;  %6406 = vmatmul.mubr.f32.vlgmr.msra.gmra.mrb[46].mxu1 %v9747_v10 }
 0xcc3   :  { %7770 = vmatpush1.bf16.msra.mxu0 %v9512_v38  ;;  %7801 = vmatpush3.bf16.msra.mxu1 %v9514_v44 }
 0xcc4   :  { %7772 = vmatprep.subr.bf16.mxu0 %v9516_v30  ;;  %7802 = vmatprep.subr.bf16.mxu1 %v10044_v40 }
 0xcc5   :  { %4478 = vmatprep.mubr.f32.mxu0 %v10045_v60  ;;  %6440 = vmatprep.mubr.msk.f32.mxu1 %vm8351_vm0, %v10045_v60 }
 0xcc7   :  { %7774 = vmatpush1.bf16.msra.mxu0 %v9519_v9  ;;  %7804 = vmatpush3.bf16.msra.mxu1 %v9522_v2 }
 0xcc8   :  { %7776 = vmatprep.subr.bf16.mxu0 %v9525_v32  ;;  %7805 = vmatprep.subr.bf16.mxu1 %v10044_v40 }
 0xccb   :  { %7778 = vmatpush1.bf16.msra.mxu0 %v9532_v47  ;;  %7807 = vmatpush3.bf16.msra.mxu1 %v9535_v37 }
 0xccc   :  { %7780 = vmatprep.subr.bf16.mxu0 %v9538_v26  ;;  %7808 = vmatprep.subr.bf16.mxu1 %v10044_v40 }
 0xccf   :  { %7782 = vmatpush1.bf16.msra.mxu0 %v9542_v28  ;;  %7810 = vmatpush3.bf16.msra.mxu1 %v9545_v36 }
 0xcd0   :  { %7784 = vmatprep.subr.bf16.mxu0 %v9548_v59  ;;  %7811 = vmatprep.subr.bf16.mxu1 %v10044_v40 }
 0xcd3   :  { %7786 = vmatpush1.bf16.msra.mxu0 %v9552_v3  ;;  %7813 = vmatpush3.bf16.msra.mxu1 %v9555_v16 }
 0xcd4   :  { %7788 = vmatprep.subr.bf16.mxu0 %v9558_v23  ;;  %7814 = vmatprep.subr.bf16.mxu1 %v10044_v40 }
 0xcd7   :  { %7790 = vmatpush1.bf16.msra.mxu0 %v9562_v63  ;;  %7816 = vmatpush3.bf16.msra.mxu1 %v9565_v56 }
 0xcd8   :  { %7792 = vmatprep.subr.bf16.mxu0 %v9568_v62  ;;  %7817 = vmatprep.subr.bf16.mxu1 %v10044_v40 }
 0xcdb   :  { %7794 = vmatpush1.bf16.msra.mxu0 %v9572_v46  ;;  %7819 = vmatpush3.bf16.msra.mxu1 %v9575_v25 }
 0xcdc   :  { %7796 = vmatprep.subr.bf16.mxu0 %v9578_v48  ;;  %7820 = vmatprep.subr.bf16.mxu1 %v10044_v40 }
 0xcdf   :  { %7798 = vmatpush1.bf16.msra.mxu0 %v9582_v29  ;;  %7822 = vmatpush3.bf16.msra.mxu1 %v9585_v58 }
 0xce0   :  { %7824 = vmatprep.subr.bf16.mxu0 %v9502_v18  ;;  %7855 = vmatprep.subr.bf16.mxu1 %v10044_v40 }
 0xd95   :  { %v4315_v57 = vpop.f32.mrb[22].mxu0  ;;  %v4386_v53 = vpop.f32.mrb[46].mxu1 }
 0xd96   :  { %v8037_v45 = vadd.f32 %v4315_v57, %v9637_v55  ;;  %v4317_v17 = vpop.f32.mrb[23].mxu0  ;;  %v6407_v6 = vpop.f32.mrb[47].mxu1  ;;  %v4404_v54 = vadd.f32 %v9648_v13, %v4386_v53 }
 0xd97   :  { %v8038_v41 = vadd.f32 %v4317_v17, %v9642_v15  ;;  %v10092_v6 = vld [vmem:[#allocation17_spill] sm:$0xff] }
 0xd98   :  { %v5204_v49 = vmul.f32 -1.442695, %v8037_v45 }
 0xd99   :  { %v5205_v61 = vmul.f32 -1.442695, %v8038_v41 }
 0xd9a   :  { %8198 = vpow2.f32 %v5204_v49  ;;  %v2466_v49 = vadd.f32 %v10092_v6, %v9652_v21 }
 0xd9b   :  { %8200 = vpow2.f32 %v5205_v61 }
 0xda4   :  { %v8199_v24 = vpop.eup %8198 }
 0xda5   :  { %v4394_v14 = vadd.f32 1.0, %v8199_v24  ;;  %v8201_v1 = vpop.eup %8200 }
 0xda6   :  { %v4401_v52 = vadd.f32 1.0, %v8201_v1 }
 0xda7   :  { %8202 = vrcp.f32 %v4394_v14 }
 0xdb1   :  { %v8203_v27 = vpop.eup %8202 }
 0xdb2   :  { %v4405_v0 = vmul.f32 %v8203_v27, %v4404_v54 }
 0xdb4   :  { %v4406_v34 = vadd.f32 %v4405_v0, %v2058_v4 }
 0xdb6   :  { %8204 = vtanh.f32 %v4406_v34 }
 0xdb7   :  { %8206 = vrcp.f32 %v4401_v52 }
 0xdc0   :  { %v8205_v50 = vpop.eup %8204 }
 0xdc1   :  { %v4408_v19 = vsub.f32 %v9747_v10, %v8205_v50  ;;  %v8207_v12 = vpop.eup %8206 }
 0xdc3   :  { %v4409_v33 = vmul.f32 %v8207_v12, %v4408_v19 }
 0xdc5   :  { %v9792_v8 = vadd.f32 %v8205_v50, %v4409_v33 }
 0xdc7   :  { %4479 = vmatmul.mubr.f32.vlgmr.msra.gmra.mrb[24].mxu0 %v9792_v8  ;;  %6441 = vmatmul.mubr.f32.vlgmr.msra.gmra.mrb[48].mxu1 %v9792_v8 }
 0xdc8   :  { %7826 = vmatpush1.bf16.msra.mxu0 %v9512_v38  ;;  %7857 = vmatpush3.bf16.msra.mxu1 %v9514_v44 }
 0xdc9   :  { %7828 = vmatprep.subr.bf16.mxu0 %v9516_v30  ;;  %7858 = vmatprep.subr.bf16.mxu1 %v10044_v40 }
 0xdca   :  { %4643 = vmatprep.mubr.f32.mxu0 %v10045_v60  ;;  %6475 = vmatprep.mubr.msk.f32.mxu1 %vm8351_vm0, %v10045_v60 }
 0xdcc   :  { %7830 = vmatpush1.bf16.msra.mxu0 %v9519_v9  ;;  %7860 = vmatpush3.bf16.msra.mxu1 %v9522_v2 }
 0xdcd   :  { %7832 = vmatprep.subr.bf16.mxu0 %v9525_v32  ;;  %7861 = vmatprep.subr.bf16.mxu1 %v10044_v40 }
 0xdd0   :  { %7834 = vmatpush1.bf16.msra.mxu0 %v9532_v47  ;;  %7863 = vmatpush3.bf16.msra.mxu1 %v9535_v37 }
 0xdd1   :  { %7836 = vmatprep.subr.bf16.mxu0 %v9538_v26  ;;  %7864 = vmatprep.subr.bf16.mxu1 %v10044_v40 }
 0xdd4   :  { %7838 = vmatpush1.bf16.msra.mxu0 %v9542_v28  ;;  %7866 = vmatpush3.bf16.msra.mxu1 %v9545_v36 }
 0xdd5   :  { %7840 = vmatprep.subr.bf16.mxu0 %v9548_v59  ;;  %7867 = vmatprep.subr.bf16.mxu1 %v10044_v40 }
 0xdd8   :  { %7842 = vmatpush1.bf16.msra.mxu0 %v9552_v3  ;;  %7869 = vmatpush3.bf16.msra.mxu1 %v9555_v16 }
 0xdd9   :  { %7844 = vmatprep.subr.bf16.mxu0 %v9558_v23  ;;  %7870 = vmatprep.subr.bf16.mxu1 %v10044_v40 }
 0xddc   :  { %7846 = vmatpush1.bf16.msra.mxu0 %v9562_v63  ;;  %7872 = vmatpush3.bf16.msra.mxu1 %v9565_v56 }
 0xddd   :  { %7848 = vmatprep.subr.bf16.mxu0 %v9568_v62  ;;  %7873 = vmatprep.subr.bf16.mxu1 %v10044_v40 }
 0xde0   :  { %7850 = vmatpush1.bf16.msra.mxu0 %v9572_v46  ;;  %7875 = vmatpush3.bf16.msra.mxu1 %v9575_v25 }
 0xde1   :  { %7852 = vmatprep.subr.bf16.mxu0 %v9578_v48  ;;  %7876 = vmatprep.subr.bf16.mxu1 %v10044_v40 }
 0xde4   :  { %7854 = vmatpush1.bf16.msra.mxu0 %v9582_v29  ;;  %7878 = vmatpush3.bf16.msra.mxu1 %v9585_v58 }
 0xde5   :  { %7880 = vmatprep.subr.bf16.mxu0 %v9502_v18  ;;  %7911 = vmatprep.subr.bf16.mxu1 %v10044_v40 }
 0xe9a   :  { %v4480_v20 = vpop.f32.mrb[24].mxu0  ;;  %v4551_v39 = vpop.f32.mrb[48].mxu1 }
 0xe9b   :  { %v8039_v11 = vadd.f32 %v4480_v20, %v9637_v55  ;;  %v4482_v5 = vpop.f32.mrb[25].mxu0  ;;  %v6442_v43 = vpop.f32.mrb[49].mxu1  ;;  %v4569_v45 = vadd.f32 %v9648_v13, %v4551_v39 }
 0xe9c   :  { %v8040_v31 = vadd.f32 %v4482_v5, %v9642_v15  ;;  %v10093_v5 = vld [vmem:[#allocation18_spill] sm:$0xff] }
 0xe9d   :  { %v5206_v7 = vmul.f32 -1.442695, %v8039_v11  ;;  %v2874_v43 = vadd.f32 %v10093_v5, %v9652_v21 }
 0xe9e   :  { %v5207_v51 = vmul.f32 -1.442695, %v8040_v31 }
 0xe9f   :  { %8208 = vpow2.f32 %v5206_v7 }
 0xea0   :  { %8210 = vpow2.f32 %v5207_v51 }
 0xea9   :  { %v8209_v10 = vpop.eup %8208 }
 0xeaa   :  { %v4559_v57 = vadd.f32 1.0, %v8209_v10  ;;  %v8211_v53 = vpop.eup %8210 }
 0xeab   :  { %v4566_v24 = vadd.f32 1.0, %v8211_v53 }
 0xeac   :  { %8212 = vrcp.f32 %v4559_v57 }
 0xeb6   :  { %v8213_v17 = vpop.eup %8212 }
 0xeb7   :  { %v4570_v41 = vmul.f32 %v8213_v17, %v4569_v45 }
 0xeb9   :  { %v4571_v61 = vadd.f32 %v4570_v41, %v2466_v49  ;;  %v5074_v49 = vld [vmem:[%s10003_s9 + $0x10] sm:$0xff] }
 0xebb   :  { %8214 = vtanh.f32 %v4571_v61  ;;  %v5076_v61 = vld [vmem:[%s10003_s9 + $0x20] sm:$0xff] }
 0xebc   :  { %8216 = vrcp.f32 %v4566_v24  ;;  %v5077_v24 = vld [vmem:[%s10003_s9 + $0x28] sm:$0xff] }
 0xec5   :  { %v8215_v14 = vpop.eup %8214 }
 0xec6   :  { %v4573_v1 = vsub.f32 %v9792_v8, %v8215_v14  ;;  %v8217_v54 = vpop.eup %8216 }
 0xec8   :  { %v4574_v27 = vmul.f32 %v8217_v54, %v4573_v1  ;;  %v5078_v1 = vld [vmem:[%s10003_s9 + $0x30] sm:$0xff]  ;;  %v5079_v54 = vld [vmem:[%s10003_s9 + $0x38] sm:$0xff] }
 0xeca   :  { %v9837_v42 = vadd.f32 %v8215_v14, %v4574_v27  ;;  %v7998_v14 = vpack.c.bf16 %v5077_v24, %v5076_v61  ;;  %v8001_v27 = vpack.c.bf16 %v5079_v54, %v5078_v1 }
 0xecc   :  { %4644 = vmatmul.mubr.f32.vlgmr.msra.gmra.mrb[26].mxu0 %v9837_v42  ;;  %6476 = vmatmul.mubr.f32.vlgmr.msra.gmra.mrb[50].mxu1 %v9837_v42 }
 0xecd   :  { %7882 = vmatpush1.bf16.msra.mxu0 %v9512_v38  ;;  %7913 = vmatpush3.bf16.msra.mxu1 %v9514_v44 }
 0xece   :  { %7884 = vmatprep.subr.bf16.mxu0 %v9516_v30  ;;  %7914 = vmatprep.subr.bf16.mxu1 %v10044_v40 }
 0xecf   :  { %4808 = vmatprep.mubr.f32.mxu0 %v10045_v60  ;;  %6510 = vmatprep.mubr.msk.f32.mxu1 %vm8351_vm0, %v10045_v60 }
 0xed1   :  { %7886 = vmatpush1.bf16.msra.mxu0 %v9519_v9  ;;  %7916 = vmatpush3.bf16.msra.mxu1 %v9522_v2 }
 0xed2   :  { %7888 = vmatprep.subr.bf16.mxu0 %v9525_v32  ;;  %7917 = vmatprep.subr.bf16.mxu1 %v10044_v40 }
 0xed5   :  { %7890 = vmatpush1.bf16.msra.mxu0 %v9532_v47  ;;  %7919 = vmatpush3.bf16.msra.mxu1 %v9535_v37 }
 0xed6   :  { %7892 = vmatprep.subr.bf16.mxu0 %v9538_v26  ;;  %7920 = vmatprep.subr.bf16.mxu1 %v10044_v40 }
 0xed9   :  { %7894 = vmatpush1.bf16.msra.mxu0 %v9542_v28  ;;  %7922 = vmatpush3.bf16.msra.mxu1 %v9545_v36 }
 0xeda   :  { %7896 = vmatprep.subr.bf16.mxu0 %v9548_v59  ;;  %7923 = vmatprep.subr.bf16.mxu1 %v10044_v40 }
 0xedd   :  { %7898 = vmatpush1.bf16.msra.mxu0 %v9552_v3  ;;  %7925 = vmatpush3.bf16.msra.mxu1 %v9555_v16 }
 0xede   :  { %7900 = vmatprep.subr.bf16.mxu0 %v9558_v23  ;;  %7926 = vmatprep.subr.bf16.mxu1 %v10044_v40 }
 0xee1   :  { %7902 = vmatpush1.bf16.msra.mxu0 %v9562_v63  ;;  %7928 = vmatpush3.bf16.msra.mxu1 %v9565_v56 }
 0xee2   :  { %7904 = vmatprep.subr.bf16.mxu0 %v9568_v62  ;;  %7929 = vmatprep.subr.bf16.mxu1 %v10044_v40 }
 0xee5   :  { %7906 = vmatpush1.bf16.msra.mxu0 %v9572_v46  ;;  %7931 = vmatpush3.bf16.msra.mxu1 %v9575_v25 }
 0xee6   :  { %7908 = vmatprep.subr.bf16.mxu0 %v9578_v48  ;;  %7932 = vmatprep.subr.bf16.mxu1 %v10044_v40 }
 0xee9   :  { %7910 = vmatpush1.bf16.msra.mxu0 %v9582_v29  ;;  %7934 = vmatpush3.bf16.msra.mxu1 %v9585_v58 }
 0xeea   :  { %7936 = vmatprep.subr.bf16.mxu0 %v9502_v18  ;;  %7967 = vmatprep.subr.bf16.mxu1 %v10044_v40 }
 0xf9f   :  { %v4645_v4 = vpop.f32.mrb[26].mxu0  ;;  %v4716_v0 = vpop.f32.mrb[50].mxu1 }
 0xfa0   :  { %v8041_v34 = vadd.f32 %v4645_v4, %v9637_v55  ;;  %v4647_v52 = vpop.f32.mrb[27].mxu0  ;;  %v6477_v50 = vpop.f32.mrb[51].mxu1  ;;  %v4734_v18 = vadd.f32 %v9648_v13, %v4716_v0  ;;  %v5081_v4 = vld [vmem:[%s10003_s9 + $0x48] sm:$0xff] }
 0xfa1   :  { %v8042_v12 = vadd.f32 %v4647_v52, %v9642_v15  ;;  %v5083_v52 = vld [vmem:[%s10003_s9 + $0x58] sm:$0xff] }
 0xfa2   :  { %v5208_v19 = vmul.f32 -1.442695, %v8041_v34  ;;  %v5082_v34 = vld [vmem:[%s10003_s9 + $0x50] sm:$0xff] }
 0xfa3   :  { %v5209_v33 = vmul.f32 -1.442695, %v8042_v12  ;;  %v8007_v50 = vpack.c.bf16 %v5083_v52, %v5082_v34  ;;  %v5085_v12 = vld [vmem:[%s10003_s9 + $0x68] sm:$0xff] }
 0xfa4   :  { %8218 = vpow2.f32 %v5208_v19  ;;  %v5084_v19 = vld [vmem:[%s10003_s9 + $0x60] sm:$0xff] }
 0xfa5   :  { %8220 = vpow2.f32 %v5209_v33  ;;  %v8010_v33 = vpack.c.bf16 %v5085_v12, %v5084_v19 }
 0xfae   :  { %v8219_v8 = vpop.eup %8218 }
 0xfaf   :  { %v4724_v20 = vadd.f32 1.0, %v8219_v8  ;;  %v8221_v39 = vpop.eup %8220  ;;  %v5086_v8 = vld [vmem:[%s10003_s9 + $0x70] sm:$0xff] }
 0xfb0   :  { %v4731_v51 = vadd.f32 1.0, %v8221_v39 }
 0xfb1   :  { %8222 = vrcp.f32 %v4724_v20  ;;  %v5087_v20 = vld [vmem:[%s10003_s9 + $0x78] sm:$0xff] }
 0xfb2   :  { %v8013_v39 = vpack.c.bf16 %v5087_v20, %v5086_v8 }
 0xfbb   :  { %v8223_v11 = vpop.eup %8222 }
 0xfbc   :  { %v4735_v7 = vmul.f32 %v8223_v11, %v4734_v18 }
 0xfbe   :  { %v4736_v31 = vadd.f32 %v4735_v7, %v2874_v43 }
 0xfc0   :  { %8224 = vtanh.f32 %v4736_v31 }
 0xfc1   :  { %8226 = vrcp.f32 %v4731_v51 }
 0xfca   :  { %v8225_v10 = vpop.eup %8224 }
 0xfcb   :  { %v4738_v57 = vsub.f32 %v9837_v42, %v8225_v10  ;;  %v8227_v53 = vpop.eup %8226  ;;  %v5080_v42 = vld [vmem:[%s10003_s9 + $0x40] sm:$0xff] }
 0xfcc   :  { %v8004_v0 = vpack.c.bf16 %v5081_v4, %v5080_v42 }
 0xfcd   :  { %v4739_v45 = vmul.f32 %v8227_v53, %v4738_v57 }
 0xfcf   :  { %v4740_v17 = vadd.f32 %v8225_v10, %v4739_v45 }
 0xfd1   :  { %4809 = vmatmul.mubr.f32.vlgmr.msra.gmra.mrb[28].mxu0 %v4740_v17  ;;  %6511 = vmatmul.mubr.f32.vlgmr.msra.gmra.mrb[52].mxu1 %v4740_v17 }
 0xfd2   :  { %7938 = vmatpush1.bf16.msra.mxu0 %v9512_v38  ;;  %7969 = vmatpush3.bf16.msra.mxu1 %v9514_v44 }
 0xfd3   :  { %7940 = vmatprep.subr.bf16.mxu0 %v9516_v30  ;;  %7970 = vmatprep.subr.bf16.mxu1 %v10044_v40 }
 0xfd4   :  { %4973 = vmatprep.mubr.f32.mxu0 %v10045_v60  ;;  %6545 = vmatprep.mubr.msk.f32.mxu1 %vm8351_vm0, %v10045_v60 }
 0xfd6   :  { %7942 = vmatpush1.bf16.msra.mxu0 %v9519_v9  ;;  %7972 = vmatpush3.bf16.msra.mxu1 %v9522_v2 }
 0xfd7   :  { %7944 = vmatprep.subr.bf16.mxu0 %v9525_v32  ;;  %7973 = vmatprep.subr.bf16.mxu1 %v10044_v40 }
 0xfda   :  { %7946 = vmatpush1.bf16.msra.mxu0 %v9532_v47  ;;  %7975 = vmatpush3.bf16.msra.mxu1 %v9535_v37 }
 0xfdb   :  { %7948 = vmatprep.subr.bf16.mxu0 %v9538_v26  ;;  %7976 = vmatprep.subr.bf16.mxu1 %v10044_v40 }
 0xfde   :  { %7950 = vmatpush1.bf16.msra.mxu0 %v9542_v28  ;;  %7978 = vmatpush3.bf16.msra.mxu1 %v9545_v36 }
 0xfdf   :  { %7952 = vmatprep.subr.bf16.mxu0 %v9548_v59  ;;  %7979 = vmatprep.subr.bf16.mxu1 %v10044_v40 }
 0xfe2   :  { %7954 = vmatpush1.bf16.msra.mxu0 %v9552_v3  ;;  %7981 = vmatpush3.bf16.msra.mxu1 %v9555_v16  ;;  %v3282_v16 = vadd.f32 %v9505_v35, %v9652_v21  ;;  %v5072_v35 = vld [vmem:[%s10003_s9] sm:$0xff] }
 0xfe3   :  { %7956 = vmatprep.subr.bf16.mxu0 %v9558_v23  ;;  %7982 = vmatprep.subr.bf16.mxu1 %v10044_v40 }
 0xfe6   :  { %7958 = vmatpush1.bf16.msra.mxu0 %v9562_v63  ;;  %7984 = vmatpush3.bf16.msra.mxu1 %v9565_v56 }
 0xfe7   :  { %7960 = vmatprep.subr.bf16.mxu0 %v9568_v62  ;;  %7985 = vmatprep.subr.bf16.mxu1 %v10044_v40 }
 0xfea   :  { %7962 = vmatpush1.bf16.msra.mxu0 %v9572_v46  ;;  %7987 = vmatpush3.bf16.msra.mxu1 %v9575_v25 }
 0xfeb   :  { %7964 = vmatprep.subr.bf16.mxu0 %v9578_v48  ;;  %7988 = vmatprep.subr.bf16.mxu1 %v10044_v40 }
 0xfee   :  { %7966 = vmatpush1.bf16.msra.mxu0 %v9582_v29  ;;  %7990 = vmatpush3.bf16.msra.mxu1 %v9585_v58  ;;  %v5073_v58 = vld [vmem:[%s10003_s9 + $0x8] sm:$0xff] }
 0xfef   :  { %7991 = vmatprep.subr.bf16.mxu0 %v10044_v40  ;;  %v7992_v6 = vpack.c.bf16 %v5073_v58, %v5072_v35 }
0x10a4   :  { %v4810_v38 = vpop.f32.mrb[28].mxu0  ;;  %v4881_v44 = vpop.f32.mrb[52].mxu1 }
0x10a5   :  { %v8043_v30 = vadd.f32 %v4810_v38, %v9637_v55  ;;  %v4812_v9 = vpop.f32.mrb[29].mxu0  ;;  %v6512_v2 = vpop.f32.mrb[53].mxu1  ;;  %v4899_v59 = vadd.f32 %v9648_v13, %v4881_v44  ;;  %v3690_v38 = vadd.f32 %v9630_v22, %v9652_v21 }
0x10a6   :  { %v8044_v47 = vadd.f32 %v4812_v9, %v9642_v15 }
0x10a7   :  { %v5210_v32 = vmul.f32 -1.442695, %v8043_v30 }
0x10a8   :  { %v5211_v37 = vmul.f32 -1.442695, %v8044_v47 }
0x10a9   :  { %8228 = vpow2.f32 %v5210_v32 }
0x10aa   :  { %8230 = vpow2.f32 %v5211_v37 }
0x10b3   :  { %v8229_v26 = vpop.eup %8228 }
0x10b4   :  { %v4889_v28 = vadd.f32 1.0, %v8229_v26  ;;  %v8231_v36 = vpop.eup %8230 }
0x10b5   :  { %v4896_v56 = vadd.f32 1.0, %v8231_v36 }
0x10b6   :  { %8232 = vrcp.f32 %v4889_v28 }
0x10c0   :  { %v8233_v3 = vpop.eup %8232 }
0x10c1   :  { %v4900_v23 = vmul.f32 %v8233_v3, %v4899_v59 }
0x10c3   :  { %v4901_v63 = vadd.f32 %v4900_v23, %v3282_v16 }
0x10c5   :  { %8234 = vtanh.f32 %v4901_v63 }
0x10c6   :  { %8236 = vrcp.f32 %v4896_v56 }
0x10cf   :  { %v8235_v62 = vpop.eup %8234 }
0x10d0   :  { %v4903_v46 = vsub.f32 %v4740_v17, %v8235_v62  ;;  %v8237_v25 = vpop.eup %8236 }
0x10d2   :  { %v4904_v48 = vmul.f32 %v8237_v25, %v4903_v46 }
0x10d4   :  { %v9921_v29 = vadd.f32 %v8235_v62, %v4904_v48 }
0x10d6   :  { %4974 = vmatmul.mubr.f32.vlgmr.msra.gmra.mrb[30].mxu0 %v9921_v29  ;;  %6546 = vmatmul.mubr.f32.vlgmr.msra.gmra.mrb[54].mxu1 %v9921_v29 }
0x10d7   :  { %6580 = vmatprep.mubr.msk.f32.mxu0 %vm8351_vm0, %v10045_v60  ;;  %7993 = vmatpush3.bf16.msra.mxu0 %v7992_v6  ;;  %v5075_v60 = vld [vmem:[%s10003_s9 + $0x18] sm:$0xff] }
0x10d8   :  { %7994 = vmatprep.subr.bf16.mxu0 %v10044_v40  ;;  %v7995_v41 = vpack.c.bf16 %v5075_v60, %v5074_v49 }
0x10db   :  { %7996 = vmatpush3.bf16.msra.mxu0 %v7995_v41 }
0x10dc   :  { %7997 = vmatprep.subr.bf16.mxu0 %v10044_v40 }
0x10df   :  { %7999 = vmatpush3.bf16.msra.mxu0 %v7998_v14 }
0x10e0   :  { %8000 = vmatprep.subr.bf16.mxu0 %v10044_v40 }
0x10e3   :  { %8002 = vmatpush3.bf16.msra.mxu0 %v8001_v27 }
0x10e4   :  { %8003 = vmatprep.subr.bf16.mxu0 %v10044_v40 }
0x10e7   :  { %8005 = vmatpush3.bf16.msra.mxu0 %v8004_v0 }
0x10e8   :  { %8006 = vmatprep.subr.bf16.mxu0 %v10044_v40 }
0x10eb   :  { %8008 = vmatpush3.bf16.msra.mxu0 %v8007_v50 }
0x10ec   :  { %8009 = vmatprep.subr.bf16.mxu0 %v10044_v40 }
0x10ef   :  { %8011 = vmatpush3.bf16.msra.mxu0 %v8010_v33 }
0x10f0   :  { %8012 = vmatprep.subr.bf16.mxu0 %v10044_v40 }
0x10f3   :  { %8014 = vmatpush3.bf16.msra.mxu0 %v8013_v39 }
0x11a9   :  { %v4975_v18 = vpop.f32.mrb[30].mxu0  ;;  %v5046_v11 = vpop.f32.mrb[54].mxu1 }
0x11aa   :  { %v8045_v5 = vadd.f32 %v4975_v18, %v9637_v55  ;;  %v4977_v43 = vpop.f32.mrb[31].mxu0  ;;  %v6547_v7 = vpop.f32.mrb[55].mxu1  ;;  %v5064_v17 = vadd.f32 %v9648_v13, %v5046_v11  ;;  %v5214_v13 = vld [vmem:[%s10004_s10] ss:$0 sm:$0xff] }
0x11ab   :  { %v8046_v51 = vadd.f32 %v4977_v43, %v9642_v15 }
0x11ac   :  { %v5212_v31 = vmul.f32 -1.442695, %v8045_v5 }
0x11ad   :  { %v5213_v10 = vmul.f32 -1.442695, %v8046_v51 }
0x11ae   :  { %8238 = vpow2.f32 %v5212_v31 }
0x11af   :  { %8240 = vpow2.f32 %v5213_v10 }
0x11b8   :  { %v8239_v57 = vpop.eup %8238 }
0x11b9   :  { %v5054_v53 = vadd.f32 1.0, %v8239_v57  ;;  %v8241_v45 = vpop.eup %8240 }
0x11ba   :  { %v5061_v30 = vadd.f32 1.0, %v8241_v45 }
0x11bb   :  { %8242 = vrcp.f32 %v5054_v53 }
0x11c5   :  { %v8243_v40 = vpop.eup %8242 }
0x11c6   :  { %v5065_v44 = vmul.f32 %v8243_v40, %v5064_v17 }
0x11c8   :  { %v5066_v55 = vadd.f32 %v5065_v44, %v3690_v38 }
0x11ca   :  { %8244 = vtanh.f32 %v5066_v55 }
0x11cb   :  { %8246 = vrcp.f32 %v5061_v30 }
0x11d4   :  { %v8245_v9 = vpop.eup %8244 }
0x11d5   :  { %v5068_v15 = vsub.f32 %v9921_v29, %v8245_v9  ;;  %v8247_v2 = vpop.eup %8246 }
0x11d7   :  { %v5069_v32 = vmul.f32 %v8247_v2, %v5068_v15 }
0x11d9   :  { %v5070_v47 = vadd.f32 %v8245_v9, %v5069_v32 }
0x11db   :  { %v5071_v37 = vmax.f32 %v5070_v47, 0.0 }
0x11dd   :  { %6581 = vmatmul.mubr.f32.vlgmr.msra.gmra.mrb[32].mxu0 %v5071_v37 }
0x12b0   :  { %v5161_v26 = vpop.f32.mrb[32].mxu0 }
0x12b1   :  { %v5162_v28 = vadd.f32 %v5214_v13, %v5161_v26  ;;  %v6582_v22 = vpop.f32.mrb[33].mxu0 }
0x12b3   :  { %5165 = vst [vmem:[%s10005_s11] sm:$0xff] %v5162_v28 }
0x12b4   :  { %5170 = vsyncpa [#allocation4], 1 }
0x12b5   :  { %5171 = vsyncpa [#allocation6], 1 }
0x12b6   :  { %5172 = vsyncpa [#allocation9], 1 }

</bundles_post_ra>
